<compile_context>
chip_gen: v7x
topology: tpu7x:2x2x1
jax: 0.10.0
libtpu: 0.0.40
codegen_flags: <defaults>
</compile_context>

<pallas_src>
import math

import jax
import jax.numpy as jnp
from jax.experimental import pallas as pl
from jax.experimental.pallas import tpu as pltpu

EPS = 1e-5


def _patch_merge_kernel(xh0_ref, xh1_ref, w0_ref, w1_ref, bias_ref, o_ref):
    # xh0_ref : (tr, Wh, 2C)   h-even rows; channels = [w-even C | w-odd C]
    # xh1_ref : (tr, Wh, 2C)   h-odd  rows; channels = [w-even C | w-odd C]
    # w0_ref  : (2C, 2C)       gamma-folded weight rows for the h-even stream
    # w1_ref  : (2C, 2C)       gamma-folded weight rows for the h-odd  stream
    # bias_ref: (1, 2C)        beta @ W^T (LayerNorm beta folded into a bias)
    # o_ref   : (tr*Wh, 2C)    lane/sublane-dense output slab
    tr, Wh, C2 = xh0_ref.shape
    rows = tr * Wh

    a = xh0_ref[...].astype(jnp.float32)          # (tr, Wh, 2C)
    b = xh1_ref[...].astype(jnp.float32)

    # One-pass LayerNorm statistics over the merged 4C channels (split across
    # the two parity streams).  Biased variance, like torch.nn.LayerNorm.
    inv_n = 1.0 / (2 * C2)
    mean = (jnp.sum(a, axis=-1, keepdims=True)
            + jnp.sum(b, axis=-1, keepdims=True)) * inv_n
    ex2 = (jnp.sum(a * a, axis=-1, keepdims=True)
           + jnp.sum(b * b, axis=-1, keepdims=True)) * inv_n
    var = jnp.maximum(ex2 - mean * mean, 0.0)
    inv = jax.lax.rsqrt(var + EPS)

    # gamma lives in w0/w1 and beta in bias -> no per-channel affine here.
    an = ((a - mean) * inv).astype(w0_ref.dtype).reshape(rows, C2)
    bn = ((b - mean) * inv).astype(w1_ref.dtype).reshape(rows, C2)

    prec = jax.lax.Precision.HIGHEST if w0_ref.dtype == jnp.float32 else None
    y = bias_ref[...].astype(jnp.float32)                       # (1, 2C) bcast
    y = y + jnp.dot(an, w0_ref[...], preferred_element_type=jnp.float32,
                    precision=prec)
    y = y + jnp.dot(bn, w1_ref[...], preferred_element_type=jnp.float32,
                    precision=prec)

    o_ref[...] = y.astype(o_ref.dtype)


def _pick_row_tile(R, Wh, C2, in_isz, out_isz, w_isz, tile_vmem_budget, *,
                   target_step_bytes=3 << 20, min_steps=8):
    """Byte-targeted row-pair tile: ~2-4 MiB of in+out HBM traffic per grid
    step, capped by the VMEM budget, while keeping >= min_steps (even) grid
    steps so the 1-D 'parallel' grid splits over 2 TensorCores and still
    double-buffers (v7x)."""
    hbm_per_rp = (2 * in_isz + out_isz) * Wh * C2           # 2 in streams + out
    vmem_per_rp = (4 * in_isz + 2 * out_isz + 3 * 4 + 2 * w_isz) * Wh * C2
    tr = max(1, target_step_bytes // hbm_per_rp)
    tr = min(tr, max(1, tile_vmem_budget // vmem_per_rp))
    if R >= min_steps:
        tr = min(tr, max(1, R // min_steps))
    tr = max(1, min(tr, R))
    steps = pl.cdiv(R, tr)
    if steps > 1 and steps % 2 == 1 and tr > 1:              # even step count
        tr_even = max(1, pl.cdiv(R, steps + 1))
        if pl.cdiv(R, tr_even) % 2 == 0:
            tr = tr_even
    return int(tr)


def patch_merging(x, input_resolution, gamma, beta, weight, *,
                  block_rows=None, matmul_dtype=jnp.bfloat16, out_dtype=None):
    """x: (B, H*W, C) -> (B, H/2*W/2, 2C).  weight: (2C, 4C) torch layout.

    Pass x in bf16 for best performance (the op is HBM-bound on all TPU
    generations); LN statistics and matmul accumulation stay in f32.
    """
    H, W = input_resolution
    B, L, C = x.shape
    assert L == H * W, "input feature has wrong size"
    assert H % 2 == 0 and W % 2 == 0, f"x size ({H}*{W}) are not even."

    Hh, Wh = H // 2, W // 2
    C2 = 2 * C
    R = B * Hh                                    # row-pair axis we tile over
    out_dtype = jnp.dtype(x.dtype if out_dtype is None else out_dtype)

    # Free reshape (row-major relabel, no data movement):
    #   (B, H*W, C) -> (B*Hh, 2, Wh, 2C); dim 1 is the h-parity, the last dim
    #   packs [w-even C channels | w-odd C channels].
    x7 = x.reshape(R, 2, Wh, C2)

    # --- fold LayerNorm affine into the reduction weight / output bias ---
    wT = weight.astype(jnp.float32).T                      # (4C, 2C)
    wg = gamma.astype(jnp.float32)[:, None] * wT           # gamma folded
    bias = (beta.astype(jnp.float32) @ wT).reshape(1, C2)  # (1, 2C)
    # torch concat order is [x0(h0,w0) | x1(h1,w0) | x2(h0,w1) | x3(h1,w1)]:
    #   h-even stream sees [x0 | x2] -> rows [0:C]  ++ [2C:3C]
    #   h-odd  stream sees [x1 | x3] -> rows [C:2C] ++ [3C:4C]
    w_h0 = jnp.concatenate([wg[0:C], wg[2 * C:3 * C]], axis=0).astype(matmul_dtype)
    w_h1 = jnp.concatenate([wg[C:2 * C], wg[3 * C:4 * C]], axis=0).astype(matmul_dtype)

    in_isz = x.dtype.itemsize
    out_isz = out_dtype.itemsize
    w_isz = jnp.dtype(matmul_dtype).itemsize

    # Per-generation VMEM budget (v7x has only 64 MiB per TensorCore).
    try:
        phys_vmem = int(pltpu.get_tpu_info().vmem_capacity_bytes)
    except Exception:
        phys_vmem = 64 << 20                      # conservative (v7x per-TC)
    weights_vmem = 2 * (2 * C2 * C2 * w_isz + C2 * 4)   # worst case 2x-buffered
    tile_budget = max(int(phys_vmem * 0.6) - weights_vmem - (4 << 20), 2 << 20)

    if block_rows is not None:
        tr = max(1, min(int(block_rows), R))
    else:
        tr = _pick_row_tile(R, Wh, C2, in_isz, out_isz, w_isz, tile_budget)

    # The 2-D output block is (tr*Wh, 2C): its sublane extent must be a
    # multiple of 8 unless it spans the whole array, so round tr up as needed.
    m = 8 // math.gcd(Wh, 8)
    tr = int(min(pl.cdiv(tr, m) * m, R))
    if tr != R and (tr * Wh) % 8 != 0:
        tr = R
    num_steps = int(pl.cdiv(R, tr))

    # Scoped VMEM: actual tile need + headroom, capped well under physical.
    need = (tr * Wh * C2 * (4 * in_isz + 2 * out_isz + 3 * 4 + 2 * w_isz)
            + weights_vmem + (4 << 20))
    vmem_limit = int(min(max(need, 16 << 20), int(phys_vmem * 0.7)))

    def _run(const_spec_kwargs):
        in_specs = [
            # same input array passed twice; each spec streams one h-parity
            pl.BlockSpec((tr, None, Wh, C2), lambda i: (i, 0, 0, 0)),
            pl.BlockSpec((tr, None, Wh, C2), lambda i: (i, 1, 0, 0)),
            pl.BlockSpec((C2, C2), lambda i: (0, 0), **const_spec_kwargs),
            pl.BlockSpec((C2, C2), lambda i: (0, 0), **const_spec_kwargs),
            pl.BlockSpec((1, C2), lambda i: (0, 0), **const_spec_kwargs),
        ]
        call = pl.pallas_call(
            _patch_merge_kernel,
            out_shape=jax.ShapeDtypeStruct((R * Wh, C2), out_dtype),
            grid_spec=pltpu.PrefetchScalarGridSpec(
                num_scalar_prefetch=0,
                grid=(num_steps,),
                in_specs=in_specs,
                out_specs=pl.BlockSpec((tr * Wh, C2), lambda i: (i, 0)),
            ),
            compiler_params=pltpu.CompilerParams(
                dimension_semantics=("parallel",),
                vmem_limit_bytes=vmem_limit),
        )
        return call(x7, x7, w_h0, w_h1, bias)

    try:
        # Constant-index weights/bias never change across the grid: single-
        # buffer them to keep VMEM headroom for the row tile (matters most on
        # v7x at large C where each bf16 weight is ~(2C)^2 * 2 bytes).
        out2d = _run(dict(pipeline_mode=pl.Buffered(1)))
    except Exception:
        # pipeline_mode / Buffered(1) unsupported on this jax version; fall
        # back to default double-buffering (correctness unaffected).
        out2d = _run({})

    return out2d.reshape(B, Hh * Wh, C2)


def _reference(x, input_resolution, gamma, beta, weight):
    H, W = input_resolution
    B, L, C = x.shape
    xv = x.reshape(B, H, W, C)
    x0 = xv[:, 0::2, 0::2, :]
    x1 = xv[:, 1::2, 0::2, :]
    x2 = xv[:, 0::2, 1::2, :]
    x3 = xv[:, 1::2, 1::2, :]
    xm = jnp.concatenate([x0, x1, x2, x3], axis=-1).reshape(B, -1, 4 * C)
    xm = xm.astype(jnp.float32)
    mu = jnp.mean(xm, axis=-1, keepdims=True)
    var = jnp.mean((xm - mu) ** 2, axis=-1, keepdims=True)
    xn = (xm - mu) / jnp.sqrt(var + EPS) * gamma + beta
    return xn @ weight.astype(jnp.float32).T


if __name__ == "__main__":
    # Small, even resolution consistent with the module; 2C = 128 keeps the
    # output lane-dense; Wh = 8 keeps in-kernel reshapes free.
    B, H, W, C = 2, 16, 16, 64
    key = jax.random.PRNGKey(0)
    kx, kw, kg, kb = jax.random.split(key, 4)

    x = jax.random.normal(kx, (B, H * W, C), dtype=jnp.float32)
    # Module __init__ shapes: LayerNorm(4*dim) gamma/beta (4C,),
    # Linear(4*dim, 2*dim, bias=False) weight (2C, 4C).
    gamma = 1.0 + 0.1 * jax.random.normal(kg, (4 * C,), dtype=jnp.float32)
    beta = 0.05 * jax.random.normal(kb, (4 * C,), dtype=jnp.float32)
    weight = jax.random.normal(kw, (2 * C, 4 * C), dtype=jnp.float32) * 0.02

    ref = _reference(x, (H, W), gamma, beta, weight)

    # f32 I/O + f32 matmul: tight check of the fused gather + one-pass LN +
    # folded affine.
    out_f32 = jax.block_until_ready(
        patch_merging(x, (H, W), gamma, beta, weight, matmul_dtype=jnp.float32))
    assert out_f32.shape == (B, (H // 2) * (W // 2), 2 * C)
    assert jnp.allclose(out_f32, ref, atol=5e-3, rtol=5e-3)

    # Production setting: bf16 I/O + bf16 matmul (f32 LN stats / accumulation).
    out_bf16 = jax.block_until_ready(
        patch_merging(x.astype(jnp.bfloat16), (H, W), gamma, beta, weight))
    assert out_bf16.dtype == jnp.bfloat16
    assert out_bf16.shape == (B, (H // 2) * (W // 2), 2 * C)
    assert jnp.allclose(out_bf16.astype(jnp.float32), ref, atol=1e-1, rtol=1e-1)

    print("KERNEL_OK")
</pallas_src>

<mosaic_0001>
module attributes {stable_mosaic.version = 11 : i64} {
  func.func @_patch_merge_kernel(%arg0: i32, %arg1: memref<2x1x8x128xf32, #tpu.memory_space<vmem>>, %arg2: memref<2x1x8x128xf32, #tpu.memory_space<vmem>>, %arg3: memref<128x128xf32, #tpu.memory_space<vmem>>, %arg4: memref<128x128xf32, #tpu.memory_space<vmem>>, %arg5: memref<1x128xf32, #tpu.memory_space<vmem>>, %arg6: memref<16x128xf32, #tpu.memory_space<vmem>>) attributes {dimension_semantics = [#tpu.dimension_semantics<parallel>], iteration_bounds = array<i64: 8>, scalar_prefetch = 0 : i64, scratch_operands = 0 : i64, tpu.core_type = #tpu.core_type<tc>, window_params = [{transform_indices = @transform_0, window_bounds = array<i64: 2, 1, 8, 128>}, {transform_indices = @transform_1, window_bounds = array<i64: 2, 1, 8, 128>}, {pipeline_mode = #tpu.pipeline_mode<synchronous>, transform_indices = @transform_2, window_bounds = array<i64: 128, 128>}, {pipeline_mode = #tpu.pipeline_mode<synchronous>, transform_indices = @transform_3, window_bounds = array<i64: 128, 128>}, {pipeline_mode = #tpu.pipeline_mode<synchronous>, transform_indices = @transform_4, window_bounds = array<i64: 1, 128>}, {transform_indices = @transform_5, window_bounds = array<i64: 16, 128>}]} {
    %c0 = arith.constant 0 : index
    %c0_0 = arith.constant 0 : index
    %c0_1 = arith.constant 0 : index
    %c0_2 = arith.constant 0 : index
    %0 = vector.load %arg1[%c0, %c0_0, %c0_1, %c0_2] : memref<2x1x8x128xf32, #tpu.memory_space<vmem>>, vector<2x1x8x128xf32>
    %1 = vector.shape_cast %0 : vector<2x1x8x128xf32> to vector<2x8x128xf32>
    %c0_3 = arith.constant 0 : index
    %c0_4 = arith.constant 0 : index
    %c0_5 = arith.constant 0 : index
    %c0_6 = arith.constant 0 : index
    %2 = vector.load %arg2[%c0_3, %c0_4, %c0_5, %c0_6] : memref<2x1x8x128xf32, #tpu.memory_space<vmem>>, vector<2x1x8x128xf32>
    %3 = vector.shape_cast %2 : vector<2x1x8x128xf32> to vector<2x8x128xf32>
    %cst = arith.constant dense<0.000000e+00> : vector<2x8xf32>
    %4 = vector.multi_reduction <add>, %1, %cst [2] : vector<2x8x128xf32> to vector<2x8xf32>
    %5 = vector.shape_cast %4 : vector<2x8xf32> to vector<2x8x1xf32>
    %cst_7 = arith.constant dense<0.000000e+00> : vector<2x8xf32>
    %6 = vector.multi_reduction <add>, %3, %cst_7 [2] : vector<2x8x128xf32> to vector<2x8xf32>
    %7 = vector.shape_cast %6 : vector<2x8xf32> to vector<2x8x1xf32>
    %8 = arith.addf %5, %7 : vector<2x8x1xf32>
    %cst_8 = arith.constant 3.906250e-03 : f32
    %9 = vector.broadcast %cst_8 : f32 to vector<2x8x1xf32>
    %10 = arith.mulf %8, %9 : vector<2x8x1xf32>
    %11 = arith.mulf %1, %1 : vector<2x8x128xf32>
    %cst_9 = arith.constant dense<0.000000e+00> : vector<2x8xf32>
    %12 = vector.multi_reduction <add>, %11, %cst_9 [2] : vector<2x8x128xf32> to vector<2x8xf32>
    %13 = vector.shape_cast %12 : vector<2x8xf32> to vector<2x8x1xf32>
    %14 = arith.mulf %3, %3 : vector<2x8x128xf32>
    %cst_10 = arith.constant dense<0.000000e+00> : vector<2x8xf32>
    %15 = vector.multi_reduction <add>, %14, %cst_10 [2] : vector<2x8x128xf32> to vector<2x8xf32>
    %16 = vector.shape_cast %15 : vector<2x8xf32> to vector<2x8x1xf32>
    %17 = arith.addf %13, %16 : vector<2x8x1xf32>
    %cst_11 = arith.constant 3.906250e-03 : f32
    %18 = vector.broadcast %cst_11 : f32 to vector<2x8x1xf32>
    %19 = arith.mulf %17, %18 : vector<2x8x1xf32>
    %20 = arith.mulf %10, %10 : vector<2x8x1xf32>
    %21 = arith.subf %19, %20 : vector<2x8x1xf32>
    %cst_12 = arith.constant 0.000000e+00 : f32
    %22 = vector.broadcast %cst_12 : f32 to vector<2x8x1xf32>
    %23 = arith.maximumf %21, %22 : vector<2x8x1xf32>
    %cst_13 = arith.constant 9.99999974E-6 : f32
    %24 = vector.broadcast %cst_13 : f32 to vector<2x8x1xf32>
    %25 = arith.addf %23, %24 : vector<2x8x1xf32>
    %26 = math.rsqrt %25 : vector<2x8x1xf32>
    %27 = vector.broadcast %10 : vector<2x8x1xf32> to vector<2x8x128xf32>
    %28 = arith.subf %1, %27 : vector<2x8x128xf32>
    %29 = vector.broadcast %26 : vector<2x8x1xf32> to vector<2x8x128xf32>
    %30 = arith.mulf %28, %29 : vector<2x8x128xf32>
    %31 = vector.shape_cast %30 : vector<2x8x128xf32> to vector<16x128xf32>
    %32 = vector.broadcast %10 : vector<2x8x1xf32> to vector<2x8x128xf32>
    %33 = arith.subf %3, %32 : vector<2x8x128xf32>
    %34 = vector.broadcast %26 : vector<2x8x1xf32> to vector<2x8x128xf32>
    %35 = arith.mulf %33, %34 : vector<2x8x128xf32>
    %36 = vector.shape_cast %35 : vector<2x8x128xf32> to vector<16x128xf32>
    %c0_14 = arith.constant 0 : index
    %c0_15 = arith.constant 0 : index
    %37 = vector.load %arg5[%c0_14, %c0_15] : memref<1x128xf32, #tpu.memory_space<vmem>>, vector<1x128xf32>
    %c0_16 = arith.constant 0 : index
    %c0_17 = arith.constant 0 : index
    %38 = vector.load %arg3[%c0_16, %c0_17] : memref<128x128xf32, #tpu.memory_space<vmem>>, vector<128x128xf32>
    %cst_18 = arith.constant dense<0.000000e+00> : vector<16x128xf32>
    %39 = tpu.matmul %31, %38, %cst_18 {dimension_numbers = #tpu.dot_dimension_numbers<[1], [0], [0], [1], [0, 0, 1, 1], [], []>, precision = #tpu.contract_precision<fp32>} : vector<16x128xf32>, vector<128x128xf32>, vector<16x128xf32> -> vector<16x128xf32>
    %40 = vector.broadcast %37 : vector<1x128xf32> to vector<16x128xf32>
    %41 = arith.addf %40, %39 : vector<16x128xf32>
    %c0_19 = arith.constant 0 : index
    %c0_20 = arith.constant 0 : index
    %42 = vector.load %arg4[%c0_19, %c0_20] : memref<128x128xf32, #tpu.memory_space<vmem>>, vector<128x128xf32>
    %cst_21 = arith.constant dense<0.000000e+00> : vector<16x128xf32>
    %43 = tpu.matmul %36, %42, %cst_21 {dimension_numbers = #tpu.dot_dimension_numbers<[1], [0], [0], [1], [0, 0, 1, 1], [], []>, precision = #tpu.contract_precision<fp32>} : vector<16x128xf32>, vector<128x128xf32>, vector<16x128xf32> -> vector<16x128xf32>
    %44 = arith.addf %41, %43 : vector<16x128xf32>
    %c0_22 = arith.constant 0 : index
    %c0_23 = arith.constant 0 : index
    %45 = vector.load %arg6[%c0_22, %c0_23] : memref<16x128xf32, #tpu.memory_space<vmem>>, vector<16x128xf32>
    tpu.vector_store %arg6[%c0_22, %c0_23], %44 {strides = array<i32>} : memref<16x128xf32, #tpu.memory_space<vmem>>, vector<16x128xf32>,
    return
  }
  func.func @transform_0(%arg0: i32) -> (i32, i32, i32, i32) {
    %c0_i32 = arith.constant 0 : i32
    %c0_i32_0 = arith.constant 0 : i32
    %c0_i32_1 = arith.constant 0 : i32
    %c0_i32_2 = arith.constant 0 : i32
    return %arg0, %c0_i32, %c0_i32_0, %c0_i32_1 : i32, i32, i32, i32
  }
  func.func @transform_1(%arg0: i32) -> (i32, i32, i32, i32) {
    %c1_i32 = arith.constant 1 : i32
    %c0_i32 = arith.constant 0 : i32
    %c0_i32_0 = arith.constant 0 : i32
    %c0_i32_1 = arith.constant 0 : i32
    return %arg0, %c1_i32, %c0_i32, %c0_i32_0 : i32, i32, i32, i32
  }
  func.func @transform_2(%arg0: i32) -> (i32, i32) {
    %c0_i32 = arith.constant 0 : i32
    %c0_i32_0 = arith.constant 0 : i32
    %c0_i32_1 = arith.constant 0 : i32
    return %c0_i32, %c0_i32_0 : i32, i32
  }
  func.func @transform_3(%arg0: i32) -> (i32, i32) {
    %c0_i32 = arith.constant 0 : i32
    %c0_i32_0 = arith.constant 0 : i32
    %c0_i32_1 = arith.constant 0 : i32
    return %c0_i32, %c0_i32_0 : i32, i32
  }
  func.func @transform_4(%arg0: i32) -> (i32, i32) {
    %c0_i32 = arith.constant 0 : i32
    %c0_i32_0 = arith.constant 0 : i32
    %c0_i32_1 = arith.constant 0 : i32
    return %c0_i32, %c0_i32_0 : i32, i32
  }
  func.func @transform_5(%arg0: i32) -> (i32, i32) {
    %c0_i32 = arith.constant 0 : i32
    %c0_i32_0 = arith.constant 0 : i32
    return %arg0, %c0_i32 : i32, i32
  }
}

module attributes {stable_mosaic.version = 11 : i64} {
  func.func @_patch_merge_kernel(%arg0: i32, %arg1: memref<2x1x8x128xf32, #tpu.memory_space<vmem>>, %arg2: memref<2x1x8x128xf32, #tpu.memory_space<vmem>>, %arg3: memref<128x128xf32, #tpu.memory_space<vmem>>, %arg4: memref<128x128xf32, #tpu.memory_space<vmem>>, %arg5: memref<1x128xf32, #tpu.memory_space<vmem>>, %arg6: memref<16x128xf32, #tpu.memory_space<vmem>>) attributes {dimension_semantics = [#tpu.dimension_semantics<parallel>], iteration_bounds = array<i64: 8>, scalar_prefetch = 0 : i64, scratch_operands = 0 : i64, tpu.core_type = #tpu.core_type<tc>, window_params = [{transform_indices = @transform_0, window_bounds = array<i64: 2, 1, 8, 128>}, {transform_indices = @transform_1, window_bounds = array<i64: 2, 1, 8, 128>}, {pipeline_mode = #tpu.pipeline_mode<synchronous>, transform_indices = @transform_2, window_bounds = array<i64: 128, 128>}, {pipeline_mode = #tpu.pipeline_mode<synchronous>, transform_indices = @transform_3, window_bounds = array<i64: 128, 128>}, {pipeline_mode = #tpu.pipeline_mode<synchronous>, transform_indices = @transform_4, window_bounds = array<i64: 1, 128>}, {transform_indices = @transform_5, window_bounds = array<i64: 16, 128>}]} {
    %c0 = arith.constant 0 : index
    %c0_0 = arith.constant 0 : index
    %c0_1 = arith.constant 0 : index
    %c0_2 = arith.constant 0 : index
    %0 = vector.load %arg1[%c0, %c0_0, %c0_1, %c0_2] : memref<2x1x8x128xf32, #tpu.memory_space<vmem>>, vector<2x1x8x128xf32>
    %1 = vector.shape_cast %0 : vector<2x1x8x128xf32> to vector<2x8x128xf32>
    %c0_3 = arith.constant 0 : index
    %c0_4 = arith.constant 0 : index
    %c0_5 = arith.constant 0 : index
    %c0_6 = arith.constant 0 : index
    %2 = vector.load %arg2[%c0_3, %c0_4, %c0_5, %c0_6] : memref<2x1x8x128xf32, #tpu.memory_space<vmem>>, vector<2x1x8x128xf32>
    %3 = vector.shape_cast %2 : vector<2x1x8x128xf32> to vector<2x8x128xf32>
    %cst = arith.constant dense<0.000000e+00> : vector<2x8xf32>
    %4 = vector.multi_reduction <add>, %1, %cst [2] : vector<2x8x128xf32> to vector<2x8xf32>
    %5 = vector.shape_cast %4 : vector<2x8xf32> to vector<2x8x1xf32>
    %cst_7 = arith.constant dense<0.000000e+00> : vector<2x8xf32>
    %6 = vector.multi_reduction <add>, %3, %cst_7 [2] : vector<2x8x128xf32> to vector<2x8xf32>
    %7 = vector.shape_cast %6 : vector<2x8xf32> to vector<2x8x1xf32>
    %8 = arith.addf %5, %7 : vector<2x8x1xf32>
    %cst_8 = arith.constant 3.906250e-03 : f32
    %9 = vector.broadcast %cst_8 : f32 to vector<2x8x1xf32>
    %10 = arith.mulf %8, %9 : vector<2x8x1xf32>
    %11 = arith.mulf %1, %1 : vector<2x8x128xf32>
    %cst_9 = arith.constant dense<0.000000e+00> : vector<2x8xf32>
    %12 = vector.multi_reduction <add>, %11, %cst_9 [2] : vector<2x8x128xf32> to vector<2x8xf32>
    %13 = vector.shape_cast %12 : vector<2x8xf32> to vector<2x8x1xf32>
    %14 = arith.mulf %3, %3 : vector<2x8x128xf32>
    %cst_10 = arith.constant dense<0.000000e+00> : vector<2x8xf32>
    %15 = vector.multi_reduction <add>, %14, %cst_10 [2] : vector<2x8x128xf32> to vector<2x8xf32>
    %16 = vector.shape_cast %15 : vector<2x8xf32> to vector<2x8x1xf32>
    %17 = arith.addf %13, %16 : vector<2x8x1xf32>
    %cst_11 = arith.constant 3.906250e-03 : f32
    %18 = vector.broadcast %cst_11 : f32 to vector<2x8x1xf32>
    %19 = arith.mulf %17, %18 : vector<2x8x1xf32>
    %20 = arith.mulf %10, %10 : vector<2x8x1xf32>
    %21 = arith.subf %19, %20 : vector<2x8x1xf32>
    %cst_12 = arith.constant 0.000000e+00 : f32
    %22 = vector.broadcast %cst_12 : f32 to vector<2x8x1xf32>
    %23 = arith.maximumf %21, %22 : vector<2x8x1xf32>
    %cst_13 = arith.constant 9.99999974E-6 : f32
    %24 = vector.broadcast %cst_13 : f32 to vector<2x8x1xf32>
    %25 = arith.addf %23, %24 : vector<2x8x1xf32>
    %26 = math.rsqrt %25 : vector<2x8x1xf32>
    %27 = vector.broadcast %10 : vector<2x8x1xf32> to vector<2x8x128xf32>
    %28 = arith.subf %1, %27 : vector<2x8x128xf32>
    %29 = vector.broadcast %26 : vector<2x8x1xf32> to vector<2x8x128xf32>
    %30 = arith.mulf %28, %29 : vector<2x8x128xf32>
    %31 = vector.shape_cast %30 : vector<2x8x128xf32> to vector<16x128xf32>
    %32 = vector.broadcast %10 : vector<2x8x1xf32> to vector<2x8x128xf32>
    %33 = arith.subf %3, %32 : vector<2x8x128xf32>
    %34 = vector.broadcast %26 : vector<2x8x1xf32> to vector<2x8x128xf32>
    %35 = arith.mulf %33, %34 : vector<2x8x128xf32>
    %36 = vector.shape_cast %35 : vector<2x8x128xf32> to vector<16x128xf32>
    %c0_14 = arith.constant 0 : index
    %c0_15 = arith.constant 0 : index
    %37 = vector.load %arg5[%c0_14, %c0_15] : memref<1x128xf32, #tpu.memory_space<vmem>>, vector<1x128xf32>
    %c0_16 = arith.constant 0 : index
    %c0_17 = arith.constant 0 : index
    %38 = vector.load %arg3[%c0_16, %c0_17] : memref<128x128xf32, #tpu.memory_space<vmem>>, vector<128x128xf32>
    %cst_18 = arith.constant dense<0.000000e+00> : vector<16x128xf32>
    %39 = tpu.matmul %31, %38, %cst_18 {dimension_numbers = #tpu.dot_dimension_numbers<[1], [0], [0], [1], [0, 0, 1, 1], [], []>, precision = #tpu.contract_precision<fp32>} : vector<16x128xf32>, vector<128x128xf32>, vector<16x128xf32> -> vector<16x128xf32>
    %40 = vector.broadcast %37 : vector<1x128xf32> to vector<16x128xf32>
    %41 = arith.addf %40, %39 : vector<16x128xf32>
    %c0_19 = arith.constant 0 : index
    %c0_20 = arith.constant 0 : index
    %42 = vector.load %arg4[%c0_19, %c0_20] : memref<128x128xf32, #tpu.memory_space<vmem>>, vector<128x128xf32>
    %cst_21 = arith.constant dense<0.000000e+00> : vector<16x128xf32>
    %43 = tpu.matmul %36, %42, %cst_21 {dimension_numbers = #tpu.dot_dimension_numbers<[1], [0], [0], [1], [0, 0, 1, 1], [], []>, precision = #tpu.contract_precision<fp32>} : vector<16x128xf32>, vector<128x128xf32>, vector<16x128xf32> -> vector<16x128xf32>
    %44 = arith.addf %41, %43 : vector<16x128xf32>
    %c0_22 = arith.constant 0 : index
    %c0_23 = arith.constant 0 : index
    %45 = vector.load %arg6[%c0_22, %c0_23] : memref<16x128xf32, #tpu.memory_space<vmem>>, vector<16x128xf32>
    tpu.vector_store %arg6[%c0_22, %c0_23], %44 {strides = array<i32>} : memref<16x128xf32, #tpu.memory_space<vmem>>, vector<16x128xf32>,
    return
  }
  func.func @transform_0(%arg0: i32) -> (i32, i32, i32, i32) {
    %c0_i32 = arith.constant 0 : i32
    %c0_i32_0 = arith.constant 0 : i32
    %c0_i32_1 = arith.constant 0 : i32
    %c0_i32_2 = arith.constant 0 : i32
    return %arg0, %c0_i32, %c0_i32_0, %c0_i32_1 : i32, i32, i32, i32
  }
  func.func @transform_1(%arg0: i32) -> (i32, i32, i32, i32) {
    %c1_i32 = arith.constant 1 : i32
    %c0_i32 = arith.constant 0 : i32
    %c0_i32_0 = arith.constant 0 : i32
    %c0_i32_1 = arith.constant 0 : i32
    return %arg0, %c1_i32, %c0_i32, %c0_i32_0 : i32, i32, i32, i32
  }
  func.func @transform_2(%arg0: i32) -> (i32, i32) {
    %c0_i32 = arith.constant 0 : i32
    %c0_i32_0 = arith.constant 0 : i32
    %c0_i32_1 = arith.constant 0 : i32
    return %c0_i32, %c0_i32_0 : i32, i32
  }
  func.func @transform_3(%arg0: i32) -> (i32, i32) {
    %c0_i32 = arith.constant 0 : i32
    %c0_i32_0 = arith.constant 0 : i32
    %c0_i32_1 = arith.constant 0 : i32
    return %c0_i32, %c0_i32_0 : i32, i32
  }
  func.func @transform_4(%arg0: i32) -> (i32, i32) {
    %c0_i32 = arith.constant 0 : i32
    %c0_i32_0 = arith.constant 0 : i32
    %c0_i32_1 = arith.constant 0 : i32
    return %c0_i32, %c0_i32_0 : i32, i32
  }
  func.func @transform_5(%arg0: i32) -> (i32, i32) {
    %c0_i32 = arith.constant 0 : i32
    %c0_i32_0 = arith.constant 0 : i32
    return %arg0, %c0_i32 : i32, i32
  }
}

</mosaic_0001>

<bundles_post_ra>
// kernel: tpu_custom_call.1
= control target key start
LH: loop header
LB: loop body
LE: loop exit
PB: predicated region body
PF: predicated region fallthrough
CT: control target
= control target key end

     0   :  { %s4480_s0 = inlined_call_operand.hbm [shape: f32[16,2,8,128], index: 0, kind: input, shape index: {}]   ;;  %s4481_s1 = inlined_call_operand.hbm [shape: f32[16,2,8,128], index: 1, kind: input, shape index: {}]   ;;  %s4482_s2 = inlined_call_operand.hbm [shape: f32[128,128], index: 2, kind: input, shape index: {}]   ;;  %s4483_s3 = inlined_call_operand.hbm [shape: f32[128,128], index: 3, kind: input, shape index: {}]   ;;  %s4484_s4 = inlined_call_operand.vmem [shape: f32[1,128], index: 4, kind: input, shape index: {}]   ;;  %s4485_s5 = inlined_call_operand.hbm [shape: f32[128,128], index: 5, kind: output, shape index: {}]  }
   0x1   :  { %4604 = sst [smem:[#allocation60_spill]] %s4480_s0 }
   0x2   :  { %4605 = sst [smem:[#allocation61_spill]] %s4482_s2 }
   0x3   :  { %4606 = sst [smem:[#allocation62_spill]] %s4483_s3 }
   0x4   :  { %10 = vsyncpa [#allocation3], 0 }
   0x5   :  { %12 = vsyncpa [#allocation3 + $0x1], 0 }
   0x6   :  { %13 = vsyncpa [#allocation6], 0 }
   0x7   :  { %15 = vsyncpa [#allocation6 + $0x1], 0 }
   0x8   :  { %16 = vsyncpa [#allocation9], 0 }
   0x9   :  { %17 = vsyncpa [#allocation4], 0 }
   0xa   :  { %19 = vsyncpa [#allocation4 + $0x1], 0  ;;  %s3302_s18 = smov 0   ;;  %s3304_s19 = smov 0  }
   0xb   :  { %s3306_s20 = smov 0   ;;  %s3308_s21 = smov 0  }
   0xc LB: > { %s3323_s22 = sadd.s32 4294967295, %s3260_s21   ;;  %s1912_s23 = sadd.s32 4294967294, %s3260_s21   ;;  %s3260_s21 = sphi %s3308_s21, %s4786_s21   ;;  %s3256_s20 = sphi %s3306_s20, %s4785_s20   ;;  %s3252_s19 = sphi %s3304_s19, %s4784_s19   ;;  %s3248_s18 = sphi %s3302_s18, %s4783_s18  }
   0xd   : > { %s3327_s24 = sadd.s32 1, %s3260_s21   ;;  %s32_s25 = sadd.s32 1, %s3256_s20 }
   0xe   : > { %s29_s26 = ssub.s32 %s3260_s21, %s3327_s24  ;;  %p39_p0 = scmp.ne.s32.totalorder %s3256_s20, %s3252_s19 }
   0xf   : > { %p30_p1 = scmp.eq.s32.totalorder %s29_s26, 0  ;;  %p40_p2 = scmp.eq.s32.totalorder %s3260_s21, 0 }
  0x10   : > { %p45_p3 = scmp.ne.s32.totalorder %s3252_s19, %s3248_s18  ;;  %p4486_p4 = scmp.eq.s32.totalorder %s3323_s22, 0 }
  0x11   : > { %s3339_s27 = scalar_select %p30_p1, %s3256_s20, %s32_s25  }
  0x12   : > { %p3341_p5 = por %p40_p2, %p39_p0  ;;  %p3347_p6 = por %p4486_p4, %p45_p3 }
  0x13   : > { %4607 = sst [smem:[#allocation16_spill]] %s3339_s27  ;;  %p158_p7 = scmp.eq.s32.totalorder %s3323_s22, 7 }
  0x14   : > { %s4608_s28 = scalar_select %p3341_p5, 1, 0 }
  0x15   : > { %s4609_s29 = scalar_select %p3347_p6, 1, 0 }
  0x16   : > { %p164_p8 = scmp.eq.s32.totalorder %s1912_s23, 7  ;;  %p1913_p9 = scmp.ge.s32.totalorder %s3260_s21, 1 }
  0x17   : > { %p171_p10 = scmp.lt.s32.totalorder %s3260_s21, 9  ;;  %p3354_p11 = por %p158_p7, %p39_p0 }
  0x18   : > { %p3358_p12 = por %p164_p8, %p45_p3  ;;  %s3262_s8 = smov [#allocation7]  }
  0x19   : > { %s4610_s30 = scalar_select %p3354_p11, 1, 0 }
  0x1a   : > { %s4611_s6 = scalar_select %p3358_p12, 1, 0 }
  0x1b   : > { %p3362_p13 = pnand %p1913_p9, %p171_p10  ;;  %s183_s9 = sshll.u32 %s3262_s8, 4  ;;  %s184_s9 = int_to_ptr.vmem [resolvable:$true] %s183_s9 }
  0x1c   : > { %s3263_s11 = smov [#allocation8]   ;;  %s4614_s2 = sld [smem:[#allocation61_spill]] }
  0x1d   : > { %s4612_s7 = scalar_select %p3362_p13, 1, 0 }
  0x1e   : > { %p2998_p1 = pneg %p3362_p13  ;;  %s196_s12 = sshll.u32 %s3263_s11, 4  ;;  %s197_s12 = int_to_ptr.vmem [resolvable:$true] %s196_s12 }
  0x20   : > { %p3370_p2 = pnand %p2998_p1, %p4486_p4 }
  0x22   : > { %s3065_s15 = scalar_lea.hbm %s4614_s2, 2048  ;;  %p3067_p7 = pneg %p3370_p2 }
  0x23   : > { %p3066_p3 = scmp.ne.s32.totalorder %s4614_s2, %s3065_s15  ;;  %p3072_p10 = scmp.lt.u32.totalorder %s3065_s15, %s4614_s2 }
  0x25   : > { %p3068_p8 = pnand %p3067_p7, %p3066_p3 }
  0x27   : > { %p3069_p9 = pneg %p3068_p8 }
  0x29   : > { %p3074_p1 = pnand %p3072_p10, %p3069_p9 }
  0x2b   : > { %3077 = shalt.err (!%p3074_p1)
}
  0x2c   : > { %s3078_s26 = scalar_lea.vmem %s184_s9, 2048  ;;  %p3086_p11 = scmp.lt.s32.totalorder %s184_s9, %s184_s9 }
  0x2d   : > { %p3079_p4 = scmp.ne.s32.totalorder %s184_s9, %s3078_s26  ;;  %p3087_p6 = scmp.lt.s32.totalorder %s3078_s26, %s3078_s26 }
  0x2f   : > { %p3081_p0 = pnand %p3079_p4, %p3067_p7  ;;  %p3088_p13 = por %p3087_p6, %p3086_p11 }
  0x31   : > { %p3082_p12 = pneg %p3081_p0 }
  0x33   : > { %p3089_p5 = pnand %p3088_p13, %p3082_p12 }
  0x35   : > { %3092 = shalt.err (!%p3089_p5)
}
  0x36   : > { %s4492_s8 = smov 128   ;;  %s3265_s11 = smov 8  }
  0x37   : > { %3001 = dma.hbm_to_vmem [thread:$0]  (!%p3370_p2), %s4614_s2, 2048, %s184_s9, [#allocation6], %s4492_s8, %s4492_s8, %s3265_s11  }
  0x38   : > { %p4615_p4 = scmp.ne.s32.totalorder %s4608_s28, 0  ;;  %p4616_p0 = scmp.lt.s32.totalorder %s3260_s21, 8 }
  0x39   : > { %s4618_s3 = sld [smem:[#allocation62_spill]] }
  0x3a   : > { %p3404_p3 = pnand %p4616_p0, %p4615_p4 }
  0x3c   : > { %s4617_s15 = scalar_select %p3404_p3, 1, 0 }
  0x3f   : > { %s3093_s23 = scalar_lea.hbm %s4618_s3, 2048 }
  0x40   : > { %p3094_p5 = scmp.ne.s32.totalorder %s4618_s3, %s3093_s23  ;;  %p3100_p12 = scmp.lt.u32.totalorder %s3093_s23, %s4618_s3 }
  0x42   : > { %p3096_p6 = pnand %p3094_p5, %p3067_p7 }
  0x44   : > { %p3097_p11 = pneg %p3096_p6 }
  0x46   : > { %p3102_p13 = pnand %p3100_p12, %p3097_p11 }
  0x48   : > { %3105 = shalt.err (!%p3102_p13)
}
  0x49   : > { %s3106_s13 = scalar_lea.vmem %s197_s12, 2048  ;;  %p3114_p1 = scmp.lt.s32.totalorder %s197_s12, %s197_s12 }
  0x4a   : > { %p3107_p8 = scmp.ne.s32.totalorder %s197_s12, %s3106_s13  ;;  %p3115_p4 = scmp.lt.s32.totalorder %s3106_s13, %s3106_s13 }
  0x4c   : > { %p3109_p9 = pnand %p3107_p8, %p3067_p7  ;;  %p3116_p0 = por %p3115_p4, %p3114_p1 }
  0x4e   : > { %p3110_p10 = pneg %p3109_p9 }
  0x50   : > { %p3117_p3 = pnand %p3116_p0, %p3110_p10 }
  0x52   : > { %3120 = shalt.err (!%p3117_p3)
}
  0x53   : > { %3004 = dma.hbm_to_vmem [thread:$0]  (!%p3370_p2), %s4618_s3, 2048, %s197_s12, [#allocation9], %s4492_s8, %s4492_s8, %s3265_s11  }
  0x54   : > { %s213_s17 = sand.u32 1, %s3256_s20   ;;  %s4491_s25 = sshll.u32 %s3260_s21, 9 }
  0x55   : > { %s3432_s23 = sshll.u32 %s213_s17, 4  ;;  %s4619_s0 = sld [smem:[#allocation60_spill]] }
  0x56   : > { %s217_s28 = scalar_lea.vmem [#allocation2], %s3432_s23  ;;  %s3445_s12 = scalar_lea.sflag [#allocation3], %s213_s17 }
  0x57   : > { %s225_s13 = sshll.u32 %s217_s28, 4  ;;  %p4620_p7 = scmp.ne.s32.totalorder %s4617_s15, 0  ;;  %s3443_s13 = int_to_ptr.vmem [resolvable:$true] %s225_s13 }
  0x59   : > { %p3123_p3 = pneg %p4620_p7 }
  0x5b   : > { %s3440_s9 = scalar_lea.hbm %s4619_s0, %s4491_s25  ;;  %s3126_s10 = scalar_lea.hbm %s4619_s0, 4096 }
  0x5c   : > { %s3121_s14 = scalar_lea.hbm %s3440_s9, 256  ;;  %p3127_p11 = scmp.lt.u32.totalorder %s3440_s9, %s4619_s0 }
  0x5d   : > { %p3122_p2 = scmp.ne.s32.totalorder %s3440_s9, %s3121_s14  ;;  %p3128_p12 = scmp.lt.u32.totalorder %s3126_s10, %s3121_s14 }
  0x5e   : > { %p3130_p8 = scmp.lt.u32.totalorder %s3121_s14, %s3440_s9 }
  0x5f   : > { %p3124_p5 = pnand %p3123_p3, %p3122_p2  ;;  %p3129_p13 = por %p3128_p12, %p3127_p11 }
  0x61   : > { %p3125_p6 = pneg %p3124_p5  ;;  %p3131_p9 = por %p3130_p8, %p3129_p13 }
  0x63   : > { %p3132_p10 = pnand %p3131_p9, %p3125_p6 }
  0x65   : > { %3135 = shalt.err (!%p3132_p10)
}
  0x66   : > { %s3136_s17 = scalar_lea.vmem %s3443_s13, 256  ;;  %s3266_s28 = smov [#allocation2]  }
  0x67   : > { %p3137_p1 = scmp.ne.s32.totalorder %s3443_s13, %s3136_s17  ;;  %s3141_s16 = sshll.u32 %s3266_s28, 4  ;;  %s3142_s16 = int_to_ptr.vmem [resolvable:$false] %s3141_s16 }
  0x68   : > { %s3143_s8 = scalar_lea.vmem %s3142_s16, 512  ;;  %p3144_p2 = scmp.lt.s32.totalorder %s3443_s13, %s3142_s16 }
  0x69   : > { %p3139_p4 = pnand %p3137_p1, %p3123_p3  ;;  %p3145_p5 = scmp.lt.s32.totalorder %s3143_s8, %s3136_s17 }
  0x6b   : > { %p3140_p0 = pneg %p3139_p4  ;;  %p3146_p11 = por %p3145_p5, %p3144_p2 }
  0x6d   : > { %p3147_p12 = pnand %p3146_p11, %p3140_p0 }
  0x6f   : > { %3150 = shalt.err (!%p3147_p12)
}
  0x70   : > { %s3267_s25 = smov 256   ;;  %s4621_s14 = smov 128  }
  0x71   : > { %3008 = dma.hbm_to_vmem [thread:$0]  (!%p4620_p7), %s3440_s9, 256, %s3443_s13, %s3445_s12, %s3267_s25, %s4621_s14, %s3265_s11  }
  0x72   : > { %s4622_s26 = sshll.u32 %s3260_s21, 9  ;;  %s239_s8 = scalar_lea.vmem [#allocation5], %s3432_s23 }
  0x73   : > { %s1836_s28 = scalar_lea.hbm %s4481_s1, %s4622_s26  ;;  %s248_s0 = sshll.u32 %s239_s8, 4  ;;  %s3484_s0 = int_to_ptr.vmem [resolvable:$true] %s248_s0 }
  0x74   : > { %s3481_s16 = scalar_lea.hbm %s1836_s28, 128  ;;  %s235_s2 = sand.u32 1, %s3260_s21  }
  0x75   : > { %s3487_s3 = scalar_lea.sflag [#allocation6], %s235_s2  ;;  %s3181_s27 = scalar_lea.hbm %s1836_s28, 384 }
  0x76   : > { %p3152_p6 = scmp.ne.s32.totalorder %s3481_s16, %s3181_s27  ;;  %s3156_s12 = scalar_lea.hbm %s4481_s1, 4096 }
  0x77   : > { %p3157_p9 = scmp.lt.u32.totalorder %s3481_s16, %s4481_s1  ;;  %p3158_p10 = scmp.lt.u32.totalorder %s3156_s12, %s3181_s27 }
  0x78   : > { %p3154_p13 = pnand %p3152_p6, %p3123_p3  ;;  %p3160_p4 = scmp.lt.u32.totalorder %s3181_s27, %s3481_s16 }
  0x79   : > { %p3159_p1 = por %p3158_p10, %p3157_p9 }
  0x7a   : > { %p3155_p8 = pneg %p3154_p13 }
  0x7b   : > { %p3161_p0 = por %p3160_p4, %p3159_p1 }
  0x7d   : > { %p3162_p2 = pnand %p3161_p0, %p3155_p8 }
  0x7f   : > { %3165 = shalt.err (!%p3162_p2)
}
  0x80   : > { %s3166_s2 = scalar_lea.vmem %s3484_s0, 256  ;;  %s3268_s23 = smov [#allocation5]  }
  0x81   : > { %p3167_p5 = scmp.ne.s32.totalorder %s3484_s0, %s3166_s2  ;;  %s3171_s17 = sshll.u32 %s3268_s23, 4  ;;  %s3172_s17 = int_to_ptr.vmem [resolvable:$false] %s3171_s17 }
  0x82   : > { %s3173_s28 = scalar_lea.vmem %s3172_s17, 512  ;;  %p3174_p6 = scmp.lt.s32.totalorder %s3484_s0, %s3172_s17 }
  0x83   : > { %p3169_p11 = pnand %p3167_p5, %p3123_p3  ;;  %p3175_p13 = scmp.lt.s32.totalorder %s3173_s28, %s3166_s2 }
  0x85   : > { %p3170_p12 = pneg %p3169_p11  ;;  %p3176_p9 = por %p3175_p13, %p3174_p6 }
  0x87   : > { %p3177_p10 = pnand %p3176_p9, %p3170_p12 }
  0x89   : > { %3180 = shalt.err (!%p3177_p10)
}
  0x8a   : > { %3011 = dma.hbm_to_vmem [thread:$0]  (!%p4620_p7), %s3481_s16, 256, %s3484_s0, %s3487_s3, %s3267_s25, %s4621_s14, %s3265_s11  }
  0x8b   : > { %p4623_p3 = scmp.ne.s32.totalorder %s4612_s7, 0 }
  0x8d   : > { %260 = sbr.rel (%p4623_p3) target bundleno = 742 (0x2e6), region = 40 }
  0x94   : > { %s3518_s27 = sand.u32 1, %s3252_s19   ;;  %p4624_p8 = scmp.ne.s32.totalorder %s4609_s29, 0 }
  0x95   : > { %s3521_s8 = sshll.u32 %s3518_s27, 4  ;;  %s263_s15 = scalar_lea.sflag [#allocation3], %s3518_s27 }
  0x96   : > { %s266_s9 = scalar_lea.vmem [#allocation2], %s3521_s8 }
  0x97   : > { %3227 = dma.done.wait (%p4624_p8), %s263_s15, 256  }
  0x98   : > { %3229 = vsyncadd (%p4624_p8), %s263_s15, 4294967040  ;;  %s271_s0 = sand.u32 1, %s3323_s22   ;;  %s275_s7 = scalar_lea.vmem [#allocation5], %s3521_s8 }
  0x99   : > { %s272_s3 = scalar_lea.sflag [#allocation6], %s271_s0 }
  0x9a   : > { %3231 = dma.done.wait (%p4624_p8), %s272_s3, 256  }
  0x9b   : > { %3233 = vsyncadd (%p4624_p8), %s272_s3, 4294967040  ;;  %p4625_p7 = scmp.eq.s32.totalorder %s3323_s22, 0 }
  0x9d   : > { %3235 = dma.done.wait (%p4625_p7), [#allocation6], 2048   ;;  %p4626_p1 = pmov %p4625_p7 }
  0x9f   : > { %3237 = vsyncadd (%p4626_p1), [#allocation6], 4294965248  ;;  %p4627_p4 = pmov %p4626_p1 }
  0xa0   : > { %p4628_p0 = pmov %p4626_p1 }
  0xa1   : > { %3239 = dma.done.wait (%p4627_p4), [#allocation9], 2048  }
  0xa2   : > { %3241 = vsyncadd (%p4628_p0), [#allocation9], 4294965248  ;;  %v3543_v0 = vld [vmem:[%s266_s9 + $0x8] sm:$0xff]  ;;  %v3545_v1 = vld [vmem:[%s266_s9] sm:$0xff]  ;;  %s314_s25 = scalar_lea.vmem [#allocation10], %s3521_s8  ;;  %s1939_s16 = sshll.u32 %s3323_s22, 8 }
  0xa3   : > { %324 = vadd.xlane.f32.xlu1 %v3543_v0  ;;  %322 = vadd.xlane.f32.xlu0 %v3545_v1  ;;  %v3549_v2 = vld [vmem:[%s275_s7 + $0x8] sm:$0xff]  ;;  %v3551_v3 = vld [vmem:[%s275_s7] sm:$0xff]  ;;  %v334_v5 = vmul.f32 %v3545_v1, %v3545_v1  ;;  %v335_v7 = vmul.f32 %v3543_v0, %v3543_v0  ;;  %s1795_s14 = sshll.u32 %s314_s25, 4  ;;  %s4437_s26 = scalar_lea.hbm %s4485_s5, %s1939_s16  ;;  %s4432_s14 = int_to_ptr.vmem [resolvable:$true] %s1795_s14 }
  0xa4   : > { %v340_v4 = vmul.f32 %v3551_v3, %v3551_v3  ;;  %v341_v6 = vmul.f32 %v3549_v2, %v3549_v2  ;;  %v3563_v8 = vld [vmem:[#allocation7] sm:$0xff]  ;;  %v3565_v9 = vld [vmem:[#allocation7 + $0x8] sm:$0xff]  ;;  %v3587_v18 = vld [vmem:[#allocation7 + $0x10] sm:$0xff]  ;;  %s1782_s10 = scalar_lea.sflag [#allocation4], %s3518_s27  ;;  %s3182_s2 = scalar_lea.vmem %s4432_s14, 256 }
  0xa5   : > { %v3567_v10 = vld [vmem:[#allocation8] sm:$0xff]  ;;  %v386_v11 = vand.u32 4294901760, %v3563_v8  ;;  %v389_v12 = vand.u32 4294901760, %v3565_v9  ;;  %v3571_v13 = vld [vmem:[#allocation8 + $0x8] sm:$0xff]  ;;  %v3589_v19 = vld [vmem:[#allocation7 + $0x18] sm:$0xff]  ;;  %v392_v21 = vand.u32 4294901760, %v3587_v18  ;;  %p3183_p2 = scmp.ne.s32.totalorder %s4432_s14, %s3182_s2 }
  0xa6   : > { %v1094_v14 = vand.u32 4294901760, %v3567_v10  ;;  %v1097_v15 = vand.u32 4294901760, %v3571_v13  ;;  %v3591_v20 = vld [vmem:[#allocation8 + $0x10] sm:$0xff]  ;;  %v395_v22 = vand.u32 4294901760, %v3589_v19  ;;  %v3596_v23 = vld [vmem:[#allocation8 + $0x18] sm:$0xff]  ;;  %v3615_v28 = vld [vmem:[#allocation7 + $0x20] sm:$0xff] }
  0xa7   : > { %328 = vadd.xlane.f32.xlu1 %v3549_v2  ;;  %326 = vadd.xlane.f32.xlu0 %v3551_v3  ;;  %v3579_v16 = vpack.c.bf16 %v389_v12, %v386_v11  ;;  %v4511_v24 = vand.u32 4294901760, %v3591_v20  ;;  %v4510_v25 = vand.u32 4294901760, %v3596_v23  ;;  %v3617_v29 = vld [vmem:[#allocation7 + $0x28] sm:$0xff]  ;;  %v3619_v30 = vld [vmem:[#allocation8 + $0x20] sm:$0xff]  ;;  %v4507_v31 = vand.u32 4294901760, %v3615_v28  ;;  %v3643_v38 = vld [vmem:[#allocation7 + $0x30] sm:$0xff] }
  0xa8   : > { %v3585_v17 = vpack.c.bf16 %v1097_v15, %v1094_v14  ;;  %v3607_v26 = vpack.c.bf16 %v395_v22, %v392_v21  ;;  %v4506_v32 = vand.u32 4294901760, %v3617_v29  ;;  %v3624_v33 = vld [vmem:[#allocation8 + $0x28] sm:$0xff]  ;;  %v4505_v34 = vand.u32 4294901760, %v3619_v30  ;;  %v3645_v39 = vld [vmem:[#allocation7 + $0x38] sm:$0xff]  ;;  %v3647_v40 = vld [vmem:[#allocation8 + $0x30] sm:$0xff]  ;;  %p4780_p5 = scmp.ne.s32.totalorder %s4610_s30, 0 }
  0xa9   : > { %4629 = vst [vmem:[#allocation17_spill] sm:$0xff] %v3579_v16  ;;  %2577 = vmatprep.subr.bf16.mxu1 %v3579_v16  ;;  %v3613_v27 = vpack.c.bf16 %v4510_v25, %v4511_v24  ;;  %v4500_v35 = vand.u32 4294901760, %v3624_v33  ;;  %v4499_v41 = vand.u32 4294901760, %v3643_v38  ;;  %v4498_v42 = vand.u32 4294901760, %v3645_v39  ;;  %v3652_v43 = vld [vmem:[#allocation8 + $0x38] sm:$0xff]  ;;  %v3658_v46 = vld [vmem:[#allocation7 + $0x40] sm:$0xff] }
  0xaa   : > { %4630 = vst [vmem:[#allocation18_spill] sm:$0xff] %v3585_v17  ;;  %2769 = vmatprep.subr.bf16.mxu0 %v3585_v17  ;;  %2579 = vmatpush3.bf16.msra.mxu1 %v3579_v16  ;;  %4631 = vst [vmem:[#allocation19_spill] sm:$0xff] %v3607_v26  ;;  %v3635_v36 = vpack.c.bf16 %v4506_v32, %v4507_v31  ;;  %v4497_v44 = vand.u32 4294901760, %v3647_v40  ;;  %v4494_v45 = vand.u32 4294901760, %v3652_v43  ;;  %v3660_v47 = vld [vmem:[#allocation7 + $0x48] sm:$0xff]  ;;  %v3662_v48 = vld [vmem:[#allocation8 + $0x40] sm:$0xff]  ;;  %p3184_p11 = pnand %p3183_p2, %p4780_p5 }
  0xab   : > { %342 = vadd.xlane.f32.xlu1 %v340_v4  ;;  %336 = vadd.xlane.f32.xlu0 %v334_v5  ;;  %4632 = vst [vmem:[#allocation20_spill] sm:$0xff] %v3613_v27  ;;  %v3641_v37 = vpack.c.bf16 %v4500_v35, %v4505_v34  ;;  %v3669_v49 = vpack.c.bf16 %v4498_v42, %v4499_v41  ;;  %v4496_v50 = vand.u32 4294901760, %v3658_v46  ;;  %v4495_v51 = vand.u32 4294901760, %v3660_v47  ;;  %v3673_v52 = vld [vmem:[#allocation8 + $0x48] sm:$0xff]  ;;  %v3676_v54 = vld [vmem:[#allocation7 + $0x50] sm:$0xff]  ;;  %v3678_v55 = vld [vmem:[#allocation7 + $0x58] sm:$0xff] }
  0xac   : > { %2771 = vmatpush3.bf16.msra.mxu0 %v3585_v17  ;;  %2581 = vmatprep.subr.bf16.mxu1 %v3607_v26  ;;  %4633 = vst [vmem:[#allocation21_spill] sm:$0xff] %v3635_v36  ;;  %v4502_v53 = vand.u32 4294901760, %v3662_v48  ;;  %v3684_v56 = vpack.c.bf16 %v4494_v45, %v4497_v44  ;;  %v4501_v57 = vand.u32 4294901760, %v3673_v52  ;;  %v4504_v58 = vand.u32 4294901760, %v3676_v54  ;;  %v3689_v60 = vld [vmem:[#allocation8 + $0x50] sm:$0xff]  ;;  %v3691_v61 = vld [vmem:[#allocation8 + $0x58] sm:$0xff]  ;;  %p3185_p12 = pneg %p3184_p11 }
  0xad   : > { %2773 = vmatprep.subr.bf16.mxu0 %v3613_v27  ;;  %4634 = vst [vmem:[#allocation22_spill] sm:$0xff] %v3641_v37  ;;  %4635 = vst [vmem:[#allocation23_spill] sm:$0xff] %v3669_v49  ;;  %v4503_v59 = vand.u32 4294901760, %v3678_v55  ;;  %v3693_v62 = vld [vmem:[#allocation7 + $0x60] sm:$0xff]  ;;  %v3700_v63 = vpack.c.bf16 %v4495_v51, %v4496_v50  ;;  %v4509_v4 = vand.u32 4294901760, %v3689_v60  ;;  %v4508_v5 = vand.u32 4294901760, %v3691_v61 }
  0xae   : > { %2583 = vmatpush3.bf16.msra.mxu1 %v3607_v26  ;;  %4636 = vst [vmem:[#allocation24_spill] sm:$0xff] %v3684_v56  ;;  %v3708_v45 = vld [vmem:[#allocation8 + $0x68] sm:$0xff]  ;;  %v3716_v51 = vpack.c.bf16 %v4501_v57, %v4502_v53  ;;  %v4515_v44 = vand.u32 4294901760, %v3693_v62  ;;  %v3728_v41 = vld [vmem:[#allocation7 + $0x70] sm:$0xff]  ;;  %v3730_v35 = vld [vmem:[#allocation7 + $0x78] sm:$0xff]  ;;  %s3269_s22 = smov [#allocation10]  }
  0xaf   : > { %344 = vadd.xlane.f32.xlu1 %v341_v6  ;;  %338 = vadd.xlane.f32.xlu0 %v335_v7  ;;  %4637 = vst [vmem:[#allocation25_spill] sm:$0xff] %v3700_v63  ;;  %v3704_v6 = vld [vmem:[#allocation7 + $0x68] sm:$0xff]  ;;  %v3706_v7 = vld [vmem:[#allocation8 + $0x60] sm:$0xff]  ;;  %v3724_v50 = vpack.c.bf16 %v4503_v59, %v4504_v58  ;;  %v3737_v57 = vpack.c.bf16 %v4508_v5, %v4509_v4  ;;  %v4513_v59 = vand.u32 4294901760, %v3708_v45  ;;  %v3741_v58 = vld [vmem:[#allocation8 + $0x70] sm:$0xff]  ;;  %v4522_v32 = vand.u32 4294901760, %v3728_v41 }
  0xb0   : > { %2775 = vmatpush3.bf16.msra.mxu0 %v3613_v27  ;;  %2585 = vmatprep.subr.bf16.mxu1 %v3635_v36  ;;  %4638 = vst [vmem:[#allocation26_spill] sm:$0xff] %v3716_v51  ;;  %v4512_v42 = vand.u32 4294901760, %v3704_v6  ;;  %v4514_v53 = vand.u32 4294901760, %v3706_v7  ;;  %v3743_v34 = vld [vmem:[#allocation8 + $0x78] sm:$0xff]  ;;  %v4516_v31 = vand.u32 4294901760, %v3730_v35  ;;  %v4518_v25 = vand.u32 4294901760, %v3741_v58 }
  0xb1   : > { %2777 = vmatprep.subr.bf16.mxu0 %v3641_v37  ;;  %4639 = vst [vmem:[#allocation27_spill] sm:$0xff] %v3724_v50  ;;  %4640 = vst [vmem:[#allocation28_spill] sm:$0xff] %v3737_v57  ;;  %v4517_v24 = vand.u32 4294901760, %v3743_v34  ;;  %v4695_v27 = vand.u32 4294901760, %v3708_v45  ;;  %s3186_s23 = sshll.u32 %s3269_s22, 4  ;;  %s3187_s23 = int_to_ptr.vmem [resolvable:$false] %s3186_s23 }
  0xb2   : > { %2587 = vmatpush3.bf16.msra.mxu1 %v3635_v36  ;;  %v3754_v5 = vpack.c.bf16 %v4512_v42, %v4515_v44  ;;  %v3761_v4 = vpack.c.bf16 %v4513_v59, %v4514_v53  ;;  %v3770_v42 = vpack.c.bf16 %v4516_v31, %v4522_v32  ;;  %v3777_v59 = vsub.f32 %v3563_v8, %v386_v11  ;;  %s3188_s17 = scalar_lea.vmem %s3187_s23, 512  ;;  %p3189_p6 = scmp.lt.s32.totalorder %s4432_s14, %s3187_s23 }
  0xb3   : > { %2589 = vmatprep.subr.bf16.mxu1 %v3669_v49  ;;  %v3782_v53 = vsub.f32 %v3565_v9, %v389_v12  ;;  %v3787_v44 = vsub.f32 %v3567_v10, %v1094_v14  ;;  %v3794_v31 = vpack.c.bf16 %v4517_v24, %v4518_v25  ;;  %v3799_v8 = vsub.f32 %v3571_v13, %v1097_v15  ;;  %p3190_p13 = scmp.lt.s32.totalorder %s3188_s17, %s3182_s2 }
  0xb4   : > { %2779 = vmatpush3.bf16.msra.mxu0 %v3641_v37  ;;  %4641 = vst [vmem:[#allocation29_spill] sm:$0xff] %v3754_v5  ;;  %4642 = vst [vmem:[#allocation30_spill] sm:$0xff] %v3761_v4  ;;  %v4519_v9 = vand.u32 4294901760, %v3777_v59  ;;  %v3824_v25 = vsub.f32 %v3587_v18, %v392_v21 }
  0xb5   : > { %2781 = vmatprep.subr.bf16.mxu0 %v3684_v56  ;;  %4643 = vst [vmem:[#allocation31_spill] sm:$0xff] %v3770_v42  ;;  %4644 = vst [vmem:[#allocation32_spill] sm:$0xff] %v3794_v31  ;;  %v4520_v11 = vand.u32 4294901760, %v3782_v53  ;;  %v4521_v10 = vand.u32 4294901760, %v3787_v44  ;;  %v4527_v12 = vand.u32 4294901760, %v3799_v8  ;;  %v4109_v16 = vpack.c.bf16 %v3782_v53, %v3777_v59  ;;  %p3191_p9 = por %p3190_p13, %p3189_p6 }
  0xb6   : > { %2591 = vmatpush3.bf16.msra.mxu1 %v3669_v49  ;;  %v490_v14 = vsub.f32 %v3777_v59, %v4519_v9  ;;  %v3829_v9 = vsub.f32 %v3589_v19, %v395_v22  ;;  %v4532_v21 = vand.u32 4294901760, %v3824_v25 }
  0xb7   : > { %2593 = vmatprep.subr.bf16.mxu1 %v3700_v63  ;;  %v497_v13 = vsub.f32 %v3782_v53, %v4520_v11  ;;  %v1198_v15 = vsub.f32 %v3787_v44, %v4521_v10  ;;  %v1205_v24 = vsub.f32 %v3799_v8, %v4527_v12  ;;  %v4646_v11 = vand.u32 4294901760, %v3591_v20  ;;  %p3192_p10 = pnand %p3191_p9, %p3185_p12 }
  0xb8   : > { %2783 = vmatpush3.bf16.msra.mxu0 %v3684_v56  ;;  %4645 = vst [vmem:[#allocation33_spill] sm:$0xff] %v3829_v9  ;;  %v491_v32 = vand.u32 4294901760, %v490_v14  ;;  %v4648_v12 = vand.u32 4294901760, %v3596_v23  ;;  %v4530_v19 = vand.u32 4294901760, %v3829_v9  ;;  %v4650_v14 = vand.u32 4294901760, %v3615_v28 }
  0xb9   : > { %2785 = vmatprep.subr.bf16.mxu0 %v3716_v51  ;;  %v3834_v10 = vsub.f32 %v3591_v20, %v4646_v11  ;;  %v1206_v18 = vand.u32 4294901760, %v1205_v24 }
  0xba   : > { %2595 = vmatpush3.bf16.msra.mxu1 %v3700_v63 }
  0xbb   : > { %2597 = vmatprep.subr.bf16.mxu1 %v3724_v50  ;;  %4647 = vst [vmem:[#allocation34_spill] sm:$0xff] %v3834_v10  ;;  %v4531_v22 = vand.u32 4294901760, %v3834_v10 }
  0xbc   : > { %2787 = vmatpush3.bf16.msra.mxu0 %v3716_v51  ;;  %v4663_v51 = vand.u32 4294901760, %v3647_v40 }
  0xbd   : > { %2789 = vmatprep.subr.bf16.mxu0 %v3737_v57 }
  0xbe   : > { %2599 = vmatpush3.bf16.msra.mxu1 %v3724_v50 }
  0xbf   : > { %2601 = vmatprep.subr.bf16.mxu1 %v3754_v5 }
  0xc0   : > { %2791 = vmatpush3.bf16.msra.mxu0 %v3737_v57  ;;  %v3839_v57 = vsub.f32 %v3596_v23, %v4648_v12  ;;  %v3852_v23 = vsub.f32 %v3615_v28, %v4650_v14  ;;  %v4652_v12 = vand.u32 4294901760, %v3617_v29  ;;  %v1212_v28 = vsub.f32 %v3834_v10, %v4531_v22 }
  0xc1   : > { %2793 = vmatprep.subr.bf16.mxu0 %v3761_v4 }
  0xc2   : > { %2603 = vmatpush3.bf16.msra.mxu1 %v3754_v5  ;;  %v1199_v5 = vand.u32 4294901760, %v1198_v15  ;;  %4649 = vst [vmem:[#allocation35_spill] sm:$0xff] %v3839_v57  ;;  %v4535_v11 = vand.u32 4294901760, %v3839_v57  ;;  %4651 = vst [vmem:[#allocation36_spill] sm:$0xff] %v3852_v23  ;;  %v3857_v24 = vsub.f32 %v3617_v29, %v4652_v12  ;;  %v504_v15 = vsub.f32 %v3824_v25, %v4532_v21 }
  0xc3   : > { %2605 = vmatprep.subr.bf16.mxu1 %v3770_v42  ;;  %v1213_v22 = vand.u32 4294901760, %v1212_v28  ;;  %v4656_v21 = vand.u32 4294901760, %v3624_v33 }
  0xc4   : > { %2795 = vmatpush3.bf16.msra.mxu0 %v3761_v4  ;;  %v498_v4 = vand.u32 4294901760, %v497_v13  ;;  %4653 = vst [vmem:[#allocation37_spill] sm:$0xff] %v3857_v24  ;;  %v3859_v13 = vpack.c.bf16 %v1206_v18, %v1199_v5  ;;  %v1219_v29 = vsub.f32 %v3839_v57, %v4535_v11  ;;  %v4654_v18 = vand.u32 4294901760, %v3619_v30 }
  0xc5   : > { %2797 = vmatprep.subr.bf16.mxu0 %v3794_v31  ;;  %v505_v12 = vand.u32 4294901760, %v504_v15 }
  0xc6   : > { %2607 = vmatpush3.bf16.msra.mxu1 %v3770_v42  ;;  %v3846_v20 = vpack.c.bf16 %v498_v4, %v491_v32  ;;  %v511_v32 = vsub.f32 %v3829_v9, %v4530_v19  ;;  %v4540_v4 = vand.u32 4294901760, %v3852_v23  ;;  %v3879_v14 = vsub.f32 %v3619_v30, %v4654_v18 }
  0xc7   : > { %v1220_v11 = vand.u32 4294901760, %v1219_v29  ;;  %v4658_v42 = vand.u32 4294901760, %v3857_v24 }
  0xc8   : > { %2799 = vmatpush3.bf16.msra.mxu0 %v3794_v31  ;;  %2609 = vmatprep.subr.bf16.mxu1 %v3846_v20  ;;  %4655 = vst [vmem:[#allocation38_spill] sm:$0xff] %v3879_v14  ;;  %v512_v19 = vand.u32 4294901760, %v511_v32  ;;  %v3885_v31 = vsub.f32 %v3624_v33, %v4656_v21  ;;  %v518_v5 = vsub.f32 %v3852_v23, %v4540_v4  ;;  %v4544_v18 = vand.u32 4294901760, %v3879_v14 }
  0xc9   : > { %2801 = vmatprep.subr.bf16.mxu0 %v3859_v13  ;;  %v525_v30 = vsub.f32 %v3857_v24, %v4658_v42  ;;  %v4659_v32 = vand.u32 4294901760, %v3643_v38  ;;  %v4661_v21 = vand.u32 4294901760, %v3645_v39  ;;  %v3907_v29 = vpack.c.bf16 %v1220_v11, %v1213_v22 }
  0xca   : > { %4657 = vst [vmem:[#allocation39_spill] sm:$0xff] %v3885_v31  ;;  %v3894_v50 = vpack.c.bf16 %v512_v19, %v505_v12  ;;  %v4543_v15 = vand.u32 4294901760, %v3885_v31  ;;  %v519_v4 = vand.u32 4294901760, %v518_v5  ;;  %v1226_v19 = vsub.f32 %v3879_v14, %v4544_v18 }
  0xcb   : > { %v3900_v33 = vsub.f32 %v3643_v38, %v4659_v32  ;;  %v3905_v28 = vsub.f32 %v3645_v39, %v4661_v21  ;;  %v526_v42 = vand.u32 4294901760, %v525_v30  ;;  %v3920_v39 = vsub.f32 %v3647_v40, %v4663_v51 }
  0xcc   : > { %v1233_v12 = vsub.f32 %v3885_v31, %v4543_v15  ;;  %v1227_v11 = vand.u32 4294901760, %v1226_v19  ;;  %v4665_v5 = vand.u32 4294901760, %v3652_v43  ;;  %v4667_v21 = vand.u32 4294901760, %v3658_v46 }
  0xcd   : > { %4660 = vst [vmem:[#allocation40_spill] sm:$0xff] %v3900_v33  ;;  %4662 = vst [vmem:[#allocation41_spill] sm:$0xff] %v3905_v28  ;;  %v4545_v38 = vand.u32 4294901760, %v3900_v33  ;;  %v3922_v22 = vpack.c.bf16 %v526_v42, %v519_v4  ;;  %v4669_v40 = vand.u32 4294901760, %v3905_v28  ;;  %v4550_v4 = vand.u32 4294901760, %v3920_v39 }
  0xce   : > { %4664 = vst [vmem:[#allocation42_spill] sm:$0xff] %v3920_v39  ;;  %v3927_v30 = vsub.f32 %v3652_v43, %v4665_v5  ;;  %v3932_v15 = vsub.f32 %v3658_v46, %v4667_v21  ;;  %v1234_v18 = vand.u32 4294901760, %v1233_v12  ;;  %v4670_v19 = vand.u32 4294901760, %v3660_v47 }
  0xcf   : > { %v532_v32 = vsub.f32 %v3900_v33, %v4545_v38  ;;  %v539_v51 = vsub.f32 %v3905_v28, %v4669_v40  ;;  %v4672_v12 = vand.u32 4294901760, %v3662_v48  ;;  %v1240_v42 = vsub.f32 %v3920_v39, %v4550_v4 }
  0xd0   : > { %4666 = vst [vmem:[#allocation43_spill] sm:$0xff] %v3927_v30  ;;  %4668 = vst [vmem:[#allocation44_spill] sm:$0xff] %v3932_v15  ;;  %v3946_v46 = vsub.f32 %v3660_v47, %v4670_v19  ;;  %v3953_v21 = vpack.c.bf16 %v1234_v18, %v1227_v11  ;;  %v4674_v43 = vand.u32 4294901760, %v3927_v30  ;;  %v4675_v47 = vand.u32 4294901760, %v3932_v15 }
  0xd1   : > { %v3951_v5 = vsub.f32 %v3662_v48, %v4672_v12  ;;  %v533_v38 = vand.u32 4294901760, %v532_v32  ;;  %v540_v40 = vand.u32 4294901760, %v539_v51  ;;  %v1241_v32 = vand.u32 4294901760, %v1240_v42 }
  0xd2   : > { %4671 = vst [vmem:[#allocation45_spill] sm:$0xff] %v3946_v46  ;;  %v1247_v63 = vsub.f32 %v3927_v30, %v4674_v43  ;;  %v546_v19 = vsub.f32 %v3932_v15, %v4675_v47  ;;  %v4553_v56 = vand.u32 4294901760, %v3946_v46  ;;  %v4676_v11 = vand.u32 4294901760, %v3673_v52 }
  0xd3   : > { %4673 = vst [vmem:[#allocation46_spill] sm:$0xff] %v3951_v5  ;;  %v4554_v48 = vand.u32 4294901760, %v3951_v5  ;;  %v3966_v18 = vpack.c.bf16 %v540_v40, %v533_v38  ;;  %v4678_v12 = vand.u32 4294901760, %v3676_v54  ;;  %v4680_v40 = vand.u32 4294901760, %v3678_v55 }
  0xd4   : > { %v3971_v51 = vsub.f32 %v3673_v52, %v4676_v11  ;;  %v1248_v4 = vand.u32 4294901760, %v1247_v63  ;;  %v547_v49 = vand.u32 4294901760, %v546_v19  ;;  %v553_v47 = vsub.f32 %v3946_v46, %v4553_v56 }
  0xd5   : > { %v3976_v43 = vsub.f32 %v3676_v54, %v4678_v12  ;;  %v1254_v38 = vsub.f32 %v3951_v5, %v4554_v48  ;;  %v3989_v11 = vsub.f32 %v3678_v55, %v4680_v40  ;;  %v4682_v54 = vand.u32 4294901760, %v3689_v60 }
  0xd6   : > { %4677 = vst [vmem:[#allocation47_spill] sm:$0xff] %v3971_v51  ;;  %v3996_v19 = vpack.c.bf16 %v1248_v4, %v1241_v32  ;;  %v554_v12 = vand.u32 4294901760, %v553_v47  ;;  %v4684_v48 = vand.u32 4294901760, %v3691_v61  ;;  %v4686_v52 = vand.u32 4294901760, %v3971_v51 }
  0xd7   : > { %4679 = vst [vmem:[#allocation48_spill] sm:$0xff] %v3976_v43  ;;  %4681 = vst [vmem:[#allocation49_spill] sm:$0xff] %v3989_v11  ;;  %v3994_v63 = vsub.f32 %v3689_v60, %v4682_v54  ;;  %v1255_v56 = vand.u32 4294901760, %v1254_v38  ;;  %v4687_v55 = vand.u32 4294901760, %v3976_v43  ;;  %v4559_v60 = vand.u32 4294901760, %v3989_v11 }
  0xd8   : > { %v4001_v42 = vsub.f32 %v3691_v61, %v4684_v48  ;;  %v1261_v37 = vsub.f32 %v3971_v51, %v4686_v52  ;;  %v4011_v32 = vpack.c.bf16 %v554_v12, %v547_v49  ;;  %v4688_v38 = vand.u32 4294901760, %v3693_v62 }
  0xd9   : > { %4683 = vst [vmem:[#allocation50_spill] sm:$0xff] %v3994_v63  ;;  %v560_v40 = vsub.f32 %v3976_v43, %v4687_v55  ;;  %v4690_v48 = vand.u32 4294901760, %v3704_v6  ;;  %v567_v4 = vsub.f32 %v3989_v11, %v4559_v60  ;;  %v4692_v49 = vand.u32 4294901760, %v3994_v63 }
  0xda   : > { %4685 = vst [vmem:[#allocation51_spill] sm:$0xff] %v4001_v42  ;;  %v4564_v47 = vand.u32 4294901760, %v4001_v42  ;;  %v4017_v61 = vsub.f32 %v3693_v62, %v4688_v38  ;;  %v1262_v54 = vand.u32 4294901760, %v1261_v37 }
  0xdb   : > { %v4022_v52 = vsub.f32 %v3704_v6, %v4690_v48  ;;  %v561_v55 = vand.u32 4294901760, %v560_v40  ;;  %v1268_v12 = vsub.f32 %v3994_v63, %v4692_v49  ;;  %v4693_v6 = vand.u32 4294901760, %v3706_v7 }
  0xdc   : > { %4689 = vst [vmem:[#allocation52_spill] sm:$0xff] %v4017_v61  ;;  %v1275_v62 = vsub.f32 %v4001_v42, %v4564_v47  ;;  %v4568_v38 = vand.u32 4294901760, %v4017_v61  ;;  %v4040_v40 = vpack.c.bf16 %v1262_v54, %v1255_v56  ;;  %v568_v48 = vand.u32 4294901760, %v567_v4 }
  0xdd   : > { %4691 = vst [vmem:[#allocation53_spill] sm:$0xff] %v4022_v52  ;;  %v4567_v36 = vand.u32 4294901760, %v4022_v52  ;;  %v4038_v37 = vsub.f32 %v3706_v7, %v4693_v6  ;;  %v1269_v60 = vand.u32 4294901760, %v1268_v12  ;;  %v4045_v49 = vsub.f32 %v3708_v45, %v4695_v27 }
  0xde   : > { %v1276_v26 = vand.u32 4294901760, %v1275_v62  ;;  %v574_v47 = vsub.f32 %v4017_v61, %v4568_v38  ;;  %v4054_v56 = vpack.c.bf16 %v568_v48, %v561_v55  ;;  %v4697_v54 = vand.u32 4294901760, %v3728_v41 }
  0xdf   : > { %4694 = vst [vmem:[#allocation54_spill] sm:$0xff] %v4038_v37  ;;  %4696 = vst [vmem:[#allocation55_spill] sm:$0xff] %v4045_v49  ;;  %v581_v17 = vsub.f32 %v4022_v52, %v4567_v36  ;;  %v4570_v7 = vand.u32 4294901760, %v4038_v37  ;;  %v4569_v4 = vand.u32 4294901760, %v4045_v49  ;;  %v4699_v45 = vand.u32 4294901760, %v3730_v35 }
  0xe0   : > { %v4060_v27 = vsub.f32 %v3728_v41, %v4697_v54  ;;  %v4067_v62 = vpack.c.bf16 %v1276_v26, %v1269_v60  ;;  %v575_v6 = vand.u32 4294901760, %v574_v47  ;;  %v4701_v38 = vand.u32 4294901760, %v3741_v58 }
  0xe1   : > { %v4065_v12 = vsub.f32 %v3730_v35, %v4699_v45  ;;  %v582_v36 = vand.u32 4294901760, %v581_v17  ;;  %v1282_v55 = vsub.f32 %v4038_v37, %v4570_v7  ;;  %v1289_v48 = vsub.f32 %v4045_v49, %v4569_v4 }
  0xe2   : > { %4698 = vst [vmem:[#allocation56_spill] sm:$0xff] %v4060_v27  ;;  %v4571_v41 = vand.u32 4294901760, %v4060_v27  ;;  %v4080_v35 = vsub.f32 %v3741_v58, %v4701_v38  ;;  %v4703_v60 = vand.u32 4294901760, %v3743_v34 }
  0xe3   : > { %4700 = vst [vmem:[#allocation57_spill] sm:$0xff] %v4065_v12  ;;  %v4572_v54 = vand.u32 4294901760, %v4065_v12  ;;  %v4082_v26 = vpack.c.bf16 %v582_v36, %v575_v6  ;;  %v1283_v17 = vand.u32 4294901760, %v1282_v55  ;;  %v1290_v45 = vand.u32 4294901760, %v1289_v48 }
  0xe4   : > { %4702 = vst [vmem:[#allocation58_spill] sm:$0xff] %v4080_v35  ;;  %v4087_v47 = vsub.f32 %v3743_v34, %v4703_v60  ;;  %v588_v4 = vsub.f32 %v4060_v27, %v4571_v41  ;;  %v4576_v58 = vand.u32 4294901760, %v4080_v35 }
  0xe5   : > { %v595_v7 = vsub.f32 %v4065_v12, %v4572_v54  ;;  %v4097_v38 = vpack.c.bf16 %v1290_v45, %v1283_v17  ;;  %v4119_v17 = vpack.c.bf16 %v3829_v9, %v3824_v25  ;;  %v4123_v45 = vpack.c.bf16 %v3839_v57, %v3834_v10 }
  0xe6   : > { %4704 = vst [vmem:[#allocation59_spill] sm:$0xff] %v4087_v47  ;;  %v4575_v36 = vand.u32 4294901760, %v4087_v47  ;;  %v589_v6 = vand.u32 4294901760, %v588_v4  ;;  %v1296_v34 = vsub.f32 %v4080_v35, %v4576_v58  ;;  %v4113_v4 = vpack.c.bf16 %v3799_v8, %v3787_v44 }
  0xe7   : > { %v596_v55 = vand.u32 4294901760, %v595_v7  ;;  %v4155_v58 = vpack.c.bf16 %v4001_v42, %v3994_v63 }
  0xe8   : > { %v1303_v48 = vsub.f32 %v4087_v47, %v4575_v36  ;;  %v1297_v41 = vand.u32 4294901760, %v1296_v34  ;;  %v4143_v34 = vpack.c.bf16 %v3946_v46, %v3932_v15  ;;  %v4151_v36 = vpack.c.bf16 %v3989_v11, %v3976_v43 }
  0xe9   : > { %v4105_v60 = vpack.c.bf16 %v596_v55, %v589_v6  ;;  %v4127_v6 = vpack.c.bf16 %v3857_v24, %v3852_v23  ;;  %v4131_v55 = vpack.c.bf16 %v3885_v31, %v3879_v14  ;;  %v4163_v46 = vpack.c.bf16 %v4045_v49, %v4038_v37 }
  0xea   : > { %v1304_v54 = vand.u32 4294901760, %v1303_v48  ;;  %v4147_v48 = vpack.c.bf16 %v3971_v51, %v3951_v5  ;;  %v4167_v51 = vpack.c.bf16 %v4065_v12, %v4060_v27  ;;  %v4171_v11 = vpack.c.bf16 %v4087_v47, %v4080_v35 }
  0xec   : > { %v4115_v7 = vpack.c.bf16 %v1304_v54, %v1297_v41  ;;  %v4135_v41 = vpack.c.bf16 %v3905_v28, %v3900_v33  ;;  %v4139_v54 = vpack.c.bf16 %v3927_v30, %v3920_v39  ;;  %v4159_v30 = vpack.c.bf16 %v4022_v52, %v4017_v61 }
 0x130   : > { %v325_v43 = vpop.xlane.xlu1 %324  ;;  %v323_v5 = vpop.xlane.xlu0 %322 }
 0x134   : > { %v329_v42 = vpop.xlane.xlu1 %328  ;;  %v327_v63 = vpop.xlane.xlu0 %326 }
 0x135   : > { %v330_v15 = vadd.f32 %v327_v63, %v323_v5  ;;  %v331_v39 = vadd.f32 %v329_v42, %v325_v43 }
 0x137   : > { %v332_v52 = vmul.f32 0.00390625, %v330_v15  ;;  %v333_v49 = vmul.f32 0.00390625, %v331_v39 }
 0x138   : > { %v343_v61 = vpop.xlane.xlu1 %342  ;;  %v337_v28 = vpop.xlane.xlu0 %336 }
 0x139   : > { %v346_v33 = vadd.f32 %v343_v61, %v337_v28  ;;  %v350_v37 = vmul.f32 %v332_v52, %v332_v52  ;;  %v351_v23 = vmul.f32 %v333_v49, %v333_v49  ;;  %v360_v15 = vsub.f32 %v3545_v1, %v332_v52 }
 0x13a   : > { %v364_v28 = vsub.f32 %v3551_v3, %v332_v52  ;;  %v361_v42 = vsub.f32 %v3543_v0, %v333_v49 }
 0x13b   : > { %v348_v31 = vmul.f32 0.00390625, %v346_v33 }
 0x13c   : > { %v345_v14 = vpop.xlane.xlu1 %344  ;;  %v339_v12 = vpop.xlane.xlu0 %338 }
 0x13d   : > { %v347_v27 = vadd.f32 %v345_v14, %v339_v12  ;;  %v352_v24 = vsub.f32 %v348_v31, %v350_v37  ;;  %v365_v31 = vsub.f32 %v3549_v2, %v333_v49 }
 0x13f   : > { %v349_v47 = vmul.f32 0.00390625, %v347_v27  ;;  %v354_v35 = vmax.f32 %v352_v24, 0.0 }
 0x141   : > { %v353_v57 = vsub.f32 %v349_v47, %v351_v23  ;;  %v356_v10 = vadd.f32 1e-05, %v354_v35 }
 0x143   : > { %v355_v9 = vmax.f32 %v353_v57, 0.0  ;;  %3061 = vrsqrt.f32 %v356_v10 }
 0x145   : > { %v357_v5 = vadd.f32 1e-05, %v355_v9 }
 0x147   : > { %3063 = vrsqrt.f32 %v357_v5 }
 0x14d   : > { %v3062_v39 = vpop.eup %3061 }
 0x14e   : > { %v362_v43 = vmul.f32 %v3062_v39, %v360_v15  ;;  %v366_v33 = vmul.f32 %v3062_v39, %v364_v28 }
 0x150   : > { %v4177_v63 = vand.u32 4294901760, %v362_v43  ;;  %v4179_v23 = vand.u32 4294901760, %v366_v33 }
 0x151   : > { %v3064_v14 = vpop.eup %3063 }
 0x152   : > { %v363_v57 = vmul.f32 %v3064_v14, %v361_v42  ;;  %v367_v10 = vmul.f32 %v3064_v14, %v365_v31  ;;  %v4182_v9 = vsub.f32 %v362_v43, %v4177_v63  ;;  %v4185_v1 = vsub.f32 %v366_v33, %v4179_v23  ;;  %v4738_v33 = vld [vmem:[#allocation39_spill] sm:$0xff]  ;;  %v4740_v14 = vld [vmem:[#allocation40_spill] sm:$0xff] }
 0x153   : > { %v4739_v42 = vand.u32 4294901760, %v4738_v33 }
 0x154   : > { %v4187_v3 = vand.u32 4294901760, %v363_v57  ;;  %v4189_v24 = vand.u32 4294901760, %v367_v10  ;;  %v468_v0 = vand.u32 4294901760, %v4182_v9  ;;  %v1176_v2 = vand.u32 4294901760, %v4185_v1 }
 0x156   : > { %v4194_v61 = vsub.f32 %v363_v57, %v4187_v3  ;;  %v4197_v52 = vsub.f32 %v367_v10, %v4189_v24  ;;  %v469_v37 = vsub.f32 %v4182_v9, %v468_v0  ;;  %v1177_v49 = vsub.f32 %v4185_v1, %v1176_v2  ;;  %v4742_v10 = vld [vmem:[#allocation41_spill] sm:$0xff] }
 0x157   : > { %v4741_v57 = vand.u32 4294901760, %v4740_v14 }
 0x158   : > { %v478_v27 = vand.u32 4294901760, %v4194_v61  ;;  %v1186_v12 = vand.u32 4294901760, %v4197_v52  ;;  %v470_v35 = vand.u32 4294901760, %v469_v37  ;;  %v1178_v47 = vand.u32 4294901760, %v1177_v49  ;;  %v4748_v49 = vld [vmem:[#allocation44_spill] sm:$0xff] }
 0x15a   : > { %v479_v5 = vsub.f32 %v4194_v61, %v478_v27  ;;  %v1187_v15 = vsub.f32 %v4197_v52, %v1186_v12  ;;  %2188 = vmatprep.mubr.f32.mxu1 %v470_v35  ;;  %2398 = vmatprep.mubr.f32.mxu0 %v1178_v47 }
 0x15c   : > { %v480_v28 = vand.u32 4294901760, %v479_v5  ;;  %v1188_v39 = vand.u32 4294901760, %v1187_v15  ;;  %v4752_v5 = vld [vmem:[#allocation46_spill] sm:$0xff] }
 0x15d   : > { %v4753_v15 = vand.u32 4294901760, %v4752_v5 }
 0x15e   : > { %2189 = vmatmul.mubr.f32.vlgmr.msra.gmra.mrb[0].mxu1 %v480_v28  ;;  %2399 = vmatmul.mubr.f32.vlgmr.msra.gmra.mrb[0].mxu0 %v1188_v39  ;;  %v4754_v28 = vld [vmem:[#allocation47_spill] sm:$0xff] }
 0x15f   : > { %2611 = vmatpush3.bf16.msra.mxu1 %v3846_v20  ;;  %2803 = vmatpush3.bf16.msra.mxu0 %v3859_v13  ;;  %v4707_v20 = vld [vmem:[#allocation19_spill] sm:$0xff]  ;;  %v4708_v13 = vld [vmem:[#allocation20_spill] sm:$0xff]  ;;  %v4755_v39 = vand.u32 4294901760, %v4754_v28 }
 0x160   : > { %2223 = vmatprep.mubr.f32.mxu1 %v4177_v63  ;;  %2433 = vmatprep.mubr.f32.mxu0 %v4179_v23 }
 0x161   : > { %2613 = vmatprep.subr.bf16.mxu1 %v3894_v50  ;;  %2805 = vmatprep.subr.bf16.mxu0 %v3907_v29 }
 0x163   : > { %2615 = vmatpush3.bf16.msra.mxu1 %v3894_v50  ;;  %2807 = vmatpush3.bf16.msra.mxu0 %v3907_v29  ;;  %v4706_v50 = vld [vmem:[#allocation18_spill] sm:$0xff]  ;;  %v4709_v29 = vld [vmem:[#allocation21_spill] sm:$0xff] }
 0x164   : > { %2617 = vmatprep.subr.bf16.mxu1 %v3922_v22  ;;  %2809 = vmatprep.subr.bf16.mxu0 %v3953_v21 }
 0x167   : > { %2619 = vmatpush3.bf16.msra.mxu1 %v3922_v22  ;;  %2811 = vmatpush3.bf16.msra.mxu0 %v3953_v21  ;;  %v4710_v22 = vld [vmem:[#allocation22_spill] sm:$0xff]  ;;  %v4713_v21 = vld [vmem:[#allocation25_spill] sm:$0xff] }
 0x168   : > { %2621 = vmatprep.subr.bf16.mxu1 %v3966_v18  ;;  %2813 = vmatprep.subr.bf16.mxu0 %v3996_v19 }
 0x16b   : > { %2623 = vmatpush3.bf16.msra.mxu1 %v3966_v18  ;;  %2815 = vmatpush3.bf16.msra.mxu0 %v3996_v19  ;;  %v4714_v18 = vld [vmem:[#allocation26_spill] sm:$0xff]  ;;  %v4717_v19 = vld [vmem:[#allocation29_spill] sm:$0xff] }
 0x16c   : > { %2625 = vmatprep.subr.bf16.mxu1 %v4011_v32  ;;  %2817 = vmatprep.subr.bf16.mxu0 %v4040_v40 }
 0x16f   : > { %2627 = vmatpush3.bf16.msra.mxu1 %v4011_v32  ;;  %2819 = vmatpush3.bf16.msra.mxu0 %v4040_v40  ;;  %v4718_v32 = vld [vmem:[#allocation30_spill] sm:$0xff]  ;;  %v4719_v40 = vld [vmem:[#allocation31_spill] sm:$0xff] }
 0x170   : > { %2629 = vmatprep.subr.bf16.mxu1 %v4054_v56  ;;  %2821 = vmatprep.subr.bf16.mxu0 %v4067_v62 }
 0x173   : > { %2631 = vmatpush3.bf16.msra.mxu1 %v4054_v56  ;;  %2823 = vmatpush3.bf16.msra.mxu0 %v4067_v62  ;;  %v4720_v56 = vand.u32 4294901760, %v3777_v59  ;;  %v4721_v62 = vand.u32 4294901760, %v3782_v53  ;;  %v4728_v53 = vld [vmem:[#allocation34_spill] sm:$0xff] }
 0x174   : > { %2633 = vmatprep.subr.bf16.mxu1 %v4082_v26  ;;  %2825 = vmatprep.subr.bf16.mxu0 %v4097_v38 }
 0x177   : > { %2635 = vmatpush3.bf16.msra.mxu1 %v4082_v26  ;;  %2827 = vmatpush3.bf16.msra.mxu0 %v4097_v38  ;;  %v2704_v26 = vpack.c.bf16 %v4721_v62, %v4720_v56  ;;  %v4724_v38 = vand.u32 4294901760, %v3799_v8  ;;  %v2912_v56 = vpack.c.bf16 %v4755_v39, %v4753_v15  ;;  %v4756_v62 = vld [vmem:[#allocation48_spill] sm:$0xff] }
 0x178   : > { %2637 = vmatprep.subr.bf16.mxu1 %v4105_v60  ;;  %2829 = vmatprep.subr.bf16.mxu0 %v4115_v7 }
 0x17b   : > { %2639 = vmatpush3.bf16.msra.mxu1 %v4105_v60  ;;  %2831 = vmatpush3.bf16.msra.mxu0 %v4115_v7  ;;  %v4726_v7 = vld [vmem:[#allocation33_spill] sm:$0xff] }
 0x17c   : > { %2641 = vmatprep.subr.bf16.mxu1 %v4109_v16  ;;  %2833 = vmatprep.subr.bf16.mxu0 %v4113_v4  ;;  %v4727_v59 = vand.u32 4294901760, %v4726_v7 }
 0x17e   : > { %2224 = vmatmul.mubr.f32.vlgmr.msra.gmra.mrb[0].mxu1 %v4187_v3  ;;  %2434 = vmatmul.mubr.f32.vlgmr.msra.gmra.mrb[0].mxu0 %v4189_v24 }
 0x17f   : > { %2643 = vmatpush3.bf16.msra.mxu1 %v4109_v16  ;;  %2258 = vmatprep.mubr.f32.mxu1 %v4182_v9  ;;  %v4705_v16 = vld [vmem:[#allocation17_spill] sm:$0xff]  ;;  %v4743_v9 = vand.u32 4294901760, %v4742_v10 }
 0x180   : > { %2835 = vmatpush3.bf16.msra.mxu0 %v4113_v4  ;;  %2468 = vmatprep.mubr.f32.mxu0 %v4185_v1  ;;  %v4725_v4 = vand.u32 4294901760, %v3824_v25 }
 0x181   : > { %2645 = vmatprep.subr.bf16.mxu1 %v4119_v17  ;;  %2837 = vmatprep.subr.bf16.mxu0 %v4123_v45  ;;  %v2716_v1 = vpack.c.bf16 %v4743_v9, %v4741_v57  ;;  %v4776_v57 = vld [vmem:[#allocation58_spill] sm:$0xff]  ;;  %v4778_v9 = vld [vmem:[#allocation59_spill] sm:$0xff] }
 0x182   : > { %v4777_v10 = vand.u32 4294901760, %v4776_v57 }
 0x183   : > { %2647 = vmatpush3.bf16.msra.mxu1 %v4119_v17  ;;  %v2708_v17 = vpack.c.bf16 %v4727_v59, %v4725_v4  ;;  %v4760_v4 = vld [vmem:[#allocation50_spill] sm:$0xff]  ;;  %v4762_v59 = vld [vmem:[#allocation51_spill] sm:$0xff] }
 0x184   : > { %2839 = vmatpush3.bf16.msra.mxu0 %v4123_v45  ;;  %2649 = vmatprep.subr.bf16.mxu1 %v4127_v6  ;;  %v4729_v45 = vand.u32 4294901760, %v4728_v53  ;;  %v4761_v7 = vand.u32 4294901760, %v4760_v4 }
 0x185   : > { %2841 = vmatprep.subr.bf16.mxu0 %v4131_v55 }
 0x187   : > { %2651 = vmatpush3.bf16.msra.mxu1 %v4127_v6 }
 0x188   : > { %2843 = vmatpush3.bf16.msra.mxu0 %v4131_v55  ;;  %2653 = vmatprep.subr.bf16.mxu1 %v4135_v41  ;;  %v4732_v55 = vld [vmem:[#allocation36_spill] sm:$0xff] }
 0x189   : > { %2845 = vmatprep.subr.bf16.mxu0 %v4139_v54  ;;  %v4733_v25 = vand.u32 4294901760, %v4732_v55 }
 0x18b   : > { %2655 = vmatpush3.bf16.msra.mxu1 %v4135_v41  ;;  %v4734_v41 = vld [vmem:[#allocation37_spill] sm:$0xff] }
 0x18c   : > { %2847 = vmatpush3.bf16.msra.mxu0 %v4139_v54  ;;  %2657 = vmatprep.subr.bf16.mxu1 %v4143_v34  ;;  %v4735_v54 = vand.u32 4294901760, %v4734_v41 }
 0x18d   : > { %2849 = vmatprep.subr.bf16.mxu0 %v4147_v48 }
 0x18f   : > { %2659 = vmatpush3.bf16.msra.mxu1 %v4143_v34  ;;  %v2712_v34 = vpack.c.bf16 %v4735_v54, %v4733_v25  ;;  %v4768_v25 = vld [vmem:[#allocation54_spill] sm:$0xff]  ;;  %v4770_v54 = vld [vmem:[#allocation55_spill] sm:$0xff] }
 0x190   : > { %2851 = vmatpush3.bf16.msra.mxu0 %v4147_v48  ;;  %2661 = vmatprep.subr.bf16.mxu1 %v4151_v36  ;;  %v4736_v48 = vld [vmem:[#allocation38_spill] sm:$0xff]  ;;  %v4769_v41 = vand.u32 4294901760, %v4768_v25 }
 0x191   : > { %2853 = vmatprep.subr.bf16.mxu0 %v4155_v58  ;;  %v4737_v43 = vand.u32 4294901760, %v4736_v48 }
 0x193   : > { %2663 = vmatpush3.bf16.msra.mxu1 %v4151_v36  ;;  %v4723_v36 = vand.u32 4294901760, %v3787_v44  ;;  %v4730_v44 = vld [vmem:[#allocation35_spill] sm:$0xff]  ;;  %v2904_v31 = vpack.c.bf16 %v4739_v42, %v4737_v43  ;;  %v4772_v43 = vld [vmem:[#allocation56_spill] sm:$0xff]  ;;  %v4774_v42 = vld [vmem:[#allocation57_spill] sm:$0xff] }
 0x194   : > { %2855 = vmatpush3.bf16.msra.mxu0 %v4155_v58  ;;  %2665 = vmatprep.subr.bf16.mxu1 %v4159_v30  ;;  %v4722_v58 = vld [vmem:[#allocation32_spill] sm:$0xff]  ;;  %v4731_v6 = vand.u32 4294901760, %v4730_v44  ;;  %v4773_v33 = vand.u32 4294901760, %v4772_v43 }
 0x195   : > { %2857 = vmatprep.subr.bf16.mxu0 %v4163_v46  ;;  %v2896_v60 = vpack.c.bf16 %v4724_v38, %v4723_v36  ;;  %v4758_v36 = vld [vmem:[#allocation49_spill] sm:$0xff] }
 0x196   : > { %v2900_v8 = vpack.c.bf16 %v4731_v6, %v4729_v45  ;;  %v4759_v38 = vand.u32 4294901760, %v4758_v36  ;;  %v4764_v45 = vld [vmem:[#allocation52_spill] sm:$0xff]  ;;  %v4766_v6 = vld [vmem:[#allocation53_spill] sm:$0xff] }
 0x197   : > { %2667 = vmatpush3.bf16.msra.mxu1 %v4159_v30  ;;  %v4711_v30 = vld [vmem:[#allocation23_spill] sm:$0xff]  ;;  %v4765_v44 = vand.u32 4294901760, %v4764_v45 }
 0x198   : > { %2859 = vmatpush3.bf16.msra.mxu0 %v4163_v46  ;;  %2669 = vmatprep.subr.bf16.mxu1 %v4167_v51  ;;  %v4712_v46 = vld [vmem:[#allocation24_spill] sm:$0xff] }
 0x199   : > { %2861 = vmatprep.subr.bf16.mxu0 %v4171_v11 }
 0x19b   : > { %2671 = vmatpush3.bf16.msra.mxu1 %v4167_v51  ;;  %v4715_v51 = vld [vmem:[#allocation27_spill] sm:$0xff] }
 0x19c   : > { %2863 = vmatpush3.bf16.msra.mxu0 %v4171_v11  ;;  %2673 = vmatprep.subr.bf16.mxu1 %v4705_v16  ;;  %v4716_v11 = vld [vmem:[#allocation28_spill] sm:$0xff] }
 0x19d   : > { %2865 = vmatprep.subr.bf16.mxu0 %v4706_v50 }
 0x19e   : > { %2259 = vmatmul.mubr.f32.vlgmr.msra.gmra.mrb[0].mxu1 %v4194_v61  ;;  %v4746_v61 = vld [vmem:[#allocation43_spill] sm:$0xff] }
 0x19f   : > { %2469 = vmatmul.mubr.f32.vlgmr.msra.gmra.mrb[0].mxu0 %v4197_v52  ;;  %2675 = vmatpush3.bf16.msra.mxu1 %v4705_v16  ;;  %v4747_v52 = vand.u32 4294901760, %v4746_v61 }
 0x1a0   : > { %2293 = vmatprep.mubr.f32.mxu1 %v468_v0  ;;  %2867 = vmatpush3.bf16.msra.mxu0 %v4706_v50  ;;  %v4744_v0 = vld [vmem:[#allocation42_spill] sm:$0xff] }
 0x1a1   : > { %2503 = vmatprep.mubr.f32.mxu0 %v1176_v2  ;;  %2677 = vmatprep.subr.bf16.mxu1 %v4707_v20  ;;  %v4745_v2 = vand.u32 4294901760, %v4744_v0 }
 0x1a2   : > { %2869 = vmatprep.subr.bf16.mxu0 %v4708_v13 }
 0x1a3   : > { %2679 = vmatpush3.bf16.msra.mxu1 %v4707_v20  ;;  %v2908_v37 = vpack.c.bf16 %v4747_v52, %v4745_v2 }
 0x1a4   : > { %2871 = vmatpush3.bf16.msra.mxu0 %v4708_v13  ;;  %2681 = vmatprep.subr.bf16.mxu1 %v4709_v29 }
 0x1a5   : > { %2873 = vmatprep.subr.bf16.mxu0 %v4710_v22 }
 0x1a7   : > { %2683 = vmatpush3.bf16.msra.mxu1 %v4709_v29 }
 0x1a8   : > { %2875 = vmatpush3.bf16.msra.mxu0 %v4710_v22  ;;  %2685 = vmatprep.subr.bf16.mxu1 %v4711_v30 }
 0x1a9   : > { %2877 = vmatprep.subr.bf16.mxu0 %v4712_v46 }
 0x1ab   : > { %2687 = vmatpush3.bf16.msra.mxu1 %v4711_v30 }
 0x1ac   : > { %2879 = vmatpush3.bf16.msra.mxu0 %v4712_v46  ;;  %2689 = vmatprep.subr.bf16.mxu1 %v4713_v21 }
 0x1ad   : > { %2881 = vmatprep.subr.bf16.mxu0 %v4714_v18 }
 0x1af   : > { %2691 = vmatpush3.bf16.msra.mxu1 %v4713_v21 }
 0x1b0   : > { %2883 = vmatpush3.bf16.msra.mxu0 %v4714_v18  ;;  %2693 = vmatprep.subr.bf16.mxu1 %v4715_v51 }
 0x1b1   : > { %2885 = vmatprep.subr.bf16.mxu0 %v4716_v11 }
 0x1b3   : > { %2695 = vmatpush3.bf16.msra.mxu1 %v4715_v51 }
 0x1b4   : > { %2887 = vmatpush3.bf16.msra.mxu0 %v4716_v11  ;;  %2697 = vmatprep.subr.bf16.mxu1 %v4717_v19 }
 0x1b5   : > { %2889 = vmatprep.subr.bf16.mxu0 %v4718_v32 }
 0x1b7   : > { %2699 = vmatpush3.bf16.msra.mxu1 %v4717_v19 }
 0x1b8   : > { %2891 = vmatpush3.bf16.msra.mxu0 %v4718_v32  ;;  %2701 = vmatprep.subr.bf16.mxu1 %v4719_v40 }
 0x1b9   : > { %2893 = vmatprep.subr.bf16.mxu0 %v4722_v58 }
 0x1bb   : > { %2703 = vmatpush3.bf16.msra.mxu1 %v4719_v40 }
 0x1bc   : > { %2895 = vmatpush3.bf16.msra.mxu0 %v4722_v58  ;;  %2705 = vmatprep.subr.bf16.mxu1 %v2704_v26 }
 0x1bd   : > { %2897 = vmatprep.subr.bf16.mxu0 %v2896_v60 }
 0x1be   : > { %2294 = vmatmul.mubr.f32.vlgmr.msra.gmra.mrb[0].mxu1 %v478_v27  ;;  %v4749_v27 = vand.u32 4294901760, %v4748_v49 }
 0x1bf   : > { %2504 = vmatmul.mubr.f32.vlgmr.msra.gmra.mrb[0].mxu0 %v1186_v12  ;;  %2707 = vmatpush3.bf16.msra.mxu1 %v2704_v26  ;;  %v4750_v12 = vld [vmem:[#allocation45_spill] sm:$0xff]  ;;  %v4757_v26 = vand.u32 4294901760, %v4756_v62 }
 0x1c0   : > { %2328 = vmatprep.mubr.f32.mxu1 %v4177_v63  ;;  %2899 = vmatpush3.bf16.msra.mxu0 %v2896_v60  ;;  %v4751_v35 = vand.u32 4294901760, %v4750_v12 }
 0x1c1   : > { %2538 = vmatprep.mubr.f32.mxu0 %v4179_v23  ;;  %2709 = vmatprep.subr.bf16.mxu1 %v2708_v17  ;;  %v2724_v60 = vpack.c.bf16 %v4759_v38, %v4757_v26 }
 0x1c2   : > { %2901 = vmatprep.subr.bf16.mxu0 %v2900_v8  ;;  %v2720_v47 = vpack.c.bf16 %v4751_v35, %v4749_v27 }
 0x1c3   : > { %2711 = vmatpush3.bf16.msra.mxu1 %v2708_v17  ;;  %v4763_v17 = vand.u32 4294901760, %v4762_v59 }
 0x1c4   : > { %2903 = vmatpush3.bf16.msra.mxu0 %v2900_v8  ;;  %2713 = vmatprep.subr.bf16.mxu1 %v2712_v34  ;;  %v4767_v8 = vand.u32 4294901760, %v4766_v6 }
 0x1c5   : > { %2905 = vmatprep.subr.bf16.mxu0 %v2904_v31  ;;  %v2916_v53 = vpack.c.bf16 %v4763_v17, %v4761_v7 }
 0x1c6   : > { %v2728_v55 = vpack.c.bf16 %v4767_v8, %v4765_v44 }
 0x1c7   : > { %2715 = vmatpush3.bf16.msra.mxu1 %v2712_v34  ;;  %v4771_v34 = vand.u32 4294901760, %v4770_v54 }
 0x1c8   : > { %2907 = vmatpush3.bf16.msra.mxu0 %v2904_v31  ;;  %2717 = vmatprep.subr.bf16.mxu1 %v2716_v1  ;;  %v4775_v31 = vand.u32 4294901760, %v4774_v42 }
 0x1c9   : > { %2909 = vmatprep.subr.bf16.mxu0 %v2908_v37  ;;  %v2920_v48 = vpack.c.bf16 %v4771_v34, %v4769_v41 }
 0x1ca   : > { %v2732_v14 = vpack.c.bf16 %v4775_v31, %v4773_v33 }
 0x1cb   : > { %2719 = vmatpush3.bf16.msra.mxu1 %v2716_v1  ;;  %v4779_v1 = vand.u32 4294901760, %v4778_v9 }
 0x1cc   : > { %2911 = vmatpush3.bf16.msra.mxu0 %v2908_v37  ;;  %2721 = vmatprep.subr.bf16.mxu1 %v2720_v47 }
 0x1cd   : > { %2913 = vmatprep.subr.bf16.mxu0 %v2912_v56  ;;  %v2924_v0 = vpack.c.bf16 %v4779_v1, %v4777_v10 }
 0x1cf   : > { %2723 = vmatpush3.bf16.msra.mxu1 %v2720_v47 }
 0x1d0   : > { %2915 = vmatpush3.bf16.msra.mxu0 %v2912_v56  ;;  %2725 = vmatprep.subr.bf16.mxu1 %v2724_v60 }
 0x1d1   : > { %2917 = vmatprep.subr.bf16.mxu0 %v2916_v53 }
 0x1d3   : > { %2727 = vmatpush3.bf16.msra.mxu1 %v2724_v60 }
 0x1d4   : > { %2919 = vmatpush3.bf16.msra.mxu0 %v2916_v53  ;;  %2729 = vmatprep.subr.bf16.mxu1 %v2728_v55 }
 0x1d5   : > { %2921 = vmatprep.subr.bf16.mxu0 %v2920_v48 }
 0x1d7   : > { %2731 = vmatpush3.bf16.msra.mxu1 %v2728_v55 }
 0x1d8   : > { %2923 = vmatpush3.bf16.msra.mxu0 %v2920_v48  ;;  %2733 = vmatprep.subr.bf16.mxu1 %v2732_v14 }
 0x1d9   : > { %2925 = vmatprep.subr.bf16.mxu0 %v2924_v0 }
 0x1db   : > { %2735 = vmatpush3.bf16.msra.mxu1 %v2732_v14 }
 0x1dc   : > { %2927 = vmatpush3.bf16.msra.mxu0 %v2924_v0  ;;  %2737 = vmatprep.subr.bf16.mxu1 %v4705_v16 }
 0x1dd   : > { %2929 = vmatprep.subr.bf16.mxu0 %v4706_v50 }
 0x1de   : > { %2329 = vmatmul.mubr.f32.vlgmr.msra.gmra.mrb[0].mxu1 %v4187_v3 }
 0x1df   : > { %2539 = vmatmul.mubr.f32.vlgmr.msra.gmra.mrb[0].mxu0 %v4189_v24  ;;  %2739 = vmatpush3.bf16.msra.mxu1 %v4705_v16 }
 0x1e0   : > { %2363 = vmatprep.mubr.f32.mxu1 %v4177_v63  ;;  %2931 = vmatpush3.bf16.msra.mxu0 %v4706_v50  ;;  %v1930_v63 = vld [vmem:[%s4484_s4] ss:$0 sm:$0xff] }
 0x1e1   : > { %2573 = vmatprep.mubr.f32.mxu0 %v4179_v23  ;;  %2741 = vmatprep.subr.bf16.mxu1 %v4707_v20 }
 0x1e2   : > { %2933 = vmatprep.subr.bf16.mxu0 %v4708_v13 }
 0x1e3   : > { %2743 = vmatpush3.bf16.msra.mxu1 %v4707_v20 }
 0x1e4   : > { %2935 = vmatpush3.bf16.msra.mxu0 %v4708_v13  ;;  %2745 = vmatprep.subr.bf16.mxu1 %v4709_v29 }
 0x1e5   : > { %2937 = vmatprep.subr.bf16.mxu0 %v4710_v22 }
 0x1e7   : > { %2747 = vmatpush3.bf16.msra.mxu1 %v4709_v29 }
 0x1e8   : > { %2939 = vmatpush3.bf16.msra.mxu0 %v4710_v22  ;;  %2749 = vmatprep.subr.bf16.mxu1 %v4711_v30 }
 0x1e9   : > { %2941 = vmatprep.subr.bf16.mxu0 %v4712_v46 }
 0x1eb   : > { %2751 = vmatpush3.bf16.msra.mxu1 %v4711_v30 }
 0x1ec   : > { %2943 = vmatpush3.bf16.msra.mxu0 %v4712_v46  ;;  %2753 = vmatprep.subr.bf16.mxu1 %v4713_v21 }
 0x1ed   : > { %2945 = vmatprep.subr.bf16.mxu0 %v4714_v18 }
 0x1ef   : > { %2755 = vmatpush3.bf16.msra.mxu1 %v4713_v21 }
 0x1f0   : > { %2947 = vmatpush3.bf16.msra.mxu0 %v4714_v18  ;;  %2757 = vmatprep.subr.bf16.mxu1 %v4715_v51 }
 0x1f1   : > { %2949 = vmatprep.subr.bf16.mxu0 %v4716_v11 }
 0x1f3   : > { %2759 = vmatpush3.bf16.msra.mxu1 %v4715_v51 }
 0x1f4   : > { %2951 = vmatpush3.bf16.msra.mxu0 %v4716_v11  ;;  %2761 = vmatprep.subr.bf16.mxu1 %v4717_v19 }
 0x1f5   : > { %2953 = vmatprep.subr.bf16.mxu0 %v4718_v32 }
 0x1f7   : > { %2763 = vmatpush3.bf16.msra.mxu1 %v4717_v19 }
 0x1f8   : > { %2955 = vmatpush3.bf16.msra.mxu0 %v4718_v32  ;;  %2765 = vmatprep.subr.bf16.mxu1 %v4719_v40 }
 0x1f9   : > { %2957 = vmatprep.subr.bf16.mxu0 %v4722_v58 }
 0x1fb   : > { %2767 = vmatpush3.bf16.msra.mxu1 %v4719_v40 }
 0x1fc   : > { %2959 = vmatpush3.bf16.msra.mxu0 %v4722_v58 }
 0x1fe   : > { %2364 = vmatmul.mubr.f32.vlgmr.msra.gmra.mrb[0].mxu1 %v4187_v3 }
 0x1ff   : > { %2574 = vmatmul.mubr.f32.vlgmr.msra.gmra.mrb[0].mxu0 %v4189_v24 }
 0x2d1   : > { %v2365_v23 = vpop.f32.mrb[0].mxu1 }
 0x2d2   : > { %v2960_v16 = vadd.f32 %v2365_v23, %v1930_v63  ;;  %v2575_v50 = vpop.f32.mrb[0].mxu0  ;;  %v1059_v20 = vpop.f32.mrb[1].mxu1 }
 0x2d3   : > { %v2962_v3 = vadd.f32 %v1930_v63, %v1059_v20  ;;  %v1767_v24 = vpop.f32.mrb[1].mxu0 }
 0x2d4   : > { %v2961_v13 = vadd.f32 %v2960_v16, %v2575_v50 }
 0x2d5   : > { %v2963_v29 = vadd.f32 %v2962_v3, %v1767_v24 }
 0x2d6   : > { %1780 = vst [vmem:[%s314_s25 + $0x8] sm:$0xff] %v2961_v13 }
 0x2d7   : > { %1779 = vst [vmem:[%s314_s25] sm:$0xff] %v2963_v29 }
 0x2d8   : > { %3195 = shalt.err (!%p3192_p10)
}
 0x2d9   : > { %s3196_s28 = scalar_lea.hbm %s4437_s26, 256  ;;  %s3200_s9 = scalar_lea.hbm %s4485_s5, 2048 }
 0x2da   : > { %p3197_p3 = scmp.ne.s32.totalorder %s4437_s26, %s3196_s28  ;;  %p3201_p1 = scmp.lt.u32.totalorder %s4437_s26, %s4485_s5 }
 0x2db   : > { %p3202_p4 = scmp.lt.u32.totalorder %s3200_s9, %s3196_s28  ;;  %p3204_p2 = scmp.lt.u32.totalorder %s3196_s28, %s4437_s26 }
 0x2dc   : > { %p3198_p8 = pnand %p3197_p3, %p4780_p5 }
 0x2dd   : > { %p3203_p0 = por %p3202_p4, %p3201_p1 }
 0x2de   : > { %p3199_p7 = pneg %p3198_p8 }
 0x2df   : > { %p3205_p11 = por %p3204_p2, %p3203_p0 }
 0x2e1   : > { %p3206_p12 = pnand %p3205_p11, %p3199_p7 }
 0x2e3   : > { %3209 = shalt.err (!%p3206_p12)
}
 0x2e4   : > { %s3270_s7 = smov 128   ;;  %s3271_s29 = smov 8  }
 0x2e5   : > { %2996 = dma.vmem_to_hbm [thread:$0]  (%p4780_p5), %s4432_s14, 256, %s4437_s26, %s1782_s10, %s3270_s7, %s3270_s7, %s3271_s29  }
 0x2e6 PF: > { %p3021_p6 = scmp.ge.s32.totalorder %s3260_s21, 2  ;;  %s1810_s11 = sand.u32 1, %s3248_s18  }
 0x2e7   : > { %p4781_p13 = scmp.ne.s32.totalorder %s4611_s6, 0  ;;  %s1811_s25 = scalar_lea.sflag [#allocation4], %s1810_s11 }
 0x2e9   : > { %p3013_p9 = pnand %p3021_p6, %p4781_p13 }
 0x2eb   : > { %3243 = dma.done.wait (!%p3013_p9), %s1811_s25, 256  }
 0x2ec   : > { %3245 = vsyncadd (!%p3013_p9), %s1811_s25, 4294967040  ;;  %s4782_s16 = sld [smem:[#allocation16_spill]]  ;;  %p22_p10 = scmp.ge.s32.totalorder %s3327_s24, 10  }
 0x2ed   : > { %s4783_s18 = smov %s3252_s19  ;;  %s4784_s19 = smov %s3256_s20 }
 0x2ee   : > { %s4786_s21 = smov %s3327_s24  ;;  %24 = sbr.rel (!%p22_p10) target bundleno = 12 (0xc), region = 106 }
 0x2f2   : > { %s4785_s20 = smov %s4782_s16 }
 0x2f5   :  { %1816 = vsyncpa [#allocation3], 1 }
 0x2f6   :  { %1818 = vsyncpa [#allocation3 + $0x1], 1 }
 0x2f7   :  { %1819 = vsyncpa [#allocation6], 1 }
 0x2f8   :  { %1821 = vsyncpa [#allocation6 + $0x1], 1 }
 0x2f9   :  { %1822 = vsyncpa [#allocation9], 1 }
 0x2fa   :  { %1823 = vsyncpa [#allocation4], 1 }
 0x2fb   :  { %1825 = vsyncpa [#allocation4 + $0x1], 1 }

// kernel: tpu_custom_call.1
= control target key start
LH: loop header
LB: loop body
LE: loop exit
PB: predicated region body
PF: predicated region fallthrough
CT: control target
= control target key end

     0   :  { %s4480_s0 = inlined_call_operand.hbm [shape: f32[16,2,8,128], index: 0, kind: input, shape index: {}]   ;;  %s4481_s1 = inlined_call_operand.hbm [shape: f32[16,2,8,128], index: 1, kind: input, shape index: {}]   ;;  %s4482_s2 = inlined_call_operand.hbm [shape: f32[128,128], index: 2, kind: input, shape index: {}]   ;;  %s4483_s3 = inlined_call_operand.hbm [shape: f32[128,128], index: 3, kind: input, shape index: {}]   ;;  %s4484_s4 = inlined_call_operand.vmem [shape: f32[1,128], index: 4, kind: input, shape index: {}]   ;;  %s4485_s5 = inlined_call_operand.hbm [shape: f32[128,128], index: 5, kind: output, shape index: {}]  }
   0x1   :  { %4604 = sst [smem:[#allocation60_spill]] %s4480_s0 }
   0x2   :  { %4605 = sst [smem:[#allocation61_spill]] %s4482_s2 }
   0x3   :  { %4606 = sst [smem:[#allocation62_spill]] %s4483_s3 }
   0x4   :  { %10 = vsyncpa [#allocation3], 0 }
   0x5   :  { %12 = vsyncpa [#allocation3 + $0x1], 0 }
   0x6   :  { %13 = vsyncpa [#allocation6], 0 }
   0x7   :  { %15 = vsyncpa [#allocation6 + $0x1], 0 }
   0x8   :  { %16 = vsyncpa [#allocation9], 0 }
   0x9   :  { %17 = vsyncpa [#allocation4], 0 }
   0xa   :  { %19 = vsyncpa [#allocation4 + $0x1], 0  ;;  %s3302_s18 = smov 0   ;;  %s3304_s19 = smov 0  }
   0xb   :  { %s3306_s20 = smov 0   ;;  %s3308_s21 = smov 0  }
   0xc LB: > { %s3323_s22 = sadd.s32 4294967295, %s3260_s21   ;;  %s1912_s23 = sadd.s32 4294967294, %s3260_s21   ;;  %s3260_s21 = sphi %s3308_s21, %s4786_s21   ;;  %s3256_s20 = sphi %s3306_s20, %s4785_s20   ;;  %s3252_s19 = sphi %s3304_s19, %s4784_s19   ;;  %s3248_s18 = sphi %s3302_s18, %s4783_s18  }
   0xd   : > { %s3327_s24 = sadd.s32 1, %s3260_s21   ;;  %s32_s25 = sadd.s32 1, %s3256_s20 }
   0xe   : > { %s29_s26 = ssub.s32 %s3260_s21, %s3327_s24  ;;  %p39_p0 = scmp.ne.s32.totalorder %s3256_s20, %s3252_s19 }
   0xf   : > { %p30_p1 = scmp.eq.s32.totalorder %s29_s26, 0  ;;  %p40_p2 = scmp.eq.s32.totalorder %s3260_s21, 0 }
  0x10   : > { %p45_p3 = scmp.ne.s32.totalorder %s3252_s19, %s3248_s18  ;;  %p4486_p4 = scmp.eq.s32.totalorder %s3323_s22, 0 }
  0x11   : > { %s3339_s27 = scalar_select %p30_p1, %s3256_s20, %s32_s25  }
  0x12   : > { %p3341_p5 = por %p40_p2, %p39_p0  ;;  %p3347_p6 = por %p4486_p4, %p45_p3 }
  0x13   : > { %4607 = sst [smem:[#allocation16_spill]] %s3339_s27  ;;  %p158_p7 = scmp.eq.s32.totalorder %s3323_s22, 7 }
  0x14   : > { %s4608_s28 = scalar_select %p3341_p5, 1, 0 }
  0x15   : > { %s4609_s29 = scalar_select %p3347_p6, 1, 0 }
  0x16   : > { %p164_p8 = scmp.eq.s32.totalorder %s1912_s23, 7  ;;  %p1913_p9 = scmp.ge.s32.totalorder %s3260_s21, 1 }
  0x17   : > { %p171_p10 = scmp.lt.s32.totalorder %s3260_s21, 9  ;;  %p3354_p11 = por %p158_p7, %p39_p0 }
  0x18   : > { %p3358_p12 = por %p164_p8, %p45_p3  ;;  %s3262_s8 = smov [#allocation7]  }
  0x19   : > { %s4610_s30 = scalar_select %p3354_p11, 1, 0 }
  0x1a   : > { %s4611_s6 = scalar_select %p3358_p12, 1, 0 }
  0x1b   : > { %p3362_p13 = pnand %p1913_p9, %p171_p10  ;;  %s183_s9 = sshll.u32 %s3262_s8, 4  ;;  %s184_s9 = int_to_ptr.vmem [resolvable:$true] %s183_s9 }
  0x1c   : > { %s3263_s11 = smov [#allocation8]   ;;  %s4614_s2 = sld [smem:[#allocation61_spill]] }
  0x1d   : > { %s4612_s7 = scalar_select %p3362_p13, 1, 0 }
  0x1e   : > { %p2998_p1 = pneg %p3362_p13  ;;  %s196_s12 = sshll.u32 %s3263_s11, 4  ;;  %s197_s12 = int_to_ptr.vmem [resolvable:$true] %s196_s12 }
  0x20   : > { %p3370_p2 = pnand %p2998_p1, %p4486_p4 }
  0x22   : > { %s3065_s15 = scalar_lea.hbm %s4614_s2, 2048  ;;  %p3067_p7 = pneg %p3370_p2 }
  0x23   : > { %p3066_p3 = scmp.ne.s32.totalorder %s4614_s2, %s3065_s15  ;;  %p3072_p10 = scmp.lt.u32.totalorder %s3065_s15, %s4614_s2 }
  0x25   : > { %p3068_p8 = pnand %p3067_p7, %p3066_p3 }
  0x27   : > { %p3069_p9 = pneg %p3068_p8 }
  0x29   : > { %p3074_p1 = pnand %p3072_p10, %p3069_p9 }
  0x2b   : > { %3077 = shalt.err (!%p3074_p1)
}
  0x2c   : > { %s3078_s26 = scalar_lea.vmem %s184_s9, 2048  ;;  %p3086_p11 = scmp.lt.s32.totalorder %s184_s9, %s184_s9 }
  0x2d   : > { %p3079_p4 = scmp.ne.s32.totalorder %s184_s9, %s3078_s26  ;;  %p3087_p6 = scmp.lt.s32.totalorder %s3078_s26, %s3078_s26 }
  0x2f   : > { %p3081_p0 = pnand %p3079_p4, %p3067_p7  ;;  %p3088_p13 = por %p3087_p6, %p3086_p11 }
  0x31   : > { %p3082_p12 = pneg %p3081_p0 }
  0x33   : > { %p3089_p5 = pnand %p3088_p13, %p3082_p12 }
  0x35   : > { %3092 = shalt.err (!%p3089_p5)
}
  0x36   : > { %s4492_s8 = smov 128   ;;  %s3265_s11 = smov 8  }
  0x37   : > { %3001 = dma.hbm_to_vmem [thread:$0]  (!%p3370_p2), %s4614_s2, 2048, %s184_s9, [#allocation6], %s4492_s8, %s4492_s8, %s3265_s11  }
  0x38   : > { %p4615_p4 = scmp.ne.s32.totalorder %s4608_s28, 0  ;;  %p4616_p0 = scmp.lt.s32.totalorder %s3260_s21, 8 }
  0x39   : > { %s4618_s3 = sld [smem:[#allocation62_spill]] }
  0x3a   : > { %p3404_p3 = pnand %p4616_p0, %p4615_p4 }
  0x3c   : > { %s4617_s15 = scalar_select %p3404_p3, 1, 0 }
  0x3f   : > { %s3093_s23 = scalar_lea.hbm %s4618_s3, 2048 }
  0x40   : > { %p3094_p5 = scmp.ne.s32.totalorder %s4618_s3, %s3093_s23  ;;  %p3100_p12 = scmp.lt.u32.totalorder %s3093_s23, %s4618_s3 }
  0x42   : > { %p3096_p6 = pnand %p3094_p5, %p3067_p7 }
  0x44   : > { %p3097_p11 = pneg %p3096_p6 }
  0x46   : > { %p3102_p13 = pnand %p3100_p12, %p3097_p11 }
  0x48   : > { %3105 = shalt.err (!%p3102_p13)
}
  0x49   : > { %s3106_s13 = scalar_lea.vmem %s197_s12, 2048  ;;  %p3114_p1 = scmp.lt.s32.totalorder %s197_s12, %s197_s12 }
  0x4a   : > { %p3107_p8 = scmp.ne.s32.totalorder %s197_s12, %s3106_s13  ;;  %p3115_p4 = scmp.lt.s32.totalorder %s3106_s13, %s3106_s13 }
  0x4c   : > { %p3109_p9 = pnand %p3107_p8, %p3067_p7  ;;  %p3116_p0 = por %p3115_p4, %p3114_p1 }
  0x4e   : > { %p3110_p10 = pneg %p3109_p9 }
  0x50   : > { %p3117_p3 = pnand %p3116_p0, %p3110_p10 }
  0x52   : > { %3120 = shalt.err (!%p3117_p3)
}
  0x53   : > { %3004 = dma.hbm_to_vmem [thread:$0]  (!%p3370_p2), %s4618_s3, 2048, %s197_s12, [#allocation9], %s4492_s8, %s4492_s8, %s3265_s11  }
  0x54   : > { %s213_s17 = sand.u32 1, %s3256_s20   ;;  %s4491_s25 = sshll.u32 %s3260_s21, 9 }
  0x55   : > { %s3432_s23 = sshll.u32 %s213_s17, 4  ;;  %s4619_s0 = sld [smem:[#allocation60_spill]] }
  0x56   : > { %s217_s28 = scalar_lea.vmem [#allocation2], %s3432_s23  ;;  %s3445_s12 = scalar_lea.sflag [#allocation3], %s213_s17 }
  0x57   : > { %s225_s13 = sshll.u32 %s217_s28, 4  ;;  %p4620_p7 = scmp.ne.s32.totalorder %s4617_s15, 0  ;;  %s3443_s13 = int_to_ptr.vmem [resolvable:$true] %s225_s13 }
  0x59   : > { %p3123_p3 = pneg %p4620_p7 }
  0x5b   : > { %s3440_s9 = scalar_lea.hbm %s4619_s0, %s4491_s25  ;;  %s3126_s10 = scalar_lea.hbm %s4619_s0, 4096 }
  0x5c   : > { %s3121_s14 = scalar_lea.hbm %s3440_s9, 256  ;;  %p3127_p11 = scmp.lt.u32.totalorder %s3440_s9, %s4619_s0 }
  0x5d   : > { %p3122_p2 = scmp.ne.s32.totalorder %s3440_s9, %s3121_s14  ;;  %p3128_p12 = scmp.lt.u32.totalorder %s3126_s10, %s3121_s14 }
  0x5e   : > { %p3130_p8 = scmp.lt.u32.totalorder %s3121_s14, %s3440_s9 }
  0x5f   : > { %p3124_p5 = pnand %p3123_p3, %p3122_p2  ;;  %p3129_p13 = por %p3128_p12, %p3127_p11 }
  0x61   : > { %p3125_p6 = pneg %p3124_p5  ;;  %p3131_p9 = por %p3130_p8, %p3129_p13 }
  0x63   : > { %p3132_p10 = pnand %p3131_p9, %p3125_p6 }
  0x65   : > { %3135 = shalt.err (!%p3132_p10)
}
  0x66   : > { %s3136_s17 = scalar_lea.vmem %s3443_s13, 256  ;;  %s3266_s28 = smov [#allocation2]  }
  0x67   : > { %p3137_p1 = scmp.ne.s32.totalorder %s3443_s13, %s3136_s17  ;;  %s3141_s16 = sshll.u32 %s3266_s28, 4  ;;  %s3142_s16 = int_to_ptr.vmem [resolvable:$false] %s3141_s16 }
  0x68   : > { %s3143_s8 = scalar_lea.vmem %s3142_s16, 512  ;;  %p3144_p2 = scmp.lt.s32.totalorder %s3443_s13, %s3142_s16 }
  0x69   : > { %p3139_p4 = pnand %p3137_p1, %p3123_p3  ;;  %p3145_p5 = scmp.lt.s32.totalorder %s3143_s8, %s3136_s17 }
  0x6b   : > { %p3140_p0 = pneg %p3139_p4  ;;  %p3146_p11 = por %p3145_p5, %p3144_p2 }
  0x6d   : > { %p3147_p12 = pnand %p3146_p11, %p3140_p0 }
  0x6f   : > { %3150 = shalt.err (!%p3147_p12)
}
  0x70   : > { %s3267_s25 = smov 256   ;;  %s4621_s14 = smov 128  }
  0x71   : > { %3008 = dma.hbm_to_vmem [thread:$0]  (!%p4620_p7), %s3440_s9, 256, %s3443_s13, %s3445_s12, %s3267_s25, %s4621_s14, %s3265_s11  }
  0x72   : > { %s4622_s26 = sshll.u32 %s3260_s21, 9  ;;  %s239_s8 = scalar_lea.vmem [#allocation5], %s3432_s23 }
  0x73   : > { %s1836_s28 = scalar_lea.hbm %s4481_s1, %s4622_s26  ;;  %s248_s0 = sshll.u32 %s239_s8, 4  ;;  %s3484_s0 = int_to_ptr.vmem [resolvable:$true] %s248_s0 }
  0x74   : > { %s3481_s16 = scalar_lea.hbm %s1836_s28, 128  ;;  %s235_s2 = sand.u32 1, %s3260_s21  }
  0x75   : > { %s3487_s3 = scalar_lea.sflag [#allocation6], %s235_s2  ;;  %s3181_s27 = scalar_lea.hbm %s1836_s28, 384 }
  0x76   : > { %p3152_p6 = scmp.ne.s32.totalorder %s3481_s16, %s3181_s27  ;;  %s3156_s12 = scalar_lea.hbm %s4481_s1, 4096 }
  0x77   : > { %p3157_p9 = scmp.lt.u32.totalorder %s3481_s16, %s4481_s1  ;;  %p3158_p10 = scmp.lt.u32.totalorder %s3156_s12, %s3181_s27 }
  0x78   : > { %p3154_p13 = pnand %p3152_p6, %p3123_p3  ;;  %p3160_p4 = scmp.lt.u32.totalorder %s3181_s27, %s3481_s16 }
  0x79   : > { %p3159_p1 = por %p3158_p10, %p3157_p9 }
  0x7a   : > { %p3155_p8 = pneg %p3154_p13 }
  0x7b   : > { %p3161_p0 = por %p3160_p4, %p3159_p1 }
  0x7d   : > { %p3162_p2 = pnand %p3161_p0, %p3155_p8 }
  0x7f   : > { %3165 = shalt.err (!%p3162_p2)
}
  0x80   : > { %s3166_s2 = scalar_lea.vmem %s3484_s0, 256  ;;  %s3268_s23 = smov [#allocation5]  }
  0x81   : > { %p3167_p5 = scmp.ne.s32.totalorder %s3484_s0, %s3166_s2  ;;  %s3171_s17 = sshll.u32 %s3268_s23, 4  ;;  %s3172_s17 = int_to_ptr.vmem [resolvable:$false] %s3171_s17 }
  0x82   : > { %s3173_s28 = scalar_lea.vmem %s3172_s17, 512  ;;  %p3174_p6 = scmp.lt.s32.totalorder %s3484_s0, %s3172_s17 }
  0x83   : > { %p3169_p11 = pnand %p3167_p5, %p3123_p3  ;;  %p3175_p13 = scmp.lt.s32.totalorder %s3173_s28, %s3166_s2 }
  0x85   : > { %p3170_p12 = pneg %p3169_p11  ;;  %p3176_p9 = por %p3175_p13, %p3174_p6 }
  0x87   : > { %p3177_p10 = pnand %p3176_p9, %p3170_p12 }
  0x89   : > { %3180 = shalt.err (!%p3177_p10)
}
  0x8a   : > { %3011 = dma.hbm_to_vmem [thread:$0]  (!%p4620_p7), %s3481_s16, 256, %s3484_s0, %s3487_s3, %s3267_s25, %s4621_s14, %s3265_s11  }
  0x8b   : > { %p4623_p3 = scmp.ne.s32.totalorder %s4612_s7, 0 }
  0x8d   : > { %260 = sbr.rel (%p4623_p3) target bundleno = 742 (0x2e6), region = 40 }
  0x94   : > { %s3518_s27 = sand.u32 1, %s3252_s19   ;;  %p4624_p8 = scmp.ne.s32.totalorder %s4609_s29, 0 }
  0x95   : > { %s3521_s8 = sshll.u32 %s3518_s27, 4  ;;  %s263_s15 = scalar_lea.sflag [#allocation3], %s3518_s27 }
  0x96   : > { %s266_s9 = scalar_lea.vmem [#allocation2], %s3521_s8 }
  0x97   : > { %3227 = dma.done.wait (%p4624_p8), %s263_s15, 256  }
  0x98   : > { %3229 = vsyncadd (%p4624_p8), %s263_s15, 4294967040  ;;  %s271_s0 = sand.u32 1, %s3323_s22   ;;  %s275_s7 = scalar_lea.vmem [#allocation5], %s3521_s8 }
  0x99   : > { %s272_s3 = scalar_lea.sflag [#allocation6], %s271_s0 }
  0x9a   : > { %3231 = dma.done.wait (%p4624_p8), %s272_s3, 256  }
  0x9b   : > { %3233 = vsyncadd (%p4624_p8), %s272_s3, 4294967040  ;;  %p4625_p7 = scmp.eq.s32.totalorder %s3323_s22, 0 }
  0x9d   : > { %3235 = dma.done.wait (%p4625_p7), [#allocation6], 2048   ;;  %p4626_p1 = pmov %p4625_p7 }
  0x9f   : > { %3237 = vsyncadd (%p4626_p1), [#allocation6], 4294965248  ;;  %p4627_p4 = pmov %p4626_p1 }
  0xa0   : > { %p4628_p0 = pmov %p4626_p1 }
  0xa1   : > { %3239 = dma.done.wait (%p4627_p4), [#allocation9], 2048  }
  0xa2   : > { %3241 = vsyncadd (%p4628_p0), [#allocation9], 4294965248  ;;  %v3543_v0 = vld [vmem:[%s266_s9 + $0x8] sm:$0xff]  ;;  %v3545_v1 = vld [vmem:[%s266_s9] sm:$0xff]  ;;  %s314_s25 = scalar_lea.vmem [#allocation10], %s3521_s8  ;;  %s1939_s16 = sshll.u32 %s3323_s22, 8 }
  0xa3   : > { %324 = vadd.xlane.f32.xlu1 %v3543_v0  ;;  %322 = vadd.xlane.f32.xlu0 %v3545_v1  ;;  %v3549_v2 = vld [vmem:[%s275_s7 + $0x8] sm:$0xff]  ;;  %v3551_v3 = vld [vmem:[%s275_s7] sm:$0xff]  ;;  %v334_v5 = vmul.f32 %v3545_v1, %v3545_v1  ;;  %v335_v7 = vmul.f32 %v3543_v0, %v3543_v0  ;;  %s1795_s14 = sshll.u32 %s314_s25, 4  ;;  %s4437_s26 = scalar_lea.hbm %s4485_s5, %s1939_s16  ;;  %s4432_s14 = int_to_ptr.vmem [resolvable:$true] %s1795_s14 }
  0xa4   : > { %v340_v4 = vmul.f32 %v3551_v3, %v3551_v3  ;;  %v341_v6 = vmul.f32 %v3549_v2, %v3549_v2  ;;  %v3563_v8 = vld [vmem:[#allocation7] sm:$0xff]  ;;  %v3565_v9 = vld [vmem:[#allocation7 + $0x8] sm:$0xff]  ;;  %v3587_v18 = vld [vmem:[#allocation7 + $0x10] sm:$0xff]  ;;  %s1782_s10 = scalar_lea.sflag [#allocation4], %s3518_s27  ;;  %s3182_s2 = scalar_lea.vmem %s4432_s14, 256 }
  0xa5   : > { %v3567_v10 = vld [vmem:[#allocation8] sm:$0xff]  ;;  %v386_v11 = vand.u32 4294901760, %v3563_v8  ;;  %v389_v12 = vand.u32 4294901760, %v3565_v9  ;;  %v3571_v13 = vld [vmem:[#allocation8 + $0x8] sm:$0xff]  ;;  %v3589_v19 = vld [vmem:[#allocation7 + $0x18] sm:$0xff]  ;;  %v392_v21 = vand.u32 4294901760, %v3587_v18  ;;  %p3183_p2 = scmp.ne.s32.totalorder %s4432_s14, %s3182_s2 }
  0xa6   : > { %v1094_v14 = vand.u32 4294901760, %v3567_v10  ;;  %v1097_v15 = vand.u32 4294901760, %v3571_v13  ;;  %v3591_v20 = vld [vmem:[#allocation8 + $0x10] sm:$0xff]  ;;  %v395_v22 = vand.u32 4294901760, %v3589_v19  ;;  %v3596_v23 = vld [vmem:[#allocation8 + $0x18] sm:$0xff]  ;;  %v3615_v28 = vld [vmem:[#allocation7 + $0x20] sm:$0xff] }
  0xa7   : > { %328 = vadd.xlane.f32.xlu1 %v3549_v2  ;;  %326 = vadd.xlane.f32.xlu0 %v3551_v3  ;;  %v3579_v16 = vpack.c.bf16 %v389_v12, %v386_v11  ;;  %v4511_v24 = vand.u32 4294901760, %v3591_v20  ;;  %v4510_v25 = vand.u32 4294901760, %v3596_v23  ;;  %v3617_v29 = vld [vmem:[#allocation7 + $0x28] sm:$0xff]  ;;  %v3619_v30 = vld [vmem:[#allocation8 + $0x20] sm:$0xff]  ;;  %v4507_v31 = vand.u32 4294901760, %v3615_v28  ;;  %v3643_v38 = vld [vmem:[#allocation7 + $0x30] sm:$0xff] }
  0xa8   : > { %v3585_v17 = vpack.c.bf16 %v1097_v15, %v1094_v14  ;;  %v3607_v26 = vpack.c.bf16 %v395_v22, %v392_v21  ;;  %v4506_v32 = vand.u32 4294901760, %v3617_v29  ;;  %v3624_v33 = vld [vmem:[#allocation8 + $0x28] sm:$0xff]  ;;  %v4505_v34 = vand.u32 4294901760, %v3619_v30  ;;  %v3645_v39 = vld [vmem:[#allocation7 + $0x38] sm:$0xff]  ;;  %v3647_v40 = vld [vmem:[#allocation8 + $0x30] sm:$0xff]  ;;  %p4780_p5 = scmp.ne.s32.totalorder %s4610_s30, 0 }
  0xa9   : > { %4629 = vst [vmem:[#allocation17_spill] sm:$0xff] %v3579_v16  ;;  %2577 = vmatprep.subr.bf16.mxu1 %v3579_v16  ;;  %v3613_v27 = vpack.c.bf16 %v4510_v25, %v4511_v24  ;;  %v4500_v35 = vand.u32 4294901760, %v3624_v33  ;;  %v4499_v41 = vand.u32 4294901760, %v3643_v38  ;;  %v4498_v42 = vand.u32 4294901760, %v3645_v39  ;;  %v3652_v43 = vld [vmem:[#allocation8 + $0x38] sm:$0xff]  ;;  %v3658_v46 = vld [vmem:[#allocation7 + $0x40] sm:$0xff] }
  0xaa   : > { %4630 = vst [vmem:[#allocation18_spill] sm:$0xff] %v3585_v17  ;;  %2769 = vmatprep.subr.bf16.mxu0 %v3585_v17  ;;  %2579 = vmatpush3.bf16.msra.mxu1 %v3579_v16  ;;  %4631 = vst [vmem:[#allocation19_spill] sm:$0xff] %v3607_v26  ;;  %v3635_v36 = vpack.c.bf16 %v4506_v32, %v4507_v31  ;;  %v4497_v44 = vand.u32 4294901760, %v3647_v40  ;;  %v4494_v45 = vand.u32 4294901760, %v3652_v43  ;;  %v3660_v47 = vld [vmem:[#allocation7 + $0x48] sm:$0xff]  ;;  %v3662_v48 = vld [vmem:[#allocation8 + $0x40] sm:$0xff]  ;;  %p3184_p11 = pnand %p3183_p2, %p4780_p5 }
  0xab   : > { %342 = vadd.xlane.f32.xlu1 %v340_v4  ;;  %336 = vadd.xlane.f32.xlu0 %v334_v5  ;;  %4632 = vst [vmem:[#allocation20_spill] sm:$0xff] %v3613_v27  ;;  %v3641_v37 = vpack.c.bf16 %v4500_v35, %v4505_v34  ;;  %v3669_v49 = vpack.c.bf16 %v4498_v42, %v4499_v41  ;;  %v4496_v50 = vand.u32 4294901760, %v3658_v46  ;;  %v4495_v51 = vand.u32 4294901760, %v3660_v47  ;;  %v3673_v52 = vld [vmem:[#allocation8 + $0x48] sm:$0xff]  ;;  %v3676_v54 = vld [vmem:[#allocation7 + $0x50] sm:$0xff]  ;;  %v3678_v55 = vld [vmem:[#allocation7 + $0x58] sm:$0xff] }
  0xac   : > { %2771 = vmatpush3.bf16.msra.mxu0 %v3585_v17  ;;  %2581 = vmatprep.subr.bf16.mxu1 %v3607_v26  ;;  %4633 = vst [vmem:[#allocation21_spill] sm:$0xff] %v3635_v36  ;;  %v4502_v53 = vand.u32 4294901760, %v3662_v48  ;;  %v3684_v56 = vpack.c.bf16 %v4494_v45, %v4497_v44  ;;  %v4501_v57 = vand.u32 4294901760, %v3673_v52  ;;  %v4504_v58 = vand.u32 4294901760, %v3676_v54  ;;  %v3689_v60 = vld [vmem:[#allocation8 + $0x50] sm:$0xff]  ;;  %v3691_v61 = vld [vmem:[#allocation8 + $0x58] sm:$0xff]  ;;  %p3185_p12 = pneg %p3184_p11 }
  0xad   : > { %2773 = vmatprep.subr.bf16.mxu0 %v3613_v27  ;;  %4634 = vst [vmem:[#allocation22_spill] sm:$0xff] %v3641_v37  ;;  %4635 = vst [vmem:[#allocation23_spill] sm:$0xff] %v3669_v49  ;;  %v4503_v59 = vand.u32 4294901760, %v3678_v55  ;;  %v3693_v62 = vld [vmem:[#allocation7 + $0x60] sm:$0xff]  ;;  %v3700_v63 = vpack.c.bf16 %v4495_v51, %v4496_v50  ;;  %v4509_v4 = vand.u32 4294901760, %v3689_v60  ;;  %v4508_v5 = vand.u32 4294901760, %v3691_v61 }
  0xae   : > { %2583 = vmatpush3.bf16.msra.mxu1 %v3607_v26  ;;  %4636 = vst [vmem:[#allocation24_spill] sm:$0xff] %v3684_v56  ;;  %v3708_v45 = vld [vmem:[#allocation8 + $0x68] sm:$0xff]  ;;  %v3716_v51 = vpack.c.bf16 %v4501_v57, %v4502_v53  ;;  %v4515_v44 = vand.u32 4294901760, %v3693_v62  ;;  %v3728_v41 = vld [vmem:[#allocation7 + $0x70] sm:$0xff]  ;;  %v3730_v35 = vld [vmem:[#allocation7 + $0x78] sm:$0xff]  ;;  %s3269_s22 = smov [#allocation10]  }
  0xaf   : > { %344 = vadd.xlane.f32.xlu1 %v341_v6  ;;  %338 = vadd.xlane.f32.xlu0 %v335_v7  ;;  %4637 = vst [vmem:[#allocation25_spill] sm:$0xff] %v3700_v63  ;;  %v3704_v6 = vld [vmem:[#allocation7 + $0x68] sm:$0xff]  ;;  %v3706_v7 = vld [vmem:[#allocation8 + $0x60] sm:$0xff]  ;;  %v3724_v50 = vpack.c.bf16 %v4503_v59, %v4504_v58  ;;  %v3737_v57 = vpack.c.bf16 %v4508_v5, %v4509_v4  ;;  %v4513_v59 = vand.u32 4294901760, %v3708_v45  ;;  %v3741_v58 = vld [vmem:[#allocation8 + $0x70] sm:$0xff]  ;;  %v4522_v32 = vand.u32 4294901760, %v3728_v41 }
  0xb0   : > { %2775 = vmatpush3.bf16.msra.mxu0 %v3613_v27  ;;  %2585 = vmatprep.subr.bf16.mxu1 %v3635_v36  ;;  %4638 = vst [vmem:[#allocation26_spill] sm:$0xff] %v3716_v51  ;;  %v4512_v42 = vand.u32 4294901760, %v3704_v6  ;;  %v4514_v53 = vand.u32 4294901760, %v3706_v7  ;;  %v3743_v34 = vld [vmem:[#allocation8 + $0x78] sm:$0xff]  ;;  %v4516_v31 = vand.u32 4294901760, %v3730_v35  ;;  %v4518_v25 = vand.u32 4294901760, %v3741_v58 }
  0xb1   : > { %2777 = vmatprep.subr.bf16.mxu0 %v3641_v37  ;;  %4639 = vst [vmem:[#allocation27_spill] sm:$0xff] %v3724_v50  ;;  %4640 = vst [vmem:[#allocation28_spill] sm:$0xff] %v3737_v57  ;;  %v4517_v24 = vand.u32 4294901760, %v3743_v34  ;;  %v4695_v27 = vand.u32 4294901760, %v3708_v45  ;;  %s3186_s23 = sshll.u32 %s3269_s22, 4  ;;  %s3187_s23 = int_to_ptr.vmem [resolvable:$false] %s3186_s23 }
  0xb2   : > { %2587 = vmatpush3.bf16.msra.mxu1 %v3635_v36  ;;  %v3754_v5 = vpack.c.bf16 %v4512_v42, %v4515_v44  ;;  %v3761_v4 = vpack.c.bf16 %v4513_v59, %v4514_v53  ;;  %v3770_v42 = vpack.c.bf16 %v4516_v31, %v4522_v32  ;;  %v3777_v59 = vsub.f32 %v3563_v8, %v386_v11  ;;  %s3188_s17 = scalar_lea.vmem %s3187_s23, 512  ;;  %p3189_p6 = scmp.lt.s32.totalorder %s4432_s14, %s3187_s23 }
  0xb3   : > { %2589 = vmatprep.subr.bf16.mxu1 %v3669_v49  ;;  %v3782_v53 = vsub.f32 %v3565_v9, %v389_v12  ;;  %v3787_v44 = vsub.f32 %v3567_v10, %v1094_v14  ;;  %v3794_v31 = vpack.c.bf16 %v4517_v24, %v4518_v25  ;;  %v3799_v8 = vsub.f32 %v3571_v13, %v1097_v15  ;;  %p3190_p13 = scmp.lt.s32.totalorder %s3188_s17, %s3182_s2 }
  0xb4   : > { %2779 = vmatpush3.bf16.msra.mxu0 %v3641_v37  ;;  %4641 = vst [vmem:[#allocation29_spill] sm:$0xff] %v3754_v5  ;;  %4642 = vst [vmem:[#allocation30_spill] sm:$0xff] %v3761_v4  ;;  %v4519_v9 = vand.u32 4294901760, %v3777_v59  ;;  %v3824_v25 = vsub.f32 %v3587_v18, %v392_v21 }
  0xb5   : > { %2781 = vmatprep.subr.bf16.mxu0 %v3684_v56  ;;  %4643 = vst [vmem:[#allocation31_spill] sm:$0xff] %v3770_v42  ;;  %4644 = vst [vmem:[#allocation32_spill] sm:$0xff] %v3794_v31  ;;  %v4520_v11 = vand.u32 4294901760, %v3782_v53  ;;  %v4521_v10 = vand.u32 4294901760, %v3787_v44  ;;  %v4527_v12 = vand.u32 4294901760, %v3799_v8  ;;  %v4109_v16 = vpack.c.bf16 %v3782_v53, %v3777_v59  ;;  %p3191_p9 = por %p3190_p13, %p3189_p6 }
  0xb6   : > { %2591 = vmatpush3.bf16.msra.mxu1 %v3669_v49  ;;  %v490_v14 = vsub.f32 %v3777_v59, %v4519_v9  ;;  %v3829_v9 = vsub.f32 %v3589_v19, %v395_v22  ;;  %v4532_v21 = vand.u32 4294901760, %v3824_v25 }
  0xb7   : > { %2593 = vmatprep.subr.bf16.mxu1 %v3700_v63  ;;  %v497_v13 = vsub.f32 %v3782_v53, %v4520_v11  ;;  %v1198_v15 = vsub.f32 %v3787_v44, %v4521_v10  ;;  %v1205_v24 = vsub.f32 %v3799_v8, %v4527_v12  ;;  %v4646_v11 = vand.u32 4294901760, %v3591_v20  ;;  %p3192_p10 = pnand %p3191_p9, %p3185_p12 }
  0xb8   : > { %2783 = vmatpush3.bf16.msra.mxu0 %v3684_v56  ;;  %4645 = vst [vmem:[#allocation33_spill] sm:$0xff] %v3829_v9  ;;  %v491_v32 = vand.u32 4294901760, %v490_v14  ;;  %v4648_v12 = vand.u32 4294901760, %v3596_v23  ;;  %v4530_v19 = vand.u32 4294901760, %v3829_v9  ;;  %v4650_v14 = vand.u32 4294901760, %v3615_v28 }
  0xb9   : > { %2785 = vmatprep.subr.bf16.mxu0 %v3716_v51  ;;  %v3834_v10 = vsub.f32 %v3591_v20, %v4646_v11  ;;  %v1206_v18 = vand.u32 4294901760, %v1205_v24 }
  0xba   : > { %2595 = vmatpush3.bf16.msra.mxu1 %v3700_v63 }
  0xbb   : > { %2597 = vmatprep.subr.bf16.mxu1 %v3724_v50  ;;  %4647 = vst [vmem:[#allocation34_spill] sm:$0xff] %v3834_v10  ;;  %v4531_v22 = vand.u32 4294901760, %v3834_v10 }
  0xbc   : > { %2787 = vmatpush3.bf16.msra.mxu0 %v3716_v51  ;;  %v4663_v51 = vand.u32 4294901760, %v3647_v40 }
  0xbd   : > { %2789 = vmatprep.subr.bf16.mxu0 %v3737_v57 }
  0xbe   : > { %2599 = vmatpush3.bf16.msra.mxu1 %v3724_v50 }
  0xbf   : > { %2601 = vmatprep.subr.bf16.mxu1 %v3754_v5 }
  0xc0   : > { %2791 = vmatpush3.bf16.msra.mxu0 %v3737_v57  ;;  %v3839_v57 = vsub.f32 %v3596_v23, %v4648_v12  ;;  %v3852_v23 = vsub.f32 %v3615_v28, %v4650_v14  ;;  %v4652_v12 = vand.u32 4294901760, %v3617_v29  ;;  %v1212_v28 = vsub.f32 %v3834_v10, %v4531_v22 }
  0xc1   : > { %2793 = vmatprep.subr.bf16.mxu0 %v3761_v4 }
  0xc2   : > { %2603 = vmatpush3.bf16.msra.mxu1 %v3754_v5  ;;  %v1199_v5 = vand.u32 4294901760, %v1198_v15  ;;  %4649 = vst [vmem:[#allocation35_spill] sm:$0xff] %v3839_v57  ;;  %v4535_v11 = vand.u32 4294901760, %v3839_v57  ;;  %4651 = vst [vmem:[#allocation36_spill] sm:$0xff] %v3852_v23  ;;  %v3857_v24 = vsub.f32 %v3617_v29, %v4652_v12  ;;  %v504_v15 = vsub.f32 %v3824_v25, %v4532_v21 }
  0xc3   : > { %2605 = vmatprep.subr.bf16.mxu1 %v3770_v42  ;;  %v1213_v22 = vand.u32 4294901760, %v1212_v28  ;;  %v4656_v21 = vand.u32 4294901760, %v3624_v33 }
  0xc4   : > { %2795 = vmatpush3.bf16.msra.mxu0 %v3761_v4  ;;  %v498_v4 = vand.u32 4294901760, %v497_v13  ;;  %4653 = vst [vmem:[#allocation37_spill] sm:$0xff] %v3857_v24  ;;  %v3859_v13 = vpack.c.bf16 %v1206_v18, %v1199_v5  ;;  %v1219_v29 = vsub.f32 %v3839_v57, %v4535_v11  ;;  %v4654_v18 = vand.u32 4294901760, %v3619_v30 }
  0xc5   : > { %2797 = vmatprep.subr.bf16.mxu0 %v3794_v31  ;;  %v505_v12 = vand.u32 4294901760, %v504_v15 }
  0xc6   : > { %2607 = vmatpush3.bf16.msra.mxu1 %v3770_v42  ;;  %v3846_v20 = vpack.c.bf16 %v498_v4, %v491_v32  ;;  %v511_v32 = vsub.f32 %v3829_v9, %v4530_v19  ;;  %v4540_v4 = vand.u32 4294901760, %v3852_v23  ;;  %v3879_v14 = vsub.f32 %v3619_v30, %v4654_v18 }
  0xc7   : > { %v1220_v11 = vand.u32 4294901760, %v1219_v29  ;;  %v4658_v42 = vand.u32 4294901760, %v3857_v24 }
  0xc8   : > { %2799 = vmatpush3.bf16.msra.mxu0 %v3794_v31  ;;  %2609 = vmatprep.subr.bf16.mxu1 %v3846_v20  ;;  %4655 = vst [vmem:[#allocation38_spill] sm:$0xff] %v3879_v14  ;;  %v512_v19 = vand.u32 4294901760, %v511_v32  ;;  %v3885_v31 = vsub.f32 %v3624_v33, %v4656_v21  ;;  %v518_v5 = vsub.f32 %v3852_v23, %v4540_v4  ;;  %v4544_v18 = vand.u32 4294901760, %v3879_v14 }
  0xc9   : > { %2801 = vmatprep.subr.bf16.mxu0 %v3859_v13  ;;  %v525_v30 = vsub.f32 %v3857_v24, %v4658_v42  ;;  %v4659_v32 = vand.u32 4294901760, %v3643_v38  ;;  %v4661_v21 = vand.u32 4294901760, %v3645_v39  ;;  %v3907_v29 = vpack.c.bf16 %v1220_v11, %v1213_v22 }
  0xca   : > { %4657 = vst [vmem:[#allocation39_spill] sm:$0xff] %v3885_v31  ;;  %v3894_v50 = vpack.c.bf16 %v512_v19, %v505_v12  ;;  %v4543_v15 = vand.u32 4294901760, %v3885_v31  ;;  %v519_v4 = vand.u32 4294901760, %v518_v5  ;;  %v1226_v19 = vsub.f32 %v3879_v14, %v4544_v18 }
  0xcb   : > { %v3900_v33 = vsub.f32 %v3643_v38, %v4659_v32  ;;  %v3905_v28 = vsub.f32 %v3645_v39, %v4661_v21  ;;  %v526_v42 = vand.u32 4294901760, %v525_v30  ;;  %v3920_v39 = vsub.f32 %v3647_v40, %v4663_v51 }
  0xcc   : > { %v1233_v12 = vsub.f32 %v3885_v31, %v4543_v15  ;;  %v1227_v11 = vand.u32 4294901760, %v1226_v19  ;;  %v4665_v5 = vand.u32 4294901760, %v3652_v43  ;;  %v4667_v21 = vand.u32 4294901760, %v3658_v46 }
  0xcd   : > { %4660 = vst [vmem:[#allocation40_spill] sm:$0xff] %v3900_v33  ;;  %4662 = vst [vmem:[#allocation41_spill] sm:$0xff] %v3905_v28  ;;  %v4545_v38 = vand.u32 4294901760, %v3900_v33  ;;  %v3922_v22 = vpack.c.bf16 %v526_v42, %v519_v4  ;;  %v4669_v40 = vand.u32 4294901760, %v3905_v28  ;;  %v4550_v4 = vand.u32 4294901760, %v3920_v39 }
  0xce   : > { %4664 = vst [vmem:[#allocation42_spill] sm:$0xff] %v3920_v39  ;;  %v3927_v30 = vsub.f32 %v3652_v43, %v4665_v5  ;;  %v3932_v15 = vsub.f32 %v3658_v46, %v4667_v21  ;;  %v1234_v18 = vand.u32 4294901760, %v1233_v12  ;;  %v4670_v19 = vand.u32 4294901760, %v3660_v47 }
  0xcf   : > { %v532_v32 = vsub.f32 %v3900_v33, %v4545_v38  ;;  %v539_v51 = vsub.f32 %v3905_v28, %v4669_v40  ;;  %v4672_v12 = vand.u32 4294901760, %v3662_v48  ;;  %v1240_v42 = vsub.f32 %v3920_v39, %v4550_v4 }
  0xd0   : > { %4666 = vst [vmem:[#allocation43_spill] sm:$0xff] %v3927_v30  ;;  %4668 = vst [vmem:[#allocation44_spill] sm:$0xff] %v3932_v15  ;;  %v3946_v46 = vsub.f32 %v3660_v47, %v4670_v19  ;;  %v3953_v21 = vpack.c.bf16 %v1234_v18, %v1227_v11  ;;  %v4674_v43 = vand.u32 4294901760, %v3927_v30  ;;  %v4675_v47 = vand.u32 4294901760, %v3932_v15 }
  0xd1   : > { %v3951_v5 = vsub.f32 %v3662_v48, %v4672_v12  ;;  %v533_v38 = vand.u32 4294901760, %v532_v32  ;;  %v540_v40 = vand.u32 4294901760, %v539_v51  ;;  %v1241_v32 = vand.u32 4294901760, %v1240_v42 }
  0xd2   : > { %4671 = vst [vmem:[#allocation45_spill] sm:$0xff] %v3946_v46  ;;  %v1247_v63 = vsub.f32 %v3927_v30, %v4674_v43  ;;  %v546_v19 = vsub.f32 %v3932_v15, %v4675_v47  ;;  %v4553_v56 = vand.u32 4294901760, %v3946_v46  ;;  %v4676_v11 = vand.u32 4294901760, %v3673_v52 }
  0xd3   : > { %4673 = vst [vmem:[#allocation46_spill] sm:$0xff] %v3951_v5  ;;  %v4554_v48 = vand.u32 4294901760, %v3951_v5  ;;  %v3966_v18 = vpack.c.bf16 %v540_v40, %v533_v38  ;;  %v4678_v12 = vand.u32 4294901760, %v3676_v54  ;;  %v4680_v40 = vand.u32 4294901760, %v3678_v55 }
  0xd4   : > { %v3971_v51 = vsub.f32 %v3673_v52, %v4676_v11  ;;  %v1248_v4 = vand.u32 4294901760, %v1247_v63  ;;  %v547_v49 = vand.u32 4294901760, %v546_v19  ;;  %v553_v47 = vsub.f32 %v3946_v46, %v4553_v56 }
  0xd5   : > { %v3976_v43 = vsub.f32 %v3676_v54, %v4678_v12  ;;  %v1254_v38 = vsub.f32 %v3951_v5, %v4554_v48  ;;  %v3989_v11 = vsub.f32 %v3678_v55, %v4680_v40  ;;  %v4682_v54 = vand.u32 4294901760, %v3689_v60 }
  0xd6   : > { %4677 = vst [vmem:[#allocation47_spill] sm:$0xff] %v3971_v51  ;;  %v3996_v19 = vpack.c.bf16 %v1248_v4, %v1241_v32  ;;  %v554_v12 = vand.u32 4294901760, %v553_v47  ;;  %v4684_v48 = vand.u32 4294901760, %v3691_v61  ;;  %v4686_v52 = vand.u32 4294901760, %v3971_v51 }
  0xd7   : > { %4679 = vst [vmem:[#allocation48_spill] sm:$0xff] %v3976_v43  ;;  %4681 = vst [vmem:[#allocation49_spill] sm:$0xff] %v3989_v11  ;;  %v3994_v63 = vsub.f32 %v3689_v60, %v4682_v54  ;;  %v1255_v56 = vand.u32 4294901760, %v1254_v38  ;;  %v4687_v55 = vand.u32 4294901760, %v3976_v43  ;;  %v4559_v60 = vand.u32 4294901760, %v3989_v11 }
  0xd8   : > { %v4001_v42 = vsub.f32 %v3691_v61, %v4684_v48  ;;  %v1261_v37 = vsub.f32 %v3971_v51, %v4686_v52  ;;  %v4011_v32 = vpack.c.bf16 %v554_v12, %v547_v49  ;;  %v4688_v38 = vand.u32 4294901760, %v3693_v62 }
  0xd9   : > { %4683 = vst [vmem:[#allocation50_spill] sm:$0xff] %v3994_v63  ;;  %v560_v40 = vsub.f32 %v3976_v43, %v4687_v55  ;;  %v4690_v48 = vand.u32 4294901760, %v3704_v6  ;;  %v567_v4 = vsub.f32 %v3989_v11, %v4559_v60  ;;  %v4692_v49 = vand.u32 4294901760, %v3994_v63 }
  0xda   : > { %4685 = vst [vmem:[#allocation51_spill] sm:$0xff] %v4001_v42  ;;  %v4564_v47 = vand.u32 4294901760, %v4001_v42  ;;  %v4017_v61 = vsub.f32 %v3693_v62, %v4688_v38  ;;  %v1262_v54 = vand.u32 4294901760, %v1261_v37 }
  0xdb   : > { %v4022_v52 = vsub.f32 %v3704_v6, %v4690_v48  ;;  %v561_v55 = vand.u32 4294901760, %v560_v40  ;;  %v1268_v12 = vsub.f32 %v3994_v63, %v4692_v49  ;;  %v4693_v6 = vand.u32 4294901760, %v3706_v7 }
  0xdc   : > { %4689 = vst [vmem:[#allocation52_spill] sm:$0xff] %v4017_v61  ;;  %v1275_v62 = vsub.f32 %v4001_v42, %v4564_v47  ;;  %v4568_v38 = vand.u32 4294901760, %v4017_v61  ;;  %v4040_v40 = vpack.c.bf16 %v1262_v54, %v1255_v56  ;;  %v568_v48 = vand.u32 4294901760, %v567_v4 }
  0xdd   : > { %4691 = vst [vmem:[#allocation53_spill] sm:$0xff] %v4022_v52  ;;  %v4567_v36 = vand.u32 4294901760, %v4022_v52  ;;  %v4038_v37 = vsub.f32 %v3706_v7, %v4693_v6  ;;  %v1269_v60 = vand.u32 4294901760, %v1268_v12  ;;  %v4045_v49 = vsub.f32 %v3708_v45, %v4695_v27 }
  0xde   : > { %v1276_v26 = vand.u32 4294901760, %v1275_v62  ;;  %v574_v47 = vsub.f32 %v4017_v61, %v4568_v38  ;;  %v4054_v56 = vpack.c.bf16 %v568_v48, %v561_v55  ;;  %v4697_v54 = vand.u32 4294901760, %v3728_v41 }
  0xdf   : > { %4694 = vst [vmem:[#allocation54_spill] sm:$0xff] %v4038_v37  ;;  %4696 = vst [vmem:[#allocation55_spill] sm:$0xff] %v4045_v49  ;;  %v581_v17 = vsub.f32 %v4022_v52, %v4567_v36  ;;  %v4570_v7 = vand.u32 4294901760, %v4038_v37  ;;  %v4569_v4 = vand.u32 4294901760, %v4045_v49  ;;  %v4699_v45 = vand.u32 4294901760, %v3730_v35 }
  0xe0   : > { %v4060_v27 = vsub.f32 %v3728_v41, %v4697_v54  ;;  %v4067_v62 = vpack.c.bf16 %v1276_v26, %v1269_v60  ;;  %v575_v6 = vand.u32 4294901760, %v574_v47  ;;  %v4701_v38 = vand.u32 4294901760, %v3741_v58 }
  0xe1   : > { %v4065_v12 = vsub.f32 %v3730_v35, %v4699_v45  ;;  %v582_v36 = vand.u32 4294901760, %v581_v17  ;;  %v1282_v55 = vsub.f32 %v4038_v37, %v4570_v7  ;;  %v1289_v48 = vsub.f32 %v4045_v49, %v4569_v4 }
  0xe2   : > { %4698 = vst [vmem:[#allocation56_spill] sm:$0xff] %v4060_v27  ;;  %v4571_v41 = vand.u32 4294901760, %v4060_v27  ;;  %v4080_v35 = vsub.f32 %v3741_v58, %v4701_v38  ;;  %v4703_v60 = vand.u32 4294901760, %v3743_v34 }
  0xe3   : > { %4700 = vst [vmem:[#allocation57_spill] sm:$0xff] %v4065_v12  ;;  %v4572_v54 = vand.u32 4294901760, %v4065_v12  ;;  %v4082_v26 = vpack.c.bf16 %v582_v36, %v575_v6  ;;  %v1283_v17 = vand.u32 4294901760, %v1282_v55  ;;  %v1290_v45 = vand.u32 4294901760, %v1289_v48 }
  0xe4   : > { %4702 = vst [vmem:[#allocation58_spill] sm:$0xff] %v4080_v35  ;;  %v4087_v47 = vsub.f32 %v3743_v34, %v4703_v60  ;;  %v588_v4 = vsub.f32 %v4060_v27, %v4571_v41  ;;  %v4576_v58 = vand.u32 4294901760, %v4080_v35 }
  0xe5   : > { %v595_v7 = vsub.f32 %v4065_v12, %v4572_v54  ;;  %v4097_v38 = vpack.c.bf16 %v1290_v45, %v1283_v17  ;;  %v4119_v17 = vpack.c.bf16 %v3829_v9, %v3824_v25  ;;  %v4123_v45 = vpack.c.bf16 %v3839_v57, %v3834_v10 }
  0xe6   : > { %4704 = vst [vmem:[#allocation59_spill] sm:$0xff] %v4087_v47  ;;  %v4575_v36 = vand.u32 4294901760, %v4087_v47  ;;  %v589_v6 = vand.u32 4294901760, %v588_v4  ;;  %v1296_v34 = vsub.f32 %v4080_v35, %v4576_v58  ;;  %v4113_v4 = vpack.c.bf16 %v3799_v8, %v3787_v44 }
  0xe7   : > { %v596_v55 = vand.u32 4294901760, %v595_v7  ;;  %v4155_v58 = vpack.c.bf16 %v4001_v42, %v3994_v63 }
  0xe8   : > { %v1303_v48 = vsub.f32 %v4087_v47, %v4575_v36  ;;  %v1297_v41 = vand.u32 4294901760, %v1296_v34  ;;  %v4143_v34 = vpack.c.bf16 %v3946_v46, %v3932_v15  ;;  %v4151_v36 = vpack.c.bf16 %v3989_v11, %v3976_v43 }
  0xe9   : > { %v4105_v60 = vpack.c.bf16 %v596_v55, %v589_v6  ;;  %v4127_v6 = vpack.c.bf16 %v3857_v24, %v3852_v23  ;;  %v4131_v55 = vpack.c.bf16 %v3885_v31, %v3879_v14  ;;  %v4163_v46 = vpack.c.bf16 %v4045_v49, %v4038_v37 }
  0xea   : > { %v1304_v54 = vand.u32 4294901760, %v1303_v48  ;;  %v4147_v48 = vpack.c.bf16 %v3971_v51, %v3951_v5  ;;  %v4167_v51 = vpack.c.bf16 %v4065_v12, %v4060_v27  ;;  %v4171_v11 = vpack.c.bf16 %v4087_v47, %v4080_v35 }
  0xec   : > { %v4115_v7 = vpack.c.bf16 %v1304_v54, %v1297_v41  ;;  %v4135_v41 = vpack.c.bf16 %v3905_v28, %v3900_v33  ;;  %v4139_v54 = vpack.c.bf16 %v3927_v30, %v3920_v39  ;;  %v4159_v30 = vpack.c.bf16 %v4022_v52, %v4017_v61 }
 0x130   : > { %v325_v43 = vpop.xlane.xlu1 %324  ;;  %v323_v5 = vpop.xlane.xlu0 %322 }
 0x134   : > { %v329_v42 = vpop.xlane.xlu1 %328  ;;  %v327_v63 = vpop.xlane.xlu0 %326 }
 0x135   : > { %v330_v15 = vadd.f32 %v327_v63, %v323_v5  ;;  %v331_v39 = vadd.f32 %v329_v42, %v325_v43 }
 0x137   : > { %v332_v52 = vmul.f32 0.00390625, %v330_v15  ;;  %v333_v49 = vmul.f32 0.00390625, %v331_v39 }
 0x138   : > { %v343_v61 = vpop.xlane.xlu1 %342  ;;  %v337_v28 = vpop.xlane.xlu0 %336 }
 0x139   : > { %v346_v33 = vadd.f32 %v343_v61, %v337_v28  ;;  %v350_v37 = vmul.f32 %v332_v52, %v332_v52  ;;  %v351_v23 = vmul.f32 %v333_v49, %v333_v49  ;;  %v360_v15 = vsub.f32 %v3545_v1, %v332_v52 }
 0x13a   : > { %v364_v28 = vsub.f32 %v3551_v3, %v332_v52  ;;  %v361_v42 = vsub.f32 %v3543_v0, %v333_v49 }
 0x13b   : > { %v348_v31 = vmul.f32 0.00390625, %v346_v33 }
 0x13c   : > { %v345_v14 = vpop.xlane.xlu1 %344  ;;  %v339_v12 = vpop.xlane.xlu0 %338 }
 0x13d   : > { %v347_v27 = vadd.f32 %v345_v14, %v339_v12  ;;  %v352_v24 = vsub.f32 %v348_v31, %v350_v37  ;;  %v365_v31 = vsub.f32 %v3549_v2, %v333_v49 }
 0x13f   : > { %v349_v47 = vmul.f32 0.00390625, %v347_v27  ;;  %v354_v35 = vmax.f32 %v352_v24, 0.0 }
 0x141   : > { %v353_v57 = vsub.f32 %v349_v47, %v351_v23  ;;  %v356_v10 = vadd.f32 1e-05, %v354_v35 }
 0x143   : > { %v355_v9 = vmax.f32 %v353_v57, 0.0  ;;  %3061 = vrsqrt.f32 %v356_v10 }
 0x145   : > { %v357_v5 = vadd.f32 1e-05, %v355_v9 }
 0x147   : > { %3063 = vrsqrt.f32 %v357_v5 }
 0x14d   : > { %v3062_v39 = vpop.eup %3061 }
 0x14e   : > { %v362_v43 = vmul.f32 %v3062_v39, %v360_v15  ;;  %v366_v33 = vmul.f32 %v3062_v39, %v364_v28 }
 0x150   : > { %v4177_v63 = vand.u32 4294901760, %v362_v43  ;;  %v4179_v23 = vand.u32 4294901760, %v366_v33 }
 0x151   : > { %v3064_v14 = vpop.eup %3063 }
 0x152   : > { %v363_v57 = vmul.f32 %v3064_v14, %v361_v42  ;;  %v367_v10 = vmul.f32 %v3064_v14, %v365_v31  ;;  %v4182_v9 = vsub.f32 %v362_v43, %v4177_v63  ;;  %v4185_v1 = vsub.f32 %v366_v33, %v4179_v23  ;;  %v4738_v33 = vld [vmem:[#allocation39_spill] sm:$0xff]  ;;  %v4740_v14 = vld [vmem:[#allocation40_spill] sm:$0xff] }
 0x153   : > { %v4739_v42 = vand.u32 4294901760, %v4738_v33 }
 0x154   : > { %v4187_v3 = vand.u32 4294901760, %v363_v57  ;;  %v4189_v24 = vand.u32 4294901760, %v367_v10  ;;  %v468_v0 = vand.u32 4294901760, %v4182_v9  ;;  %v1176_v2 = vand.u32 4294901760, %v4185_v1 }
 0x156   : > { %v4194_v61 = vsub.f32 %v363_v57, %v4187_v3  ;;  %v4197_v52 = vsub.f32 %v367_v10, %v4189_v24  ;;  %v469_v37 = vsub.f32 %v4182_v9, %v468_v0  ;;  %v1177_v49 = vsub.f32 %v4185_v1, %v1176_v2  ;;  %v4742_v10 = vld [vmem:[#allocation41_spill] sm:$0xff] }
 0x157   : > { %v4741_v57 = vand.u32 4294901760, %v4740_v14 }
 0x158   : > { %v478_v27 = vand.u32 4294901760, %v4194_v61  ;;  %v1186_v12 = vand.u32 4294901760, %v4197_v52  ;;  %v470_v35 = vand.u32 4294901760, %v469_v37  ;;  %v1178_v47 = vand.u32 4294901760, %v1177_v49  ;;  %v4748_v49 = vld [vmem:[#allocation44_spill] sm:$0xff] }
 0x15a   : > { %v479_v5 = vsub.f32 %v4194_v61, %v478_v27  ;;  %v1187_v15 = vsub.f32 %v4197_v52, %v1186_v12  ;;  %2188 = vmatprep.mubr.f32.mxu1 %v470_v35  ;;  %2398 = vmatprep.mubr.f32.mxu0 %v1178_v47 }
 0x15c   : > { %v480_v28 = vand.u32 4294901760, %v479_v5  ;;  %v1188_v39 = vand.u32 4294901760, %v1187_v15  ;;  %v4752_v5 = vld [vmem:[#allocation46_spill] sm:$0xff] }
 0x15d   : > { %v4753_v15 = vand.u32 4294901760, %v4752_v5 }
 0x15e   : > { %2189 = vmatmul.mubr.f32.vlgmr.msra.gmra.mrb[0].mxu1 %v480_v28  ;;  %2399 = vmatmul.mubr.f32.vlgmr.msra.gmra.mrb[0].mxu0 %v1188_v39  ;;  %v4754_v28 = vld [vmem:[#allocation47_spill] sm:$0xff] }
 0x15f   : > { %2611 = vmatpush3.bf16.msra.mxu1 %v3846_v20  ;;  %2803 = vmatpush3.bf16.msra.mxu0 %v3859_v13  ;;  %v4707_v20 = vld [vmem:[#allocation19_spill] sm:$0xff]  ;;  %v4708_v13 = vld [vmem:[#allocation20_spill] sm:$0xff]  ;;  %v4755_v39 = vand.u32 4294901760, %v4754_v28 }
 0x160   : > { %2223 = vmatprep.mubr.f32.mxu1 %v4177_v63  ;;  %2433 = vmatprep.mubr.f32.mxu0 %v4179_v23 }
 0x161   : > { %2613 = vmatprep.subr.bf16.mxu1 %v3894_v50  ;;  %2805 = vmatprep.subr.bf16.mxu0 %v3907_v29 }
 0x163   : > { %2615 = vmatpush3.bf16.msra.mxu1 %v3894_v50  ;;  %2807 = vmatpush3.bf16.msra.mxu0 %v3907_v29  ;;  %v4706_v50 = vld [vmem:[#allocation18_spill] sm:$0xff]  ;;  %v4709_v29 = vld [vmem:[#allocation21_spill] sm:$0xff] }
 0x164   : > { %2617 = vmatprep.subr.bf16.mxu1 %v3922_v22  ;;  %2809 = vmatprep.subr.bf16.mxu0 %v3953_v21 }
 0x167   : > { %2619 = vmatpush3.bf16.msra.mxu1 %v3922_v22  ;;  %2811 = vmatpush3.bf16.msra.mxu0 %v3953_v21  ;;  %v4710_v22 = vld [vmem:[#allocation22_spill] sm:$0xff]  ;;  %v4713_v21 = vld [vmem:[#allocation25_spill] sm:$0xff] }
 0x168   : > { %2621 = vmatprep.subr.bf16.mxu1 %v3966_v18  ;;  %2813 = vmatprep.subr.bf16.mxu0 %v3996_v19 }
 0x16b   : > { %2623 = vmatpush3.bf16.msra.mxu1 %v3966_v18  ;;  %2815 = vmatpush3.bf16.msra.mxu0 %v3996_v19  ;;  %v4714_v18 = vld [vmem:[#allocation26_spill] sm:$0xff]  ;;  %v4717_v19 = vld [vmem:[#allocation29_spill] sm:$0xff] }
 0x16c   : > { %2625 = vmatprep.subr.bf16.mxu1 %v4011_v32  ;;  %2817 = vmatprep.subr.bf16.mxu0 %v4040_v40 }
 0x16f   : > { %2627 = vmatpush3.bf16.msra.mxu1 %v4011_v32  ;;  %2819 = vmatpush3.bf16.msra.mxu0 %v4040_v40  ;;  %v4718_v32 = vld [vmem:[#allocation30_spill] sm:$0xff]  ;;  %v4719_v40 = vld [vmem:[#allocation31_spill] sm:$0xff] }
 0x170   : > { %2629 = vmatprep.subr.bf16.mxu1 %v4054_v56  ;;  %2821 = vmatprep.subr.bf16.mxu0 %v4067_v62 }
 0x173   : > { %2631 = vmatpush3.bf16.msra.mxu1 %v4054_v56  ;;  %2823 = vmatpush3.bf16.msra.mxu0 %v4067_v62  ;;  %v4720_v56 = vand.u32 4294901760, %v3777_v59  ;;  %v4721_v62 = vand.u32 4294901760, %v3782_v53  ;;  %v4728_v53 = vld [vmem:[#allocation34_spill] sm:$0xff] }
 0x174   : > { %2633 = vmatprep.subr.bf16.mxu1 %v4082_v26  ;;  %2825 = vmatprep.subr.bf16.mxu0 %v4097_v38 }
 0x177   : > { %2635 = vmatpush3.bf16.msra.mxu1 %v4082_v26  ;;  %2827 = vmatpush3.bf16.msra.mxu0 %v4097_v38  ;;  %v2704_v26 = vpack.c.bf16 %v4721_v62, %v4720_v56  ;;  %v4724_v38 = vand.u32 4294901760, %v3799_v8  ;;  %v2912_v56 = vpack.c.bf16 %v4755_v39, %v4753_v15  ;;  %v4756_v62 = vld [vmem:[#allocation48_spill] sm:$0xff] }
 0x178   : > { %2637 = vmatprep.subr.bf16.mxu1 %v4105_v60  ;;  %2829 = vmatprep.subr.bf16.mxu0 %v4115_v7 }
 0x17b   : > { %2639 = vmatpush3.bf16.msra.mxu1 %v4105_v60  ;;  %2831 = vmatpush3.bf16.msra.mxu0 %v4115_v7  ;;  %v4726_v7 = vld [vmem:[#allocation33_spill] sm:$0xff] }
 0x17c   : > { %2641 = vmatprep.subr.bf16.mxu1 %v4109_v16  ;;  %2833 = vmatprep.subr.bf16.mxu0 %v4113_v4  ;;  %v4727_v59 = vand.u32 4294901760, %v4726_v7 }
 0x17e   : > { %2224 = vmatmul.mubr.f32.vlgmr.msra.gmra.mrb[0].mxu1 %v4187_v3  ;;  %2434 = vmatmul.mubr.f32.vlgmr.msra.gmra.mrb[0].mxu0 %v4189_v24 }
 0x17f   : > { %2643 = vmatpush3.bf16.msra.mxu1 %v4109_v16  ;;  %2258 = vmatprep.mubr.f32.mxu1 %v4182_v9  ;;  %v4705_v16 = vld [vmem:[#allocation17_spill] sm:$0xff]  ;;  %v4743_v9 = vand.u32 4294901760, %v4742_v10 }
 0x180   : > { %2835 = vmatpush3.bf16.msra.mxu0 %v4113_v4  ;;  %2468 = vmatprep.mubr.f32.mxu0 %v4185_v1  ;;  %v4725_v4 = vand.u32 4294901760, %v3824_v25 }
 0x181   : > { %2645 = vmatprep.subr.bf16.mxu1 %v4119_v17  ;;  %2837 = vmatprep.subr.bf16.mxu0 %v4123_v45  ;;  %v2716_v1 = vpack.c.bf16 %v4743_v9, %v4741_v57  ;;  %v4776_v57 = vld [vmem:[#allocation58_spill] sm:$0xff]  ;;  %v4778_v9 = vld [vmem:[#allocation59_spill] sm:$0xff] }
 0x182   : > { %v4777_v10 = vand.u32 4294901760, %v4776_v57 }
 0x183   : > { %2647 = vmatpush3.bf16.msra.mxu1 %v4119_v17  ;;  %v2708_v17 = vpack.c.bf16 %v4727_v59, %v4725_v4  ;;  %v4760_v4 = vld [vmem:[#allocation50_spill] sm:$0xff]  ;;  %v4762_v59 = vld [vmem:[#allocation51_spill] sm:$0xff] }
 0x184   : > { %2839 = vmatpush3.bf16.msra.mxu0 %v4123_v45  ;;  %2649 = vmatprep.subr.bf16.mxu1 %v4127_v6  ;;  %v4729_v45 = vand.u32 4294901760, %v4728_v53  ;;  %v4761_v7 = vand.u32 4294901760, %v4760_v4 }
 0x185   : > { %2841 = vmatprep.subr.bf16.mxu0 %v4131_v55 }
 0x187   : > { %2651 = vmatpush3.bf16.msra.mxu1 %v4127_v6 }
 0x188   : > { %2843 = vmatpush3.bf16.msra.mxu0 %v4131_v55  ;;  %2653 = vmatprep.subr.bf16.mxu1 %v4135_v41  ;;  %v4732_v55 = vld [vmem:[#allocation36_spill] sm:$0xff] }
 0x189   : > { %2845 = vmatprep.subr.bf16.mxu0 %v4139_v54  ;;  %v4733_v25 = vand.u32 4294901760, %v4732_v55 }
 0x18b   : > { %2655 = vmatpush3.bf16.msra.mxu1 %v4135_v41  ;;  %v4734_v41 = vld [vmem:[#allocation37_spill] sm:$0xff] }
 0x18c   : > { %2847 = vmatpush3.bf16.msra.mxu0 %v4139_v54  ;;  %2657 = vmatprep.subr.bf16.mxu1 %v4143_v34  ;;  %v4735_v54 = vand.u32 4294901760, %v4734_v41 }
 0x18d   : > { %2849 = vmatprep.subr.bf16.mxu0 %v4147_v48 }
 0x18f   : > { %2659 = vmatpush3.bf16.msra.mxu1 %v4143_v34  ;;  %v2712_v34 = vpack.c.bf16 %v4735_v54, %v4733_v25  ;;  %v4768_v25 = vld [vmem:[#allocation54_spill] sm:$0xff]  ;;  %v4770_v54 = vld [vmem:[#allocation55_spill] sm:$0xff] }
 0x190   : > { %2851 = vmatpush3.bf16.msra.mxu0 %v4147_v48  ;;  %2661 = vmatprep.subr.bf16.mxu1 %v4151_v36  ;;  %v4736_v48 = vld [vmem:[#allocation38_spill] sm:$0xff]  ;;  %v4769_v41 = vand.u32 4294901760, %v4768_v25 }
 0x191   : > { %2853 = vmatprep.subr.bf16.mxu0 %v4155_v58  ;;  %v4737_v43 = vand.u32 4294901760, %v4736_v48 }
 0x193   : > { %2663 = vmatpush3.bf16.msra.mxu1 %v4151_v36  ;;  %v4723_v36 = vand.u32 4294901760, %v3787_v44  ;;  %v4730_v44 = vld [vmem:[#allocation35_spill] sm:$0xff]  ;;  %v2904_v31 = vpack.c.bf16 %v4739_v42, %v4737_v43  ;;  %v4772_v43 = vld [vmem:[#allocation56_spill] sm:$0xff]  ;;  %v4774_v42 = vld [vmem:[#allocation57_spill] sm:$0xff] }
 0x194   : > { %2855 = vmatpush3.bf16.msra.mxu0 %v4155_v58  ;;  %2665 = vmatprep.subr.bf16.mxu1 %v4159_v30  ;;  %v4722_v58 = vld [vmem:[#allocation32_spill] sm:$0xff]  ;;  %v4731_v6 = vand.u32 4294901760, %v4730_v44  ;;  %v4773_v33 = vand.u32 4294901760, %v4772_v43 }
 0x195   : > { %2857 = vmatprep.subr.bf16.mxu0 %v4163_v46  ;;  %v2896_v60 = vpack.c.bf16 %v4724_v38, %v4723_v36  ;;  %v4758_v36 = vld [vmem:[#allocation49_spill] sm:$0xff] }
 0x196   : > { %v2900_v8 = vpack.c.bf16 %v4731_v6, %v4729_v45  ;;  %v4759_v38 = vand.u32 4294901760, %v4758_v36  ;;  %v4764_v45 = vld [vmem:[#allocation52_spill] sm:$0xff]  ;;  %v4766_v6 = vld [vmem:[#allocation53_spill] sm:$0xff] }
 0x197   : > { %2667 = vmatpush3.bf16.msra.mxu1 %v4159_v30  ;;  %v4711_v30 = vld [vmem:[#allocation23_spill] sm:$0xff]  ;;  %v4765_v44 = vand.u32 4294901760, %v4764_v45 }
 0x198   : > { %2859 = vmatpush3.bf16.msra.mxu0 %v4163_v46  ;;  %2669 = vmatprep.subr.bf16.mxu1 %v4167_v51  ;;  %v4712_v46 = vld [vmem:[#allocation24_spill] sm:$0xff] }
 0x199   : > { %2861 = vmatprep.subr.bf16.mxu0 %v4171_v11 }
 0x19b   : > { %2671 = vmatpush3.bf16.msra.mxu1 %v4167_v51  ;;  %v4715_v51 = vld [vmem:[#allocation27_spill] sm:$0xff] }
 0x19c   : > { %2863 = vmatpush3.bf16.msra.mxu0 %v4171_v11  ;;  %2673 = vmatprep.subr.bf16.mxu1 %v4705_v16  ;;  %v4716_v11 = vld [vmem:[#allocation28_spill] sm:$0xff] }
 0x19d   : > { %2865 = vmatprep.subr.bf16.mxu0 %v4706_v50 }
 0x19e   : > { %2259 = vmatmul.mubr.f32.vlgmr.msra.gmra.mrb[0].mxu1 %v4194_v61  ;;  %v4746_v61 = vld [vmem:[#allocation43_spill] sm:$0xff] }
 0x19f   : > { %2469 = vmatmul.mubr.f32.vlgmr.msra.gmra.mrb[0].mxu0 %v4197_v52  ;;  %2675 = vmatpush3.bf16.msra.mxu1 %v4705_v16  ;;  %v4747_v52 = vand.u32 4294901760, %v4746_v61 }
 0x1a0   : > { %2293 = vmatprep.mubr.f32.mxu1 %v468_v0  ;;  %2867 = vmatpush3.bf16.msra.mxu0 %v4706_v50  ;;  %v4744_v0 = vld [vmem:[#allocation42_spill] sm:$0xff] }
 0x1a1   : > { %2503 = vmatprep.mubr.f32.mxu0 %v1176_v2  ;;  %2677 = vmatprep.subr.bf16.mxu1 %v4707_v20  ;;  %v4745_v2 = vand.u32 4294901760, %v4744_v0 }
 0x1a2   : > { %2869 = vmatprep.subr.bf16.mxu0 %v4708_v13 }
 0x1a3   : > { %2679 = vmatpush3.bf16.msra.mxu1 %v4707_v20  ;;  %v2908_v37 = vpack.c.bf16 %v4747_v52, %v4745_v2 }
 0x1a4   : > { %2871 = vmatpush3.bf16.msra.mxu0 %v4708_v13  ;;  %2681 = vmatprep.subr.bf16.mxu1 %v4709_v29 }
 0x1a5   : > { %2873 = vmatprep.subr.bf16.mxu0 %v4710_v22 }
 0x1a7   : > { %2683 = vmatpush3.bf16.msra.mxu1 %v4709_v29 }
 0x1a8   : > { %2875 = vmatpush3.bf16.msra.mxu0 %v4710_v22  ;;  %2685 = vmatprep.subr.bf16.mxu1 %v4711_v30 }
 0x1a9   : > { %2877 = vmatprep.subr.bf16.mxu0 %v4712_v46 }
 0x1ab   : > { %2687 = vmatpush3.bf16.msra.mxu1 %v4711_v30 }
 0x1ac   : > { %2879 = vmatpush3.bf16.msra.mxu0 %v4712_v46  ;;  %2689 = vmatprep.subr.bf16.mxu1 %v4713_v21 }
 0x1ad   : > { %2881 = vmatprep.subr.bf16.mxu0 %v4714_v18 }
 0x1af   : > { %2691 = vmatpush3.bf16.msra.mxu1 %v4713_v21 }
 0x1b0   : > { %2883 = vmatpush3.bf16.msra.mxu0 %v4714_v18  ;;  %2693 = vmatprep.subr.bf16.mxu1 %v4715_v51 }
 0x1b1   : > { %2885 = vmatprep.subr.bf16.mxu0 %v4716_v11 }
 0x1b3   : > { %2695 = vmatpush3.bf16.msra.mxu1 %v4715_v51 }
 0x1b4   : > { %2887 = vmatpush3.bf16.msra.mxu0 %v4716_v11  ;;  %2697 = vmatprep.subr.bf16.mxu1 %v4717_v19 }
 0x1b5   : > { %2889 = vmatprep.subr.bf16.mxu0 %v4718_v32 }
 0x1b7   : > { %2699 = vmatpush3.bf16.msra.mxu1 %v4717_v19 }
 0x1b8   : > { %2891 = vmatpush3.bf16.msra.mxu0 %v4718_v32  ;;  %2701 = vmatprep.subr.bf16.mxu1 %v4719_v40 }
 0x1b9   : > { %2893 = vmatprep.subr.bf16.mxu0 %v4722_v58 }
 0x1bb   : > { %2703 = vmatpush3.bf16.msra.mxu1 %v4719_v40 }
 0x1bc   : > { %2895 = vmatpush3.bf16.msra.mxu0 %v4722_v58  ;;  %2705 = vmatprep.subr.bf16.mxu1 %v2704_v26 }
 0x1bd   : > { %2897 = vmatprep.subr.bf16.mxu0 %v2896_v60 }
 0x1be   : > { %2294 = vmatmul.mubr.f32.vlgmr.msra.gmra.mrb[0].mxu1 %v478_v27  ;;  %v4749_v27 = vand.u32 4294901760, %v4748_v49 }
 0x1bf   : > { %2504 = vmatmul.mubr.f32.vlgmr.msra.gmra.mrb[0].mxu0 %v1186_v12  ;;  %2707 = vmatpush3.bf16.msra.mxu1 %v2704_v26  ;;  %v4750_v12 = vld [vmem:[#allocation45_spill] sm:$0xff]  ;;  %v4757_v26 = vand.u32 4294901760, %v4756_v62 }
 0x1c0   : > { %2328 = vmatprep.mubr.f32.mxu1 %v4177_v63  ;;  %2899 = vmatpush3.bf16.msra.mxu0 %v2896_v60  ;;  %v4751_v35 = vand.u32 4294901760, %v4750_v12 }
 0x1c1   : > { %2538 = vmatprep.mubr.f32.mxu0 %v4179_v23  ;;  %2709 = vmatprep.subr.bf16.mxu1 %v2708_v17  ;;  %v2724_v60 = vpack.c.bf16 %v4759_v38, %v4757_v26 }
 0x1c2   : > { %2901 = vmatprep.subr.bf16.mxu0 %v2900_v8  ;;  %v2720_v47 = vpack.c.bf16 %v4751_v35, %v4749_v27 }
 0x1c3   : > { %2711 = vmatpush3.bf16.msra.mxu1 %v2708_v17  ;;  %v4763_v17 = vand.u32 4294901760, %v4762_v59 }
 0x1c4   : > { %2903 = vmatpush3.bf16.msra.mxu0 %v2900_v8  ;;  %2713 = vmatprep.subr.bf16.mxu1 %v2712_v34  ;;  %v4767_v8 = vand.u32 4294901760, %v4766_v6 }
 0x1c5   : > { %2905 = vmatprep.subr.bf16.mxu0 %v2904_v31  ;;  %v2916_v53 = vpack.c.bf16 %v4763_v17, %v4761_v7 }
 0x1c6   : > { %v2728_v55 = vpack.c.bf16 %v4767_v8, %v4765_v44 }
 0x1c7   : > { %2715 = vmatpush3.bf16.msra.mxu1 %v2712_v34  ;;  %v4771_v34 = vand.u32 4294901760, %v4770_v54 }
 0x1c8   : > { %2907 = vmatpush3.bf16.msra.mxu0 %v2904_v31  ;;  %2717 = vmatprep.subr.bf16.mxu1 %v2716_v1  ;;  %v4775_v31 = vand.u32 4294901760, %v4774_v42 }
 0x1c9   : > { %2909 = vmatprep.subr.bf16.mxu0 %v2908_v37  ;;  %v2920_v48 = vpack.c.bf16 %v4771_v34, %v4769_v41 }
 0x1ca   : > { %v2732_v14 = vpack.c.bf16 %v4775_v31, %v4773_v33 }
 0x1cb   : > { %2719 = vmatpush3.bf16.msra.mxu1 %v2716_v1  ;;  %v4779_v1 = vand.u32 4294901760, %v4778_v9 }
 0x1cc   : > { %2911 = vmatpush3.bf16.msra.mxu0 %v2908_v37  ;;  %2721 = vmatprep.subr.bf16.mxu1 %v2720_v47 }
 0x1cd   : > { %2913 = vmatprep.subr.bf16.mxu0 %v2912_v56  ;;  %v2924_v0 = vpack.c.bf16 %v4779_v1, %v4777_v10 }
 0x1cf   : > { %2723 = vmatpush3.bf16.msra.mxu1 %v2720_v47 }
 0x1d0   : > { %2915 = vmatpush3.bf16.msra.mxu0 %v2912_v56  ;;  %2725 = vmatprep.subr.bf16.mxu1 %v2724_v60 }
 0x1d1   : > { %2917 = vmatprep.subr.bf16.mxu0 %v2916_v53 }
 0x1d3   : > { %2727 = vmatpush3.bf16.msra.mxu1 %v2724_v60 }
 0x1d4   : > { %2919 = vmatpush3.bf16.msra.mxu0 %v2916_v53  ;;  %2729 = vmatprep.subr.bf16.mxu1 %v2728_v55 }
 0x1d5   : > { %2921 = vmatprep.subr.bf16.mxu0 %v2920_v48 }
 0x1d7   : > { %2731 = vmatpush3.bf16.msra.mxu1 %v2728_v55 }
 0x1d8   : > { %2923 = vmatpush3.bf16.msra.mxu0 %v2920_v48  ;;  %2733 = vmatprep.subr.bf16.mxu1 %v2732_v14 }
 0x1d9   : > { %2925 = vmatprep.subr.bf16.mxu0 %v2924_v0 }
 0x1db   : > { %2735 = vmatpush3.bf16.msra.mxu1 %v2732_v14 }
 0x1dc   : > { %2927 = vmatpush3.bf16.msra.mxu0 %v2924_v0  ;;  %2737 = vmatprep.subr.bf16.mxu1 %v4705_v16 }
 0x1dd   : > { %2929 = vmatprep.subr.bf16.mxu0 %v4706_v50 }
 0x1de   : > { %2329 = vmatmul.mubr.f32.vlgmr.msra.gmra.mrb[0].mxu1 %v4187_v3 }
 0x1df   : > { %2539 = vmatmul.mubr.f32.vlgmr.msra.gmra.mrb[0].mxu0 %v4189_v24  ;;  %2739 = vmatpush3.bf16.msra.mxu1 %v4705_v16 }
 0x1e0   : > { %2363 = vmatprep.mubr.f32.mxu1 %v4177_v63  ;;  %2931 = vmatpush3.bf16.msra.mxu0 %v4706_v50  ;;  %v1930_v63 = vld [vmem:[%s4484_s4] ss:$0 sm:$0xff] }
 0x1e1   : > { %2573 = vmatprep.mubr.f32.mxu0 %v4179_v23  ;;  %2741 = vmatprep.subr.bf16.mxu1 %v4707_v20 }
 0x1e2   : > { %2933 = vmatprep.subr.bf16.mxu0 %v4708_v13 }
 0x1e3   : > { %2743 = vmatpush3.bf16.msra.mxu1 %v4707_v20 }
 0x1e4   : > { %2935 = vmatpush3.bf16.msra.mxu0 %v4708_v13  ;;  %2745 = vmatprep.subr.bf16.mxu1 %v4709_v29 }
 0x1e5   : > { %2937 = vmatprep.subr.bf16.mxu0 %v4710_v22 }
 0x1e7   : > { %2747 = vmatpush3.bf16.msra.mxu1 %v4709_v29 }
 0x1e8   : > { %2939 = vmatpush3.bf16.msra.mxu0 %v4710_v22  ;;  %2749 = vmatprep.subr.bf16.mxu1 %v4711_v30 }
 0x1e9   : > { %2941 = vmatprep.subr.bf16.mxu0 %v4712_v46 }
 0x1eb   : > { %2751 = vmatpush3.bf16.msra.mxu1 %v4711_v30 }
 0x1ec   : > { %2943 = vmatpush3.bf16.msra.mxu0 %v4712_v46  ;;  %2753 = vmatprep.subr.bf16.mxu1 %v4713_v21 }
 0x1ed   : > { %2945 = vmatprep.subr.bf16.mxu0 %v4714_v18 }
 0x1ef   : > { %2755 = vmatpush3.bf16.msra.mxu1 %v4713_v21 }
 0x1f0   : > { %2947 = vmatpush3.bf16.msra.mxu0 %v4714_v18  ;;  %2757 = vmatprep.subr.bf16.mxu1 %v4715_v51 }
 0x1f1   : > { %2949 = vmatprep.subr.bf16.mxu0 %v4716_v11 }
 0x1f3   : > { %2759 = vmatpush3.bf16.msra.mxu1 %v4715_v51 }
 0x1f4   : > { %2951 = vmatpush3.bf16.msra.mxu0 %v4716_v11  ;;  %2761 = vmatprep.subr.bf16.mxu1 %v4717_v19 }
 0x1f5   : > { %2953 = vmatprep.subr.bf16.mxu0 %v4718_v32 }
 0x1f7   : > { %2763 = vmatpush3.bf16.msra.mxu1 %v4717_v19 }
 0x1f8   : > { %2955 = vmatpush3.bf16.msra.mxu0 %v4718_v32  ;;  %2765 = vmatprep.subr.bf16.mxu1 %v4719_v40 }
 0x1f9   : > { %2957 = vmatprep.subr.bf16.mxu0 %v4722_v58 }
 0x1fb   : > { %2767 = vmatpush3.bf16.msra.mxu1 %v4719_v40 }
 0x1fc   : > { %2959 = vmatpush3.bf16.msra.mxu0 %v4722_v58 }
 0x1fe   : > { %2364 = vmatmul.mubr.f32.vlgmr.msra.gmra.mrb[0].mxu1 %v4187_v3 }
 0x1ff   : > { %2574 = vmatmul.mubr.f32.vlgmr.msra.gmra.mrb[0].mxu0 %v4189_v24 }
 0x2d1   : > { %v2365_v23 = vpop.f32.mrb[0].mxu1 }
 0x2d2   : > { %v2960_v16 = vadd.f32 %v2365_v23, %v1930_v63  ;;  %v2575_v50 = vpop.f32.mrb[0].mxu0  ;;  %v1059_v20 = vpop.f32.mrb[1].mxu1 }
 0x2d3   : > { %v2962_v3 = vadd.f32 %v1930_v63, %v1059_v20  ;;  %v1767_v24 = vpop.f32.mrb[1].mxu0 }
 0x2d4   : > { %v2961_v13 = vadd.f32 %v2960_v16, %v2575_v50 }
 0x2d5   : > { %v2963_v29 = vadd.f32 %v2962_v3, %v1767_v24 }
 0x2d6   : > { %1780 = vst [vmem:[%s314_s25 + $0x8] sm:$0xff] %v2961_v13 }
 0x2d7   : > { %1779 = vst [vmem:[%s314_s25] sm:$0xff] %v2963_v29 }
 0x2d8   : > { %3195 = shalt.err (!%p3192_p10)
}
 0x2d9   : > { %s3196_s28 = scalar_lea.hbm %s4437_s26, 256  ;;  %s3200_s9 = scalar_lea.hbm %s4485_s5, 2048 }
 0x2da   : > { %p3197_p3 = scmp.ne.s32.totalorder %s4437_s26, %s3196_s28  ;;  %p3201_p1 = scmp.lt.u32.totalorder %s4437_s26, %s4485_s5 }
 0x2db   : > { %p3202_p4 = scmp.lt.u32.totalorder %s3200_s9, %s3196_s28  ;;  %p3204_p2 = scmp.lt.u32.totalorder %s3196_s28, %s4437_s26 }
 0x2dc   : > { %p3198_p8 = pnand %p3197_p3, %p4780_p5 }
 0x2dd   : > { %p3203_p0 = por %p3202_p4, %p3201_p1 }
 0x2de   : > { %p3199_p7 = pneg %p3198_p8 }
 0x2df   : > { %p3205_p11 = por %p3204_p2, %p3203_p0 }
 0x2e1   : > { %p3206_p12 = pnand %p3205_p11, %p3199_p7 }
 0x2e3   : > { %3209 = shalt.err (!%p3206_p12)
}
 0x2e4   : > { %s3270_s7 = smov 128   ;;  %s3271_s29 = smov 8  }
 0x2e5   : > { %2996 = dma.vmem_to_hbm [thread:$0]  (%p4780_p5), %s4432_s14, 256, %s4437_s26, %s1782_s10, %s3270_s7, %s3270_s7, %s3271_s29  }
 0x2e6 PF: > { %p3021_p6 = scmp.ge.s32.totalorder %s3260_s21, 2  ;;  %s1810_s11 = sand.u32 1, %s3248_s18  }
 0x2e7   : > { %p4781_p13 = scmp.ne.s32.totalorder %s4611_s6, 0  ;;  %s1811_s25 = scalar_lea.sflag [#allocation4], %s1810_s11 }
 0x2e9   : > { %p3013_p9 = pnand %p3021_p6, %p4781_p13 }
 0x2eb   : > { %3243 = dma.done.wait (!%p3013_p9), %s1811_s25, 256  }
 0x2ec   : > { %3245 = vsyncadd (!%p3013_p9), %s1811_s25, 4294967040  ;;  %s4782_s16 = sld [smem:[#allocation16_spill]]  ;;  %p22_p10 = scmp.ge.s32.totalorder %s3327_s24, 10  }
 0x2ed   : > { %s4783_s18 = smov %s3252_s19  ;;  %s4784_s19 = smov %s3256_s20 }
 0x2ee   : > { %s4786_s21 = smov %s3327_s24  ;;  %24 = sbr.rel (!%p22_p10) target bundleno = 12 (0xc), region = 106 }
 0x2f2   : > { %s4785_s20 = smov %s4782_s16 }
 0x2f5   :  { %1816 = vsyncpa [#allocation3], 1 }
 0x2f6   :  { %1818 = vsyncpa [#allocation3 + $0x1], 1 }
 0x2f7   :  { %1819 = vsyncpa [#allocation6], 1 }
 0x2f8   :  { %1821 = vsyncpa [#allocation6 + $0x1], 1 }
 0x2f9   :  { %1822 = vsyncpa [#allocation9], 1 }
 0x2fa   :  { %1823 = vsyncpa [#allocation4], 1 }
 0x2fb   :  { %1825 = vsyncpa [#allocation4 + $0x1], 1 }

</bundles_post_ra>
